<compile_context>
chip_gen: v6e
topology: v6e:2x2x1
jax: 0.10.0
libtpu: 0.0.40
codegen_flags: <defaults>
</compile_context>

<pallas_src>
import functools

import jax
import jax.numpy as jnp
from jax.experimental import pallas as pl
from jax.experimental.pallas import tpu as pltpu


# -----------------------------------------------------------------------------
# Pallas kernel: one pyramid level, P batch items of shape (H, W, C).
# Fuses: num_layers x [sep-conv (3 accumulated K=3C matmuls) + bias + BN +
#        swish] + header sep-conv (3 K=3C matmuls, 128-padded out channels)
#        + final ClassNet sigmoid.
# -----------------------------------------------------------------------------
def _classnet_level_kernel(num_layers, P, H, W, C, AKp,
                           x_ref, bns_ref, bnb_ref,
                           w3_ref, b_ref, hw3_ref, hb_ref, out_ref):
    M = P * H * W

    # Hoisted once — JAX does not CSE zeros/broadcasts inside the unrolled loop.
    zrow = jnp.zeros((P, 1, W, C), jnp.bfloat16)
    zcol = jnp.zeros((P, H, 1, C), jnp.bfloat16)
    bn_s = bns_ref[...]            # (L, C) f32
    bn_b = bnb_ref[...]            # (L, C) f32
    bias = b_ref[...]              # (L, C) f32
    hbias = hb_ref[...]            # (1, AKp) f32

    def row_shift(f, dh):
        # "SAME" 3x3: row tap kh -> input row h + (kh - 1); out-of-range -> 0.
        if dh == 0:
            return f
        if H == 1:
            return jnp.zeros_like(f)
        if dh == -1:
            return jnp.concatenate([zrow, f[:, :H - 1]], axis=1)
        return jnp.concatenate([f[:, 1:], zrow], axis=1)

    def col_taps(fh):
        # (P, H, W, 3C) patch slab for one row shift: [w-1 | w | w+1] on lanes.
        # (pltpu.roll on the sublane axis is an option at realistic W; at toy
        #  W in {1..16} static slices + zero slabs are the robust choice.)
        if W == 1:
            left = jnp.zeros_like(fh)
            right = jnp.zeros_like(fh)
        else:
            left = jnp.concatenate([zcol, fh[:, :, :W - 1]], axis=2)
            right = jnp.concatenate([fh[:, :, 1:], zcol], axis=2)
        return jnp.concatenate([left, fh, right], axis=-1).reshape(M, 3 * C)

    feat = x_ref[...]                                     # (P, H, W, C) bf16
    for li in range(num_layers):
        acc = jnp.zeros((M, C), jnp.float32)
        for t, dh in enumerate((-1, 0, 1)):               # t == kh tap index
            if H == 1 and dh != 0:
                continue                                  # all-zero patches
            acc += jnp.dot(col_taps(row_shift(feat, dh)), w3_ref[li, t],
                           preferred_element_type=jnp.float32)
        y = acc + bias[li][None, :]
        y = y * bn_s[li][None, :] + bn_b[li][None, :]     # folded BN (inference)
        y = y * jax.nn.sigmoid(y)                         # swish, f32
        feat = y.reshape(P, H, W, C).astype(jnp.bfloat16)

    # Header SeparableConvBlock(in=C, out=A*K) + final ClassNet sigmoid.
    acc = jnp.zeros((M, AKp), jnp.float32)
    for t, dh in enumerate((-1, 0, 1)):
        if H == 1 and dh != 0:
            continue
        acc += jnp.dot(col_taps(row_shift(feat, dh)), hw3_ref[t],
                       preferred_element_type=jnp.float32)
    h = jax.nn.sigmoid(acc + hbias)
    out_ref[...] = h.reshape(P, H, W, AKp).astype(jnp.bfloat16)   # lane-dense


def _vmem_budget_bytes(P, H, W, C, AKp, L):
    """Rough per-step VMEM need (blocks + in-kernel temporaries) with headroom."""
    bf, f4 = 2, 4
    M = P * H * W
    x_blk = M * C * bf
    o_blk = M * AKp * bf
    wts = (L * 3 * 3 * C * C * bf + 3 * L * C * f4
           + 3 * 3 * C * AKp * bf + AKp * f4)
    live = (3 * M * 3 * C * bf            # shifted taps + patch slab
            + M * max(C, AKp) * f4        # f32 accumulator
            + 2 * M * C * f4)             # activation temporaries
    total = 2 * (x_blk + o_blk) + wts + live
    # 2x headroom; never below the 32 MiB default, capped at a v7x-safe 48 MiB.
    return int(min(max(2 * total, 32 << 20), 48 << 20))


# -----------------------------------------------------------------------------
# Wrapper: layout + weight folding + one pallas_call per pyramid level.
# -----------------------------------------------------------------------------
def classnet_forward(inputs_nchw, params, num_layers, num_anchors, num_classes):
    """inputs_nchw: list of 5 feature maps, each (N, C, H, W) like PyTorch."""
    N, C = int(inputs_nchw[0].shape[0]), int(inputs_nchw[0].shape[1])
    AK = num_anchors * num_classes
    AKp = max(128, ((AK + 127) // 128) * 128)     # lane-dense header channels
    L = num_layers

    # Fold depthwise(3x3, no bias) + pointwise(1x1) into per-row-tap matmul
    # weights: w3[l, kh, kw*C + c, c'] = dw[l, kh, kw, c] * pw[l, c, c'].
    w3 = (params["dw"][:, :, :, :, None] * params["pw"][:, None, None, :, :]
          ).reshape(L, 3, 3 * C, C).astype(jnp.bfloat16)
    b = params["pwb"].astype(jnp.float32)                              # (L, C)
    hw3 = (params["hdw"][:, :, :, None] * params["hpw"][None, None, :, :]
           ).reshape(3, 3 * C, AK)
    hw3 = jnp.pad(hw3, ((0, 0), (0, 0), (0, AKp - AK))).astype(jnp.bfloat16)
    hb = jnp.pad(params["hpwb"].astype(jnp.float32), ((0, 0), (0, AKp - AK)))

    # Pad batch to even: 2 "parallel" grid steps keep both v7x cores busy.
    Np = N if N % 2 == 0 else N + 1
    P = Np // 2

    cheap = pl.Buffered(buffer_count=1)   # constant blocks: no second buffer

    feats = []
    for lvl, x in enumerate(inputs_nchw):
        H, W = int(x.shape[2]), int(x.shape[3])
        xh = jnp.transpose(x, (0, 2, 3, 1)).astype(jnp.bfloat16)       # NHWC bf16
        if Np != N:
            xh = jnp.pad(xh, ((0, Np - N), (0, 0), (0, 0), (0, 0)))

        kernel = functools.partial(_classnet_level_kernel, L, P, H, W, C, AKp)
        out = pl.pallas_call(
            kernel,
            out_shape=jax.ShapeDtypeStruct((Np, H, W, AKp), jnp.bfloat16),
            grid=(2,),
            in_specs=[
                pl.BlockSpec((P, H, W, C), lambda g: (g, 0, 0, 0)),        # x
                pl.BlockSpec((L, C), lambda g: (0, 0),
                             pipeline_mode=cheap),                         # BN scale (this level)
                pl.BlockSpec((L, C), lambda g: (0, 0),
                             pipeline_mode=cheap),                         # BN shift
                pl.BlockSpec((L, 3, 3 * C, C), lambda g: (0, 0, 0, 0),
                             pipeline_mode=cheap),                         # fused layer weights
                pl.BlockSpec((L, C), lambda g: (0, 0),
                             pipeline_mode=cheap),                         # pointwise bias
                pl.BlockSpec((3, 3 * C, AKp), lambda g: (0, 0, 0),
                             pipeline_mode=cheap),                         # fused header weights
                pl.BlockSpec((1, AKp), lambda g: (0, 0),
                             pipeline_mode=cheap),                         # header bias
            ],
            out_specs=pl.BlockSpec((P, H, W, AKp), lambda g: (g, 0, 0, 0)),
            compiler_params=pltpu.CompilerParams(
                dimension_semantics=("parallel",),
                vmem_limit_bytes=_vmem_budget_bytes(P, H, W, C, AKp, L)),
        )(xh, params["bn_scale"][lvl], params["bn_shift"][lvl], w3, b, hw3, hb)

        # Drop batch padding + channel padding, match torch's
        # permute(0,2,3,1).view(N,H,W,A,K).view(N,-1,K) layout.
        o = out[:N, :, :, :AK].astype(jnp.float32)
        feats.append(o.reshape(N, H * W * num_anchors, num_classes))
    return jnp.concatenate(feats, axis=1)     # sigmoid already applied in-kernel


# -----------------------------------------------------------------------------
# Deterministic parameter initialization (shapes follow ClassNet.__init__).
# -----------------------------------------------------------------------------
def init_params(key, C, num_anchors, num_classes, num_layers, num_levels=5):
    AK = num_anchors * num_classes
    ks = jax.random.split(key, 8)
    s = 0.1
    dw = s * jax.random.normal(ks[0], (num_layers, 3, 3, C), jnp.float32)
    pw = s * jax.random.normal(ks[1], (num_layers, C, C), jnp.float32)
    pwb = s * jax.random.normal(ks[2], (num_layers, C), jnp.float32)
    hdw = s * jax.random.normal(ks[3], (3, 3, C), jnp.float32)
    hpw = s * jax.random.normal(ks[4], (C, AK), jnp.float32)
    hpwb = s * jax.random.normal(ks[5], (1, AK), jnp.float32)
    # BatchNorm2d per (pyramid level, layer): eps=1e-3; fold to scale/shift.
    gamma = 1.0 + 0.1 * jax.random.normal(ks[6], (num_levels, num_layers, C), jnp.float32)
    beta = 0.1 * jax.random.normal(ks[7], (num_levels, num_layers, C), jnp.float32)
    running_mean = jnp.zeros((num_levels, num_layers, C), jnp.float32)
    running_var = jnp.ones((num_levels, num_layers, C), jnp.float32)
    eps = 1e-3
    bn_scale = gamma / jnp.sqrt(running_var + eps)
    bn_shift = beta - running_mean * bn_scale
    return dict(dw=dw, pw=pw, pwb=pwb, hdw=hdw, hpw=hpw, hpwb=hpwb,
                bn_scale=bn_scale, bn_shift=bn_shift)


# -----------------------------------------------------------------------------
# Pure-JAX reference (lax conv, full f32) for correctness checking.
# -----------------------------------------------------------------------------
def classnet_reference(inputs_nchw, params, num_layers, num_anchors, num_classes):
    def dwconv(x_nhwc, w33c):
        C = x_nhwc.shape[-1]
        return jax.lax.conv_general_dilated(
            x_nhwc, w33c.reshape(3, 3, 1, C), (1, 1), "SAME",
            dimension_numbers=("NHWC", "HWIO", "NHWC"), feature_group_count=C)

    feats = []
    for level, x_nchw in enumerate(inputs_nchw):
        feat = jnp.transpose(x_nchw, (0, 2, 3, 1))
        for li in range(num_layers):
            feat = dwconv(feat, params["dw"][li])
            feat = jnp.einsum("nhwc,cd->nhwd", feat, params["pw"][li]) + params["pwb"][li]
            feat = feat * params["bn_scale"][level][li] + params["bn_shift"][level][li]
            feat = feat * jax.nn.sigmoid(feat)
        feat = dwconv(feat, params["hdw"])
        feat = jnp.einsum("nhwc,cd->nhwd", feat, params["hpw"]) + params["hpwb"][0]
        N, H, W, _ = feat.shape
        feats.append(feat.reshape(N, H * W * num_anchors, num_classes))
    return jax.nn.sigmoid(jnp.concatenate(feats, axis=1))


if __name__ == "__main__":
    N = 2
    in_channels = 32
    num_anchors = 3
    num_classes = 8
    num_layers = 2
    spatial = [16, 8, 4, 2, 1]   # 5 pyramid levels (P3..P7 style)

    key = jax.random.PRNGKey(0)
    k_params, *k_feats = jax.random.split(key, 1 + len(spatial))
    params = init_params(k_params, in_channels, num_anchors, num_classes, num_layers)

    inputs = [jax.random.normal(k, (N, in_channels, s, s), jnp.float32)
              for k, s in zip(k_feats, spatial)]

    out = classnet_forward(inputs, params, num_layers, num_anchors, num_classes)
    out = jax.block_until_ready(out)

    ref = classnet_reference(inputs, params, num_layers, num_anchors, num_classes)
    ref = jax.block_until_ready(ref)

    expected_anchors = sum(s * s for s in spatial) * num_anchors
    assert out.shape == (N, expected_anchors, num_classes), out.shape
    # bf16 matmul operands + bf16 activations/output (sigmoid outputs in [0,1],
    # bf16 spacing <= 2^-8) with f32 accumulation -> 1e-2 tolerance.
    assert jnp.allclose(out, ref, atol=1e-2, rtol=1e-2), \
        float(jnp.max(jnp.abs(out - ref)))

    print("KERNEL_OK")
</pallas_src>

<mosaic_0001>
module attributes {stable_mosaic.version = 11 : i64} {
  func.func @_classnet_level_kernel(%arg0: i32, %arg1: memref<1x16x16x32xbf16, #tpu.memory_space<vmem>>, %arg2: memref<2x32xf32, #tpu.memory_space<vmem>>, %arg3: memref<2x32xf32, #tpu.memory_space<vmem>>, %arg4: memref<2x3x96x32xbf16, #tpu.memory_space<vmem>>, %arg5: memref<2x32xf32, #tpu.memory_space<vmem>>, %arg6: memref<3x96x128xbf16, #tpu.memory_space<vmem>>, %arg7: memref<1x128xf32, #tpu.memory_space<vmem>>, %arg8: memref<1x16x16x128xbf16, #tpu.memory_space<vmem>>) attributes {dimension_semantics = [#tpu.dimension_semantics<parallel>], iteration_bounds = array<i64: 2>, scalar_prefetch = 0 : i64, scratch_operands = 0 : i64, tpu.core_type = #tpu.core_type<tc>, window_params = [{transform_indices = @transform_0, window_bounds = array<i64: 1, 16, 16, 32>}, {pipeline_mode = #tpu.pipeline_mode<synchronous>, transform_indices = @transform_1, window_bounds = array<i64: 2, 32>}, {pipeline_mode = #tpu.pipeline_mode<synchronous>, transform_indices = @transform_2, window_bounds = array<i64: 2, 32>}, {pipeline_mode = #tpu.pipeline_mode<synchronous>, transform_indices = @transform_3, window_bounds = array<i64: 2, 3, 96, 32>}, {pipeline_mode = #tpu.pipeline_mode<synchronous>, transform_indices = @transform_4, window_bounds = array<i64: 2, 32>}, {pipeline_mode = #tpu.pipeline_mode<synchronous>, transform_indices = @transform_5, window_bounds = array<i64: 3, 96, 128>}, {pipeline_mode = #tpu.pipeline_mode<synchronous>, transform_indices = @transform_6, window_bounds = array<i64: 1, 128>}, {transform_indices = @transform_7, window_bounds = array<i64: 1, 16, 16, 128>}]} {
    %cst = arith.constant 0.000000e+00 : bf16
    %0 = vector.broadcast %cst : bf16 to vector<1x1x16x32xbf16>
    %cst_0 = arith.constant 0.000000e+00 : bf16
    %1 = vector.broadcast %cst_0 : bf16 to vector<1x16x1x32xbf16>
    %c0 = arith.constant 0 : index
    %c0_1 = arith.constant 0 : index
    %2 = vector.load %arg2[%c0, %c0_1] : memref<2x32xf32, #tpu.memory_space<vmem>>, vector<2x32xf32>
    %c0_2 = arith.constant 0 : index
    %c0_3 = arith.constant 0 : index
    %3 = vector.load %arg3[%c0_2, %c0_3] : memref<2x32xf32, #tpu.memory_space<vmem>>, vector<2x32xf32>
    %c0_4 = arith.constant 0 : index
    %c0_5 = arith.constant 0 : index
    %4 = vector.load %arg5[%c0_4, %c0_5] : memref<2x32xf32, #tpu.memory_space<vmem>>, vector<2x32xf32>
    %c0_6 = arith.constant 0 : index
    %c0_7 = arith.constant 0 : index
    %5 = vector.load %arg7[%c0_6, %c0_7] : memref<1x128xf32, #tpu.memory_space<vmem>>, vector<1x128xf32>
    %c0_8 = arith.constant 0 : index
    %c0_9 = arith.constant 0 : index
    %c0_10 = arith.constant 0 : index
    %c0_11 = arith.constant 0 : index
    %6 = vector.load %arg1[%c0_8, %c0_9, %c0_10, %c0_11] : memref<1x16x16x32xbf16, #tpu.memory_space<vmem>>, vector<1x16x16x32xbf16>
    %cst_12 = arith.constant 0.000000e+00 : f32
    %7 = vector.broadcast %cst_12 : f32 to vector<256x32xf32>
    %8 = vector.extract_strided_slice %6 {offsets = [0, 0, 0, 0], sizes = [1, 15, 16, 32], strides = [1, 1, 1, 1]} : vector<1x16x16x32xbf16> to vector<1x15x16x32xbf16>
    %9 = tpu.concatenate %0, %8 in 1 : vector<1x1x16x32xbf16>, vector<1x15x16x32xbf16> -> vector<1x16x16x32xbf16>
    %10 = vector.extract_strided_slice %9 {offsets = [0, 0, 0, 0], sizes = [1, 16, 15, 32], strides = [1, 1, 1, 1]} : vector<1x16x16x32xbf16> to vector<1x16x15x32xbf16>
    %11 = tpu.concatenate %1, %10 in 2 : vector<1x16x1x32xbf16>, vector<1x16x15x32xbf16> -> vector<1x16x16x32xbf16>
    %12 = vector.extract_strided_slice %9 {offsets = [0, 0, 1, 0], sizes = [1, 16, 15, 32], strides = [1, 1, 1, 1]} : vector<1x16x16x32xbf16> to vector<1x16x15x32xbf16>
    %13 = tpu.concatenate %12, %1 in 2 : vector<1x16x15x32xbf16>, vector<1x16x1x32xbf16> -> vector<1x16x16x32xbf16>
    %14 = tpu.concatenate %11, %9, %13 in 3 : vector<1x16x16x32xbf16>, vector<1x16x16x32xbf16>, vector<1x16x16x32xbf16> -> vector<1x16x16x96xbf16>
    %15 = vector.shape_cast %14 : vector<1x16x16x96xbf16> to vector<256x96xbf16>
    %c0_13 = arith.constant 0 : index
    %c0_14 = arith.constant 0 : index
    %c0_15 = arith.constant 0 : index
    %c0_16 = arith.constant 0 : index
    %16 = vector.load %arg4[%c0_13, %c0_14, %c0_15, %c0_16] : memref<2x3x96x32xbf16, #tpu.memory_space<vmem>>, vector<1x1x96x32xbf16>
    %17 = vector.shape_cast %16 : vector<1x1x96x32xbf16> to vector<96x32xbf16>
    %cst_17 = arith.constant dense<0.000000e+00> : vector<256x32xf32>
    %18 = tpu.matmul %15, %17, %cst_17 {dimension_numbers = #tpu.dot_dimension_numbers<[1], [0], [0], [1], [0, 0, 1, 1], [], []>} : vector<256x96xbf16>, vector<96x32xbf16>, vector<256x32xf32> -> vector<256x32xf32>
    %19 = arith.addf %7, %18 : vector<256x32xf32>
    %20 = vector.extract_strided_slice %6 {offsets = [0, 0, 0, 0], sizes = [1, 16, 15, 32], strides = [1, 1, 1, 1]} : vector<1x16x16x32xbf16> to vector<1x16x15x32xbf16>
    %21 = tpu.concatenate %1, %20 in 2 : vector<1x16x1x32xbf16>, vector<1x16x15x32xbf16> -> vector<1x16x16x32xbf16>
    %22 = vector.extract_strided_slice %6 {offsets = [0, 0, 1, 0], sizes = [1, 16, 15, 32], strides = [1, 1, 1, 1]} : vector<1x16x16x32xbf16> to vector<1x16x15x32xbf16>
    %23 = tpu.concatenate %22, %1 in 2 : vector<1x16x15x32xbf16>, vector<1x16x1x32xbf16> -> vector<1x16x16x32xbf16>
    %24 = tpu.concatenate %21, %6, %23 in 3 : vector<1x16x16x32xbf16>, vector<1x16x16x32xbf16>, vector<1x16x16x32xbf16> -> vector<1x16x16x96xbf16>
    %25 = vector.shape_cast %24 : vector<1x16x16x96xbf16> to vector<256x96xbf16>
    %c0_18 = arith.constant 0 : index
    %c1 = arith.constant 1 : index
    %c0_19 = arith.constant 0 : index
    %c0_20 = arith.constant 0 : index
    %26 = vector.load %arg4[%c0_18, %c1, %c0_19, %c0_20] : memref<2x3x96x32xbf16, #tpu.memory_space<vmem>>, vector<1x1x96x32xbf16>
    %27 = vector.shape_cast %26 : vector<1x1x96x32xbf16> to vector<96x32xbf16>
    %cst_21 = arith.constant dense<0.000000e+00> : vector<256x32xf32>
    %28 = tpu.matmul %25, %27, %cst_21 {dimension_numbers = #tpu.dot_dimension_numbers<[1], [0], [0], [1], [0, 0, 1, 1], [], []>} : vector<256x96xbf16>, vector<96x32xbf16>, vector<256x32xf32> -> vector<256x32xf32>
    %29 = arith.addf %19, %28 : vector<256x32xf32>
    %30 = vector.extract_strided_slice %6 {offsets = [0, 1, 0, 0], sizes = [1, 15, 16, 32], strides = [1, 1, 1, 1]} : vector<1x16x16x32xbf16> to vector<1x15x16x32xbf16>
    %31 = tpu.concatenate %30, %0 in 1 : vector<1x15x16x32xbf16>, vector<1x1x16x32xbf16> -> vector<1x16x16x32xbf16>
    %32 = vector.extract_strided_slice %31 {offsets = [0, 0, 0, 0], sizes = [1, 16, 15, 32], strides = [1, 1, 1, 1]} : vector<1x16x16x32xbf16> to vector<1x16x15x32xbf16>
    %33 = tpu.concatenate %1, %32 in 2 : vector<1x16x1x32xbf16>, vector<1x16x15x32xbf16> -> vector<1x16x16x32xbf16>
    %34 = vector.extract_strided_slice %31 {offsets = [0, 0, 1, 0], sizes = [1, 16, 15, 32], strides = [1, 1, 1, 1]} : vector<1x16x16x32xbf16> to vector<1x16x15x32xbf16>
    %35 = tpu.concatenate %34, %1 in 2 : vector<1x16x15x32xbf16>, vector<1x16x1x32xbf16> -> vector<1x16x16x32xbf16>
    %36 = tpu.concatenate %33, %31, %35 in 3 : vector<1x16x16x32xbf16>, vector<1x16x16x32xbf16>, vector<1x16x16x32xbf16> -> vector<1x16x16x96xbf16>
    %37 = vector.shape_cast %36 : vector<1x16x16x96xbf16> to vector<256x96xbf16>
    %c0_22 = arith.constant 0 : index
    %c2 = arith.constant 2 : index
    %c0_23 = arith.constant 0 : index
    %c0_24 = arith.constant 0 : index
    %38 = vector.load %arg4[%c0_22, %c2, %c0_23, %c0_24] : memref<2x3x96x32xbf16, #tpu.memory_space<vmem>>, vector<1x1x96x32xbf16>
    %39 = vector.shape_cast %38 : vector<1x1x96x32xbf16> to vector<96x32xbf16>
    %cst_25 = arith.constant dense<0.000000e+00> : vector<256x32xf32>
    %40 = tpu.matmul %37, %39, %cst_25 {dimension_numbers = #tpu.dot_dimension_numbers<[1], [0], [0], [1], [0, 0, 1, 1], [], []>} : vector<256x96xbf16>, vector<96x32xbf16>, vector<256x32xf32> -> vector<256x32xf32>
    %41 = arith.addf %29, %40 : vector<256x32xf32>
    %42 = vector.extract_strided_slice %4 {offsets = [0, 0], sizes = [1, 32], strides = [1, 1]} : vector<2x32xf32> to vector<1x32xf32>
    %43 = vector.shape_cast %42 : vector<1x32xf32> to vector<32xf32>
    %44 = vector.shape_cast %43 : vector<32xf32> to vector<1x32xf32>
    %45 = vector.broadcast %44 : vector<1x32xf32> to vector<256x32xf32>
    %46 = arith.addf %41, %45 : vector<256x32xf32>
    %47 = vector.extract_strided_slice %2 {offsets = [0, 0], sizes = [1, 32], strides = [1, 1]} : vector<2x32xf32> to vector<1x32xf32>
    %48 = vector.shape_cast %47 : vector<1x32xf32> to vector<32xf32>
    %49 = vector.shape_cast %48 : vector<32xf32> to vector<1x32xf32>
    %50 = vector.broadcast %49 : vector<1x32xf32> to vector<256x32xf32>
    %51 = arith.mulf %46, %50 : vector<256x32xf32>
    %52 = vector.extract_strided_slice %3 {offsets = [0, 0], sizes = [1, 32], strides = [1, 1]} : vector<2x32xf32> to vector<1x32xf32>
    %53 = vector.shape_cast %52 : vector<1x32xf32> to vector<32xf32>
    %54 = vector.shape_cast %53 : vector<32xf32> to vector<1x32xf32>
    %55 = vector.broadcast %54 : vector<1x32xf32> to vector<256x32xf32>
    %56 = arith.addf %51, %55 : vector<256x32xf32>
    %57 = arith.negf %56 : vector<256x32xf32>
    %58 = math.exp %57 : vector<256x32xf32>
    %cst_26 = arith.constant 1.000000e+00 : f32
    %59 = vector.broadcast %cst_26 : f32 to vector<256x32xf32>
    %60 = arith.addf %59, %58 : vector<256x32xf32>
    %61 = arith.divf %59, %60 : vector<256x32xf32>
    %62 = arith.mulf %56, %61 : vector<256x32xf32>
    %63 = vector.shape_cast %62 : vector<256x32xf32> to vector<1x16x16x32xf32>
    %64 = arith.truncf %63 : vector<1x16x16x32xf32> to vector<1x16x16x32xbf16>
    %cst_27 = arith.constant 0.000000e+00 : f32
    %65 = vector.broadcast %cst_27 : f32 to vector<256x32xf32>
    %66 = vector.extract_strided_slice %64 {offsets = [0, 0, 0, 0], sizes = [1, 15, 16, 32], strides = [1, 1, 1, 1]} : vector<1x16x16x32xbf16> to vector<1x15x16x32xbf16>
    %67 = tpu.concatenate %0, %66 in 1 : vector<1x1x16x32xbf16>, vector<1x15x16x32xbf16> -> vector<1x16x16x32xbf16>
    %68 = vector.extract_strided_slice %67 {offsets = [0, 0, 0, 0], sizes = [1, 16, 15, 32], strides = [1, 1, 1, 1]} : vector<1x16x16x32xbf16> to vector<1x16x15x32xbf16>
    %69 = tpu.concatenate %1, %68 in 2 : vector<1x16x1x32xbf16>, vector<1x16x15x32xbf16> -> vector<1x16x16x32xbf16>
    %70 = vector.extract_strided_slice %67 {offsets = [0, 0, 1, 0], sizes = [1, 16, 15, 32], strides = [1, 1, 1, 1]} : vector<1x16x16x32xbf16> to vector<1x16x15x32xbf16>
    %71 = tpu.concatenate %70, %1 in 2 : vector<1x16x15x32xbf16>, vector<1x16x1x32xbf16> -> vector<1x16x16x32xbf16>
    %72 = tpu.concatenate %69, %67, %71 in 3 : vector<1x16x16x32xbf16>, vector<1x16x16x32xbf16>, vector<1x16x16x32xbf16> -> vector<1x16x16x96xbf16>
    %73 = vector.shape_cast %72 : vector<1x16x16x96xbf16> to vector<256x96xbf16>
    %c1_28 = arith.constant 1 : index
    %c0_29 = arith.constant 0 : index
    %c0_30 = arith.constant 0 : index
    %c0_31 = arith.constant 0 : index
    %74 = vector.load %arg4[%c1_28, %c0_29, %c0_30, %c0_31] : memref<2x3x96x32xbf16, #tpu.memory_space<vmem>>, vector<1x1x96x32xbf16>
    %75 = vector.shape_cast %74 : vector<1x1x96x32xbf16> to vector<96x32xbf16>
    %cst_32 = arith.constant dense<0.000000e+00> : vector<256x32xf32>
    %76 = tpu.matmul %73, %75, %cst_32 {dimension_numbers = #tpu.dot_dimension_numbers<[1], [0], [0], [1], [0, 0, 1, 1], [], []>} : vector<256x96xbf16>, vector<96x32xbf16>, vector<256x32xf32> -> vector<256x32xf32>
    %77 = arith.addf %65, %76 : vector<256x32xf32>
    %78 = vector.extract_strided_slice %64 {offsets = [0, 0, 0, 0], sizes = [1, 16, 15, 32], strides = [1, 1, 1, 1]} : vector<1x16x16x32xbf16> to vector<1x16x15x32xbf16>
    %79 = tpu.concatenate %1, %78 in 2 : vector<1x16x1x32xbf16>, vector<1x16x15x32xbf16> -> vector<1x16x16x32xbf16>
    %80 = vector.extract_strided_slice %64 {offsets = [0, 0, 1, 0], sizes = [1, 16, 15, 32], strides = [1, 1, 1, 1]} : vector<1x16x16x32xbf16> to vector<1x16x15x32xbf16>
    %81 = tpu.concatenate %80, %1 in 2 : vector<1x16x15x32xbf16>, vector<1x16x1x32xbf16> -> vector<1x16x16x32xbf16>
    %82 = tpu.concatenate %79, %64, %81 in 3 : vector<1x16x16x32xbf16>, vector<1x16x16x32xbf16>, vector<1x16x16x32xbf16> -> vector<1x16x16x96xbf16>
    %83 = vector.shape_cast %82 : vector<1x16x16x96xbf16> to vector<256x96xbf16>
    %c1_33 = arith.constant 1 : index
    %c1_34 = arith.constant 1 : index
    %c0_35 = arith.constant 0 : index
    %c0_36 = arith.constant 0 : index
    %84 = vector.load %arg4[%c1_33, %c1_34, %c0_35, %c0_36] : memref<2x3x96x32xbf16, #tpu.memory_space<vmem>>, vector<1x1x96x32xbf16>
    %85 = vector.shape_cast %84 : vector<1x1x96x32xbf16> to vector<96x32xbf16>
    %cst_37 = arith.constant dense<0.000000e+00> : vector<256x32xf32>
    %86 = tpu.matmul %83, %85, %cst_37 {dimension_numbers = #tpu.dot_dimension_numbers<[1], [0], [0], [1], [0, 0, 1, 1], [], []>} : vector<256x96xbf16>, vector<96x32xbf16>, vector<256x32xf32> -> vector<256x32xf32>
    %87 = arith.addf %77, %86 : vector<256x32xf32>
    %88 = vector.extract_strided_slice %64 {offsets = [0, 1, 0, 0], sizes = [1, 15, 16, 32], strides = [1, 1, 1, 1]} : vector<1x16x16x32xbf16> to vector<1x15x16x32xbf16>
    %89 = tpu.concatenate %88, %0 in 1 : vector<1x15x16x32xbf16>, vector<1x1x16x32xbf16> -> vector<1x16x16x32xbf16>
    %90 = vector.extract_strided_slice %89 {offsets = [0, 0, 0, 0], sizes = [1, 16, 15, 32], strides = [1, 1, 1, 1]} : vector<1x16x16x32xbf16> to vector<1x16x15x32xbf16>
    %91 = tpu.concatenate %1, %90 in 2 : vector<1x16x1x32xbf16>, vector<1x16x15x32xbf16> -> vector<1x16x16x32xbf16>
    %92 = vector.extract_strided_slice %89 {offsets = [0, 0, 1, 0], sizes = [1, 16, 15, 32], strides = [1, 1, 1, 1]} : vector<1x16x16x32xbf16> to vector<1x16x15x32xbf16>
    %93 = tpu.concatenate %92, %1 in 2 : vector<1x16x15x32xbf16>, vector<1x16x1x32xbf16> -> vector<1x16x16x32xbf16>
    %94 = tpu.concatenate %91, %89, %93 in 3 : vector<1x16x16x32xbf16>, vector<1x16x16x32xbf16>, vector<1x16x16x32xbf16> -> vector<1x16x16x96xbf16>
    %95 = vector.shape_cast %94 : vector<1x16x16x96xbf16> to vector<256x96xbf16>
    %c1_38 = arith.constant 1 : index
    %c2_39 = arith.constant 2 : index
    %c0_40 = arith.constant 0 : index
    %c0_41 = arith.constant 0 : index
    %96 = vector.load %arg4[%c1_38, %c2_39, %c0_40, %c0_41] : memref<2x3x96x32xbf16, #tpu.memory_space<vmem>>, vector<1x1x96x32xbf16>
    %97 = vector.shape_cast %96 : vector<1x1x96x32xbf16> to vector<96x32xbf16>
    %cst_42 = arith.constant dense<0.000000e+00> : vector<256x32xf32>
    %98 = tpu.matmul %95, %97, %cst_42 {dimension_numbers = #tpu.dot_dimension_numbers<[1], [0], [0], [1], [0, 0, 1, 1], [], []>} : vector<256x96xbf16>, vector<96x32xbf16>, vector<256x32xf32> -> vector<256x32xf32>
    %99 = arith.addf %87, %98 : vector<256x32xf32>
    %100 = vector.extract_strided_slice %4 {offsets = [1, 0], sizes = [1, 32], strides = [1, 1]} : vector<2x32xf32> to vector<1x32xf32>
    %101 = vector.shape_cast %100 : vector<1x32xf32> to vector<32xf32>
    %102 = vector.shape_cast %101 : vector<32xf32> to vector<1x32xf32>
    %103 = vector.broadcast %102 : vector<1x32xf32> to vector<256x32xf32>
    %104 = arith.addf %99, %103 : vector<256x32xf32>
    %105 = vector.extract_strided_slice %2 {offsets = [1, 0], sizes = [1, 32], strides = [1, 1]} : vector<2x32xf32> to vector<1x32xf32>
    %106 = vector.shape_cast %105 : vector<1x32xf32> to vector<32xf32>
    %107 = vector.shape_cast %106 : vector<32xf32> to vector<1x32xf32>
    %108 = vector.broadcast %107 : vector<1x32xf32> to vector<256x32xf32>
    %109 = arith.mulf %104, %108 : vector<256x32xf32>
    %110 = vector.extract_strided_slice %3 {offsets = [1, 0], sizes = [1, 32], strides = [1, 1]} : vector<2x32xf32> to vector<1x32xf32>
    %111 = vector.shape_cast %110 : vector<1x32xf32> to vector<32xf32>
    %112 = vector.shape_cast %111 : vector<32xf32> to vector<1x32xf32>
    %113 = vector.broadcast %112 : vector<1x32xf32> to vector<256x32xf32>
    %114 = arith.addf %109, %113 : vector<256x32xf32>
    %115 = arith.negf %114 : vector<256x32xf32>
    %116 = math.exp %115 : vector<256x32xf32>
    %cst_43 = arith.constant 1.000000e+00 : f32
    %117 = vector.broadcast %cst_43 : f32 to vector<256x32xf32>
    %118 = arith.addf %117, %116 : vector<256x32xf32>
    %119 = arith.divf %117, %118 : vector<256x32xf32>
    %120 = arith.mulf %114, %119 : vector<256x32xf32>
    %121 = vector.shape_cast %120 : vector<256x32xf32> to vector<1x16x16x32xf32>
    %122 = arith.truncf %121 : vector<1x16x16x32xf32> to vector<1x16x16x32xbf16>
    %cst_44 = arith.constant 0.000000e+00 : f32
    %123 = vector.broadcast %cst_44 : f32 to vector<256x128xf32>
    %124 = vector.extract_strided_slice %122 {offsets = [0, 0, 0, 0], sizes = [1, 15, 16, 32], strides = [1, 1, 1, 1]} : vector<1x16x16x32xbf16> to vector<1x15x16x32xbf16>
    %125 = tpu.concatenate %0, %124 in 1 : vector<1x1x16x32xbf16>, vector<1x15x16x32xbf16> -> vector<1x16x16x32xbf16>
    %126 = vector.extract_strided_slice %125 {offsets = [0, 0, 0, 0], sizes = [1, 16, 15, 32], strides = [1, 1, 1, 1]} : vector<1x16x16x32xbf16> to vector<1x16x15x32xbf16>
    %127 = tpu.concatenate %1, %126 in 2 : vector<1x16x1x32xbf16>, vector<1x16x15x32xbf16> -> vector<1x16x16x32xbf16>
    %128 = vector.extract_strided_slice %125 {offsets = [0, 0, 1, 0], sizes = [1, 16, 15, 32], strides = [1, 1, 1, 1]} : vector<1x16x16x32xbf16> to vector<1x16x15x32xbf16>
    %129 = tpu.concatenate %128, %1 in 2 : vector<1x16x15x32xbf16>, vector<1x16x1x32xbf16> -> vector<1x16x16x32xbf16>
    %130 = tpu.concatenate %127, %125, %129 in 3 : vector<1x16x16x32xbf16>, vector<1x16x16x32xbf16>, vector<1x16x16x32xbf16> -> vector<1x16x16x96xbf16>
    %131 = vector.shape_cast %130 : vector<1x16x16x96xbf16> to vector<256x96xbf16>
    %c0_45 = arith.constant 0 : index
    %c0_46 = arith.constant 0 : index
    %c0_47 = arith.constant 0 : index
    %132 = vector.load %arg6[%c0_45, %c0_46, %c0_47] : memref<3x96x128xbf16, #tpu.memory_space<vmem>>, vector<1x96x128xbf16>
    %133 = vector.shape_cast %132 : vector<1x96x128xbf16> to vector<96x128xbf16>
    %cst_48 = arith.constant dense<0.000000e+00> : vector<256x128xf32>
    %134 = tpu.matmul %131, %133, %cst_48 {dimension_numbers = #tpu.dot_dimension_numbers<[1], [0], [0], [1], [0, 0, 1, 1], [], []>} : vector<256x96xbf16>, vector<96x128xbf16>, vector<256x128xf32> -> vector<256x128xf32>
    %135 = arith.addf %123, %134 : vector<256x128xf32>
    %136 = vector.extract_strided_slice %122 {offsets = [0, 0, 0, 0], sizes = [1, 16, 15, 32], strides = [1, 1, 1, 1]} : vector<1x16x16x32xbf16> to vector<1x16x15x32xbf16>
    %137 = tpu.concatenate %1, %136 in 2 : vector<1x16x1x32xbf16>, vector<1x16x15x32xbf16> -> vector<1x16x16x32xbf16>
    %138 = vector.extract_strided_slice %122 {offsets = [0, 0, 1, 0], sizes = [1, 16, 15, 32], strides = [1, 1, 1, 1]} : vector<1x16x16x32xbf16> to vector<1x16x15x32xbf16>
    %139 = tpu.concatenate %138, %1 in 2 : vector<1x16x15x32xbf16>, vector<1x16x1x32xbf16> -> vector<1x16x16x32xbf16>
    %140 = tpu.concatenate %137, %122, %139 in 3 : vector<1x16x16x32xbf16>, vector<1x16x16x32xbf16>, vector<1x16x16x32xbf16> -> vector<1x16x16x96xbf16>
    %141 = vector.shape_cast %140 : vector<1x16x16x96xbf16> to vector<256x96xbf16>
    %c1_49 = arith.constant 1 : index
    %c0_50 = arith.constant 0 : index
    %c0_51 = arith.constant 0 : index
    %142 = vector.load %arg6[%c1_49, %c0_50, %c0_51] : memref<3x96x128xbf16, #tpu.memory_space<vmem>>, vector<1x96x128xbf16>
    %143 = vector.shape_cast %142 : vector<1x96x128xbf16> to vector<96x128xbf16>
    %cst_52 = arith.constant dense<0.000000e+00> : vector<256x128xf32>
    %144 = tpu.matmul %141, %143, %cst_52 {dimension_numbers = #tpu.dot_dimension_numbers<[1], [0], [0], [1], [0, 0, 1, 1], [], []>} : vector<256x96xbf16>, vector<96x128xbf16>, vector<256x128xf32> -> vector<256x128xf32>
    %145 = arith.addf %135, %144 : vector<256x128xf32>
    %146 = vector.extract_strided_slice %122 {offsets = [0, 1, 0, 0], sizes = [1, 15, 16, 32], strides = [1, 1, 1, 1]} : vector<1x16x16x32xbf16> to vector<1x15x16x32xbf16>
    %147 = tpu.concatenate %146, %0 in 1 : vector<1x15x16x32xbf16>, vector<1x1x16x32xbf16> -> vector<1x16x16x32xbf16>
    %148 = vector.extract_strided_slice %147 {offsets = [0, 0, 0, 0], sizes = [1, 16, 15, 32], strides = [1, 1, 1, 1]} : vector<1x16x16x32xbf16> to vector<1x16x15x32xbf16>
    %149 = tpu.concatenate %1, %148 in 2 : vector<1x16x1x32xbf16>, vector<1x16x15x32xbf16> -> vector<1x16x16x32xbf16>
    %150 = vector.extract_strided_slice %147 {offsets = [0, 0, 1, 0], sizes = [1, 16, 15, 32], strides = [1, 1, 1, 1]} : vector<1x16x16x32xbf16> to vector<1x16x15x32xbf16>
    %151 = tpu.concatenate %150, %1 in 2 : vector<1x16x15x32xbf16>, vector<1x16x1x32xbf16> -> vector<1x16x16x32xbf16>
    %152 = tpu.concatenate %149, %147, %151 in 3 : vector<1x16x16x32xbf16>, vector<1x16x16x32xbf16>, vector<1x16x16x32xbf16> -> vector<1x16x16x96xbf16>
    %153 = vector.shape_cast %152 : vector<1x16x16x96xbf16> to vector<256x96xbf16>
    %c2_53 = arith.constant 2 : index
    %c0_54 = arith.constant 0 : index
    %c0_55 = arith.constant 0 : index
    %154 = vector.load %arg6[%c2_53, %c0_54, %c0_55] : memref<3x96x128xbf16, #tpu.memory_space<vmem>>, vector<1x96x128xbf16>
    %155 = vector.shape_cast %154 : vector<1x96x128xbf16> to vector<96x128xbf16>
    %cst_56 = arith.constant dense<0.000000e+00> : vector<256x128xf32>
    %156 = tpu.matmul %153, %155, %cst_56 {dimension_numbers = #tpu.dot_dimension_numbers<[1], [0], [0], [1], [0, 0, 1, 1], [], []>} : vector<256x96xbf16>, vector<96x128xbf16>, vector<256x128xf32> -> vector<256x128xf32>
    %157 = arith.addf %145, %156 : vector<256x128xf32>
    %158 = vector.broadcast %5 : vector<1x128xf32> to vector<256x128xf32>
    %159 = arith.addf %157, %158 : vector<256x128xf32>
    %160 = arith.negf %159 : vector<256x128xf32>
    %161 = math.exp %160 : vector<256x128xf32>
    %cst_57 = arith.constant 1.000000e+00 : f32
    %162 = vector.broadcast %cst_57 : f32 to vector<256x128xf32>
    %163 = arith.addf %162, %161 : vector<256x128xf32>
    %164 = arith.divf %162, %163 : vector<256x128xf32>
    %165 = vector.shape_cast %164 : vector<256x128xf32> to vector<1x16x16x128xf32>
    %166 = arith.truncf %165 : vector<1x16x16x128xf32> to vector<1x16x16x128xbf16>
    %c0_58 = arith.constant 0 : index
    %c0_59 = arith.constant 0 : index
    %c0_60 = arith.constant 0 : index
    %c0_61 = arith.constant 0 : index
    %167 = vector.load %arg8[%c0_58, %c0_59, %c0_60, %c0_61] : memref<1x16x16x128xbf16, #tpu.memory_space<vmem>>, vector<1x16x16x128xbf16>
    tpu.vector_store %arg8[%c0_58, %c0_59, %c0_60, %c0_61], %166 {strides = array<i32>} : memref<1x16x16x128xbf16, #tpu.memory_space<vmem>>, vector<1x16x16x128xbf16>,
    return
  }
  func.func @transform_0(%arg0: i32) -> (i32, i32, i32, i32) {
    %c0_i32 = arith.constant 0 : i32
    %c0_i32_0 = arith.constant 0 : i32
    %c0_i32_1 = arith.constant 0 : i32
    %c0_i32_2 = arith.constant 0 : i32
    return %arg0, %c0_i32, %c0_i32_0, %c0_i32_1 : i32, i32, i32, i32
  }
  func.func @transform_1(%arg0: i32) -> (i32, i32) {
    %c0_i32 = arith.constant 0 : i32
    %c0_i32_0 = arith.constant 0 : i32
    %c0_i32_1 = arith.constant 0 : i32
    return %c0_i32, %c0_i32_0 : i32, i32
  }
  func.func @transform_2(%arg0: i32) -> (i32, i32) {
    %c0_i32 = arith.constant 0 : i32
    %c0_i32_0 = arith.constant 0 : i32
    %c0_i32_1 = arith.constant 0 : i32
    return %c0_i32, %c0_i32_0 : i32, i32
  }
  func.func @transform_3(%arg0: i32) -> (i32, i32, i32, i32) {
    %c0_i32 = arith.constant 0 : i32
    %c0_i32_0 = arith.constant 0 : i32
    %c0_i32_1 = arith.constant 0 : i32
    %c0_i32_2 = arith.constant 0 : i32
    %c0_i32_3 = arith.constant 0 : i32
    return %c0_i32, %c0_i32_0, %c0_i32_1, %c0_i32_2 : i32, i32, i32, i32
  }
  func.func @transform_4(%arg0: i32) -> (i32, i32) {
    %c0_i32 = arith.constant 0 : i32
    %c0_i32_0 = arith.constant 0 : i32
    %c0_i32_1 = arith.constant 0 : i32
    return %c0_i32, %c0_i32_0 : i32, i32
  }
  func.func @transform_5(%arg0: i32) -> (i32, i32, i32) {
    %c0_i32 = arith.constant 0 : i32
    %c0_i32_0 = arith.constant 0 : i32
    %c0_i32_1 = arith.constant 0 : i32
    %c0_i32_2 = arith.constant 0 : i32
    return %c0_i32, %c0_i32_0, %c0_i32_1 : i32, i32, i32
  }
  func.func @transform_6(%arg0: i32) -> (i32, i32) {
    %c0_i32 = arith.constant 0 : i32
    %c0_i32_0 = arith.constant 0 : i32
    %c0_i32_1 = arith.constant 0 : i32
    return %c0_i32, %c0_i32_0 : i32, i32
  }
  func.func @transform_7(%arg0: i32) -> (i32, i32, i32, i32) {
    %c0_i32 = arith.constant 0 : i32
    %c0_i32_0 = arith.constant 0 : i32
    %c0_i32_1 = arith.constant 0 : i32
    %c0_i32_2 = arith.constant 0 : i32
    return %arg0, %c0_i32, %c0_i32_0, %c0_i32_1 : i32, i32, i32, i32
  }
}

</mosaic_0001>

<bundles_post_ra>
// kernel: tpu_custom_call.1
= control target key start
LH: loop header
LB: loop body
LE: loop exit
PB: predicated region body
PF: predicated region fallthrough
CT: control target
= control target key end

     0   :  { %12 = vsyncpa [#allocation3], 0  ;;  %s9218_s0 = inlined_call_operand.vmem [shape: bf16[2,16,16,32], index: 0, kind: input, shape index: {}]   ;;  %s9219_s1 = inlined_call_operand.vmem [shape: f32[2,32], index: 1, kind: input, shape index: {}]   ;;  %s9220_s2 = inlined_call_operand.vmem [shape: f32[2,32], index: 2, kind: input, shape index: {}]   ;;  %s9221_s3 = inlined_call_operand.vmem [shape: bf16[2,3,96,32], index: 3, kind: input, shape index: {}]   ;;  %s9222_s4 = inlined_call_operand.vmem [shape: f32[2,32], index: 4, kind: input, shape index: {}]   ;;  %s9223_s5 = inlined_call_operand.hbm [shape: bf16[3,96,128], index: 5, kind: input, shape index: {}]   ;;  %s9224_s6 = inlined_call_operand.vmem [shape: f32[1,128], index: 6, kind: input, shape index: {}]   ;;  %s9225_s7 = inlined_call_operand.hbm [shape: bf16[2,16,16,128], index: 7, kind: output, shape index: {}]  }
   0x1   :  { %13 = vsyncpa [#allocation4], 0 }
   0x2   :  { %15 = vsyncpa [#allocation4 + $0x1], 0  ;;  %s6667_s24 = smov 0   ;;  %s6669_s25 = smov 0  }
   0x3   :  { %s6671_s26 = smov 0   ;;  %s6673_s27 = smov 0  }
   0x4 LB: > { %s6688_s28 = sadd.s32 4294967295, %s6617_s27   ;;  %s4861_s29 = sadd.s32 4294967294, %s6617_s27   ;;  %s6617_s27 = sphi %s6673_s27, %s9268_s27   ;;  %s6613_s26 = sphi %s6671_s26, %s9267_s26   ;;  %s6609_s25 = sphi %s6669_s25, %s9266_s25   ;;  %s6605_s24 = sphi %s6667_s24, %s9265_s24  }
   0x5   : > { %s6692_s30 = sadd.s32 1, %s6617_s27   ;;  %s180_s8 = sadd.s32 1, %s6613_s26 }
   0x6   : > { %s177_s9 = ssub.s32 %s6617_s27, %s6692_s30  ;;  %p190_p0 = scmp.ne.s32.totalorder %s6613_s26, %s6609_s25 }
   0x7   : > { %p178_p1 = scmp.eq.s32.totalorder %s177_s9, 0  ;;  %p191_p2 = scmp.eq.s32.totalorder %s6688_s28, 1 }
   0x8   : > { %p196_p3 = scmp.ne.s32.totalorder %s6609_s25, %s6605_s24  ;;  %p197_p4 = scmp.eq.s32.totalorder %s4861_s29, 1 }
   0x9   : > { %s6703_s10 = scalar_select %p178_p1, %s6613_s26, %s180_s8  }
   0xa   : > { %p6705_p5 = por %p191_p2, %p190_p0  ;;  %p6709_p6 = por %p197_p4, %p196_p3 }
   0xb   : > { %p4862_p7 = scmp.ge.s32.totalorder %s6617_s27, 1  ;;  %p204_p8 = scmp.lt.s32.totalorder %s6617_s27, 3 }
   0xc   : > { %s9237_s12 = scalar_select %p6709_p6, 1, 0 }
   0xd   : > { %p6028_p9 = scmp.eq.s32.totalorder %s6688_s28, 0  ;;  %p6716_p10 = pnand %p4862_p7, %p204_p8 }
   0xe   : > { %s6619_s14 = smov [#allocation2]  }
   0xf   : > { %s228_s15 = sshll.u32 %s6619_s14, 4  ;;  %p6020_p11 = pneg %p6716_p10  ;;  %s229_s15 = int_to_ptr.vmem [resolvable:$true] %s228_s15 }
  0x10   : > { %s6538_s16 = scalar_lea.vmem %s229_s15, 2304  ;;  %p6546_p3 = scmp.lt.s32.totalorder %s229_s15, %s229_s15 }
  0x11   : > { %p6021_p12 = pnand %p6028_p9, %p6020_p11  ;;  %p6539_p0 = scmp.ne.s32.totalorder %s229_s15, %s6538_s16 }
  0x12   : > { %p6547_p4 = scmp.lt.s32.totalorder %s6538_s16, %s6538_s16 }
  0x13   : > { %p6529_p13 = pneg %p6021_p12 }
  0x14   : > { %p6548_p6 = por %p6547_p4, %p6546_p3 }
  0x15   : > { %p6541_p1 = pnand %p6539_p0, %p6529_p13 }
  0x17   : > { %p6542_p2 = pneg %p6541_p1 }
  0x19   : > { %p6549_p7 = pnand %p6548_p6, %p6542_p2 }
  0x1b   : > { %6552 = shalt.err (!%p6549_p7)
}
  0x1c   : > { %s6620_s17 = smov 64   ;;  %s6621_s18 = smov 4  }
  0x1d   : > { %6023 = dma.hbm_to_vmem [thread:$0]  (!%p6021_p12), %s9223_s5, 2304, %s229_s15, [#allocation3], %s6620_s17, %s6620_s17, %s6621_s18  }
  0x1e   : > { %255 = sbr.rel (%p6716_p10) target bundleno = 1439 (0x59f), region = 48 }
  0x23   : > { %6596 = dma.done.wait (%p6028_p9), [#allocation3], 2304  }
  0x24   : > { %6598 = vsyncadd (%p6028_p9), [#allocation3], 4294964992  ;;  %p287_p8 = scmp.lt.s32.totalorder %s6688_s28, 1  ;;  %vm600_vm0 = vsmask.f32 7424  ;;  %s6622_s9 = smov 32  }
  0x25   : > { %vm599_vm1 = vcmask 1047552   ;;  %v9239_v15 = vmov 0  ;;  %s6623_s13 = smov 64   ;;  %v6624_v43 = vmov 0   ;;  %vm532_vm3 = vcmask 1040384   ;;  %s284_s15 = sand.u32 1, %s6609_s25  }
  0x26   : > { %s288_s21 = scalar_select %p287_p8, %s6688_s28, 1  ;;  %vm6771_vm2 = vmand %vm599_vm1, %vm600_vm0  ;;  %v6818_v44 = vcombine.low %v6624_v43, %v6624_v43  ;;  %v6829_v52 = vrot.slane %v6624_v43, 1  ;;  %vm533_vm4 = vsmask.f32 256  ;;  %vm699_vm6 = vcmask 261120  }
  0x27   : > { %v9240_v15 = vsel %vm6771_vm2, 4294967295, %v9239_v15  ;;  %vm7017_vm5 = vmand %vm532_vm3, %vm533_vm4  ;;  %vm748_vm7 = vcmask 523264   ;;  %vm870_vm8 = vcmask 785408   ;;  %s9105_s16 = sshll.u32 %s284_s15, 7  ;;  %s5312_s18 = sshll.u32 %s6688_s28, 11 }
  0x28   : > { %s5279_s22 = sshll.u32 %s288_s21, 7  ;;  %9241 = vst [vmem:[#allocation8_spill] sm:$0xff] %v9240_v15  ;;  %v1269_v57 = vshll.u32 %v6818_v44, 16  ;;  %v6122_v15 = vld [vmem:[#allocation2 + $0x58] sm:$0xff]   ;;  %s9121_s17 = scalar_lea.vmem [#allocation5], %s9105_s16 }
  0x29   : > { %s6738_s8 = scalar_lea.vmem %s9218_s0, %s5279_s22  ;;  %s4787_s19 = sshll.u32 %s9121_s17, 4  ;;  %s9171_s19 = int_to_ptr.vmem [resolvable:$true] %s4787_s19 }
  0x2a   : > { %v6070_v0 = vld [vmem:[%s6738_s8 + $0x40] sm:$0xff]   ;;  %v6746_v2 = vld [vmem:[%s6738_s8 + $0x48] sm:$0xff]   ;;  %v6758_v8 = vld [vmem:[%s6738_s8 + $0x50] sm:$0xff]   ;;  %s9168_s22 = scalar_lea.hbm %s9225_s7, %s5312_s18  ;;  %s9176_s28 = scalar_lea.sflag [#allocation4], %s284_s15 }
  0x2b   : > { %v6742_v1 = vld [vmem:[%s6738_s8] sm:$0xff]   ;;  %637 = vrot.lane.b32.xlu0 %v6070_v0, %s6622_s9  ;;  %v6751_v3 = vld [vmem:[%s6738_s8 + $0x8] sm:$0xff]   ;;  %v471_v4 = vshll.u32 %v6070_v0, 16  ;;  %v468_v5 = vshrl.u32 %v6070_v0, 16  ;;  %v475_v6 = vshrl.u32 %v6746_v2, 16  ;;  %v478_v7 = vshll.u32 %v6746_v2, 16 }
  0x2c   : > { %621 = vrot.lane.b32.xlu1 %v6742_v1, %s6622_s9  ;;  %v6761_v9 = vld [vmem:[%s6738_s8 + $0x58] sm:$0xff]   ;;  %v422_v12 = vshll.u32 %v6751_v3, 16  ;;  %v412_v13 = vshrl.u32 %v6742_v1, 16  ;;  %v415_v14 = vshll.u32 %v6742_v1, 16  ;;  %v419_v17 = vshrl.u32 %v6751_v3, 16  ;;  %v6790_v26 = vld [vmem:[%s6738_s8 + $0x10] sm:$0xff]  }
  0x2d   : > { %v569_v10 = vrot.slane %v471_v4, 1  ;;  %v571_v11 = vrot.slane %v478_v7, 1  ;;  %v485_v18 = vshll.u32 %v6758_v8, 16  ;;  %v6780_v22 = vld [vmem:[%s6738_s8 + $0x18] sm:$0xff]   ;;  %v482_v23 = vshrl.u32 %v6758_v8, 16  ;;  %v6801_v34 = vld [vmem:[%s6738_s8 + $0x60] sm:$0xff]  }
  0x2e   : > { %v555_v20 = vrot.slane %v422_v12, 1  ;;  %v553_v21 = vrot.slane %v415_v14, 1  ;;  %v492_v28 = vshll.u32 %v6761_v9, 16  ;;  %v470_v29 = vrot.slane %v468_v5, 7  ;;  %v6832_v56 = vld [vmem:[%s6738_s8 + $0x68] sm:$0xff]   ;;  %s6553_s23 = scalar_lea.vmem %s9171_s19, 2048 }
  0x2f   : > { %639 = vrot.lane.b32.xlu0 %v6746_v2, %s6622_s9  ;;  %v570_v16 = vor.u32 %v569_v10, %v468_v5  ;;  %v572_v19 = vor.u32 %v571_v11, %v475_v6  ;;  %v573_v27 = vrot.slane %v485_v18, 1  ;;  %v436_v32 = vshll.u32 %v6780_v22, 16  ;;  %v6846_v0 = vld [vmem:[%s6738_s8 + $0x28] sm:$0xff]   ;;  %v6853_v5 = vld [vmem:[%s6738_s8 + $0x20] sm:$0xff]   ;;  %v6086_v10 = vld [vmem:[%s9221_s3 + $0x58] sm:$0xff]   ;;  %p6554_p6 = scmp.ne.s32.totalorder %s9171_s19, %s6553_s23  ;;  %s6625_s29 = smov [#allocation5]  }
  0x30   : > { %623 = vrot.lane.b32.xlu1 %v6751_v3, %s6622_s9  ;;  %v554_v25 = vor.u32 %v553_v21, %v412_v13  ;;  %v556_v31 = vor.u32 %v555_v20, %v419_v17  ;;  %v489_v33 = vshrl.u32 %v6761_v9, 16  ;;  %v575_v37 = vrot.slane %v492_v28, 1  ;;  %6002 = vmatprep.subr.bf16.mxu1 %v6086_v10  ;;  %v6087_v20 = vld [vmem:[%s9221_s3 + $0x50] sm:$0xff]  }
  0x31   : > { %v612_v24 = vsel %vm6771_vm2, %v572_v19, 0  ;;  %v611_v30 = vsel %vm6771_vm2, %v570_v16, 0  ;;  %v574_v36 = vor.u32 %v573_v27, %v482_v23  ;;  %v429_v38 = vshll.u32 %v6790_v26, 16  ;;  %v6867_v19 = vld [vmem:[%s6738_s8 + $0x70] sm:$0xff]   ;;  %6008 = vmatpush3.bf16.msra.mxu1 %v6086_v10  ;;  %5606 = vmatprep.subr.bf16.mxu0 %v6086_v10  ;;  %p6555_p9 = pnand %p6554_p6, %p6705_p5 }
  0x32   : > { %v603_v35 = vsel %vm6771_vm2, %v554_v25, 0  ;;  %v604_v39 = vsel %vm6771_vm2, %v556_v31, 0  ;;  %v6811_v40 = vor.u32 %v471_v4, %v470_v29  ;;  %v433_v41 = vshrl.u32 %v6780_v22, 16  ;;  %6003 = vmatprep.subr.bf16.mxu1 %v6087_v20  ;;  %v6088_v29 = vld [vmem:[%s9221_s3 + $0x48] sm:$0xff]   ;;  %5607 = vmatpush3.bf16.msra.mxu0 %v6086_v10 }
  0x33   : > { %641 = vrot.lane.b32.xlu0 %v6758_v8, %s6622_s9  ;;  %v559_v42 = vrot.slane %v436_v32, 1  ;;  %v477_v45 = vrot.slane %v475_v6, 7  ;;  %v414_v46 = vrot.slane %v412_v13, 7  ;;  %v499_v47 = vshll.u32 %v6801_v34, 16  ;;  %5608 = vmatprep.subr.bf16.mxu0 %v6087_v20  ;;  %p6556_p10 = pneg %p6555_p9 }
  0x34   : > { %643 = vrot.lane.b32.xlu1 %v6761_v9, %s6622_s9  ;;  %v613_v48 = vsel %vm6771_vm2, %v574_v36, 0  ;;  %v576_v49 = vor.u32 %v575_v37, %v489_v33  ;;  %v426_v50 = vshrl.u32 %v6790_v26, 16  ;;  %v557_v51 = vrot.slane %v429_v38, 1  ;;  %v6898_v37 = vld [vmem:[%s6738_s8 + $0x78] sm:$0xff]  }
  0x35   : > { %v421_v53 = vrot.slane %v419_v17, 7  ;;  %v484_v54 = vrot.slane %v482_v23, 7  ;;  %v560_v55 = vor.u32 %v559_v42, %v433_v41  ;;  %v491_v58 = vrot.slane %v489_v33, 7  ;;  %6009 = vmatpush3.bf16.msra.mxu1 %v6087_v20 }
  0x36   : > { %v496_v59 = vshrl.u32 %v6801_v34, 16  ;;  %v577_v60 = vrot.slane %v499_v47, 1  ;;  %v6839_v61 = vor.u32 %v415_v14, %v414_v46  ;;  %v614_v62 = vsel %vm6771_vm2, %v576_v49, 0  ;;  %6004 = vmatprep.subr.bf16.mxu1 %v6088_v29  ;;  %5609 = vmatpush3.bf16.msra.mxu0 %v6087_v20 }
  0x37   : > { %687 = vrot.lane.b32.xlu0 %v612_v24, %s6623_s13  ;;  %v558_v63 = vor.u32 %v557_v51, %v426_v50  ;;  %v6850_v1 = vor.u32 %v478_v7, %v477_v45  ;;  %v435_v4 = vrot.slane %v433_v41, 7  ;;  %v503_v6 = vshrl.u32 %v6832_v56, 16  ;;  %5610 = vmatprep.subr.bf16.mxu0 %v6088_v29 }
  0x38   : > { %685 = vrot.lane.b32.xlu1 %v611_v30, %s6623_s13  ;;  %v606_v11 = vsel %vm6771_vm2, %v560_v55, 0  ;;  %v428_v13 = vrot.slane %v426_v50, 7  ;;  %v498_v14 = vrot.slane %v496_v59, 7  ;;  %v506_v16 = vshll.u32 %v6832_v56, 16 }
  0x39   : > { %v6863_v2 = vor.u32 %v577_v60, %v496_v59  ;;  %v505_v7 = vrot.slane %v503_v6, 7  ;;  %v447_v17 = vshrl.u32 %v6846_v0, 16  ;;  %v605_v21 = vsel %vm6771_vm2, %v558_v63, 0  ;;  %6010 = vmatpush3.bf16.msra.mxu1 %v6088_v29 }
  0x3a   : > { %v450_v23 = vshll.u32 %v6846_v0, 16  ;;  %v440_v24 = vshrl.u32 %v6853_v5, 16  ;;  %v6880_v25 = vor.u32 %v422_v12, %v421_v53  ;;  %v443_v27 = vshll.u32 %v6853_v5, 16  ;;  %5611 = vmatpush3.bf16.msra.mxu0 %v6088_v29 }
  0x3b   : > { %669 = vrot.lane.b32.xlu0 %v603_v35, %s6623_s13  ;;  %v6888_v30 = vor.u32 %v485_v18, %v484_v54  ;;  %v510_v33 = vshrl.u32 %v6867_v19, 16  ;;  %v6893_v3 = vor.u32 %v492_v28, %v491_v58  ;;  %v579_v12 = vrot.slane %v506_v16, 1  ;;  %v6909_v28 = vld [vmem:[%s6738_s8 + $0x30] sm:$0xff]  }
  0x3c   : > { %671 = vrot.lane.b32.xlu1 %v604_v39, %s6623_s13  ;;  %v442_v31 = vrot.slane %v440_v24, 7  ;;  %v449_v35 = vrot.slane %v447_v17, 7  ;;  %v513_v36 = vshll.u32 %v6867_v19, 16  ;;  %v6902_v8 = vor.u32 %v429_v38, %v428_v13  ;;  %v6912_v39 = vld [vmem:[%s6738_s8 + $0x38] sm:$0xff]   ;;  %s6557_s8 = sshll.u32 %s6625_s29, 4  ;;  %s6558_s8 = int_to_ptr.vmem [resolvable:$false] %s6557_s8 }
  0x3d   : > { %v615_v9 = vsel %vm6771_vm2, %v6863_v2, 0  ;;  %v512_v18 = vrot.slane %v510_v33, 7  ;;  %v563_v41 = vrot.slane %v450_v23, 1  ;;  %v6919_v38 = vor.u32 %v436_v32, %v435_v4  ;;  %p6560_p11 = scmp.lt.s32.totalorder %s9171_s19, %s6558_s8 }
  0x3e   : > { %v6921_v42 = vor.u32 %v506_v16, %v505_v7  ;;  %v6925_v45 = vor.u32 %v499_v47, %v498_v14  ;;  %v561_v46 = vrot.slane %v443_v27, 1  ;;  %v454_v49 = vshrl.u32 %v6909_v28, 16  ;;  %v6091_v14 = vld [vmem:[%s9221_s3 + $0x30] sm:$0xff]  }
  0x3f   : > { %689 = vrot.lane.b32.xlu0 %v613_v48, %s6623_s13  ;;  %v799_v48 = vshrl.u32 %v6898_v37, 16  ;;  %v6929_v50 = vor.u32 %v443_v27, %v442_v31  ;;  %v802_v32 = vshll.u32 %v6898_v37, 16  ;;  %v461_v51 = vshrl.u32 %v6912_v39, 16  ;;  %v6981_v27 = vld [vmem:[%s9221_s3 + $0x88] sm:$0xff]  }
  0x40   : > { %625 = vrot.lane.b32.xlu1 %v6790_v26, %s6622_s9  ;;  %v6089_v26 = vld [vmem:[%s9221_s3 + $0x40] sm:$0xff]   ;;  %v6935_v53 = vor.u32 %v450_v23, %v449_v35  ;;  %v580_v47 = vor.u32 %v579_v12, %v503_v6  ;;  %v456_v55 = vrot.slane %v454_v49, 7  ;;  %v6939_v58 = vor.u32 %v513_v36, %v512_v18  ;;  %v6975_v23 = vld [vmem:[%s9221_s3 + $0x28] sm:$0xff]  }
  0x41   : > { %v801_v54 = vrot.slane %v799_v48, 7  ;;  %v457_v59 = vshll.u32 %v6909_v28, 16  ;;  %6005 = vmatprep.subr.bf16.mxu1 %v6089_v26  ;;  %v564_v60 = vor.u32 %v563_v41, %v447_v17  ;;  %v463_v63 = vrot.slane %v461_v51, 7  ;;  %5612 = vmatprep.subr.bf16.mxu0 %v6089_v26 }
  0x42   : > { %v616_v4 = vsel %vm6771_vm2, %v580_v47, 0  ;;  %6011 = vmatpush3.bf16.msra.mxu1 %v6089_v26  ;;  %v1266_v6 = vshrl.u32 %v6818_v44, 16  ;;  %v1274_v16 = vrot.slane %v1269_v57, 1  ;;  %5613 = vmatpush3.bf16.msra.mxu0 %v6089_v26  ;;  %v807_v7 = vrot.slane %v802_v32, 1 }
  0x43   : > { %691 = vrot.lane.b32.xlu0 %v614_v62, %s6623_s13  ;;  %v562_v62 = vor.u32 %v561_v46, %v440_v24  ;;  %v6952_v10 = vor.u32 %v457_v59, %v456_v55  ;;  %v565_v24 = vrot.slane %v457_v59, 1  ;;  %v602_v12 = vsel %vm6771_vm2, %v6829_v52, 0  ;;  %v6094_v55 = vld [vmem:[%s9221_s3 + $0x20] sm:$0xff]  }
  0x44   : > { %627 = vrot.lane.b32.xlu1 %v6780_v22, %s6622_s9  ;;  %v581_v22 = vrot.slane %v513_v36, 1  ;;  %v545_v26 = vsel %vm7017_vm5, 0, %v6850_v1 }
  0x45   : > { %v607_v2 = vsel %vm6771_vm2, %v562_v62, 0  ;;  %v566_v31 = vor.u32 %v565_v24, %v454_v49 }
  0x46   : > { %v582_v13 = vor.u32 %v581_v22, %v510_v33  ;;  %v1275_v33 = vor.u32 %v1274_v16, %v1266_v6 }
  0x47   : > { %673 = vrot.lane.b32.xlu0 %v605_v21, %s6623_s13 }
  0x48   : > { %675 = vrot.lane.b32.xlu1 %v606_v11, %s6623_s13  ;;  %v6954_v11 = vor.u32 %v802_v32, %v801_v54  ;;  %v617_v21 = vsel %vm6771_vm2, %v582_v13, 0  ;;  %v537_v54 = vsel %vm7017_vm5, 0, %v6880_v25  ;;  %v546_v25 = vsel %vm7017_vm5, 0, %v6888_v30  ;;  %v6096_v30 = vld [vmem:[%s9221_s3 + $0x18] sm:$0xff]  }
  0x4b   : > { %645 = vrot.lane.b32.xlu0 %v6801_v34, %s6622_s9  ;;  %v6090_v34 = vld [vmem:[%s9221_s3 + $0x38] sm:$0xff]  }
  0x4c   : > { %647 = vrot.lane.b32.xlu1 %v6832_v56, %s6622_s9  ;;  %v464_v56 = vshll.u32 %v6912_v39, 16  ;;  %6006 = vmatprep.subr.bf16.mxu1 %v6090_v34 }
  0x4d   : > { %5614 = vmatprep.subr.bf16.mxu0 %v6090_v34  ;;  %6012 = vmatpush3.bf16.msra.mxu1 %v6090_v34 }
  0x4e   : > { %v567_v17 = vrot.slane %v464_v56, 1  ;;  %v6966_v20 = vor.u32 %v464_v56, %v463_v63  ;;  %6007 = vmatprep.subr.bf16.mxu1 %v6091_v14  ;;  %5615 = vmatpush3.bf16.msra.mxu0 %v6090_v34  ;;  %v6095_v63 = vld [vmem:[%s9221_s3 + $0x80] sm:$0xff]  }
  0x4f   : > { %693 = vrot.lane.b32.xlu0 %v615_v9, %s6623_s13  ;;  %5616 = vmatprep.subr.bf16.mxu0 %v6091_v14  ;;  %v1277_v9 = vsel %vm6771_vm2, %v1275_v33, 0 }
  0x50   : > { %629 = vrot.lane.b32.xlu1 %v6853_v5, %s6622_s9  ;;  %v608_v5 = vsel %vm6771_vm2, %v564_v60, 0  ;;  %v568_v29 = vor.u32 %v567_v17, %v461_v51  ;;  %v536_v51 = vsel %vm7017_vm5, 0, %v6839_v61 }
  0x51   : > { %6013 = vmatpush3.bf16.msra.mxu1 %v6091_v14 }
  0x52   : > { %5650 = vmatprep.subr.bf16.mxu1 %v6975_v23  ;;  %5617 = vmatpush3.bf16.msra.mxu0 %v6091_v14  ;;  %v610_v36 = vsel %vm6771_vm2, %v568_v29, 0  ;;  %v547_v14 = vsel %vm7017_vm5, 0, %v6893_v3 }
  0x53   : > { %695 = vrot.lane.b32.xlu0 %v616_v4, %s6623_s13  ;;  %5694 = vmatprep.subr.bf16.mxu0 %v6981_v27 }
  0x54   : > { %631 = vrot.lane.b32.xlu1 %v6846_v0, %s6622_s9  ;;  %v808_v0 = vor.u32 %v807_v7, %v799_v48  ;;  %v544_v48 = vsel %vm7017_vm5, 0, %v6811_v40  ;;  %v6098_v7 = vld [vmem:[%s9221_s3 + $0x10] sm:$0xff]  }
  0x56   : > { %v810_v35 = vsel %vm6771_vm2, %v808_v0, 0  ;;  %v539_v0 = vsel %vm7017_vm5, 0, %v6919_v38  ;;  %v6101_v38 = vld [vmem:[%s9221_s3 + $0x68] sm:$0xff]  }
  0x57   : > { %677 = vrot.lane.b32.xlu0 %v607_v2, %s6623_s13  ;;  %v6097_v2 = vld [vmem:[%s9221_s3 + $0x78] sm:$0xff]  }
  0x58   : > { %679 = vrot.lane.b32.xlu1 %v608_v5, %s6623_s13 }
  0x5b   : > { %649 = vrot.lane.b32.xlu0 %v6867_v19, %s6622_s9  ;;  %v609_v19 = vsel %vm6771_vm2, %v566_v31, 0 }
  0x5c   : > { %697 = vrot.lane.b32.xlu1 %v617_v21, %s6623_s13  ;;  %v538_v21 = vsel %vm7017_vm5, 0, %v6902_v8  ;;  %v6100_v8 = vld [vmem:[%s9221_s3 + $0x8] sm:$0xff]  }
  0x5f   : > { %811 = vrot.lane.b32.xlu0 %v6898_v37, %s6622_s9 }
  0x60   : > { %633 = vrot.lane.b32.xlu1 %v6909_v28, %s6622_s9 }
  0x63   : > { %814 = vrot.lane.b32.xlu0 %v810_v35, %s6623_s13 }
  0x64   : > { %635 = vrot.lane.b32.xlu1 %v6912_v39, %s6622_s9  ;;  %v9242_v39 = vmov 0 }
  0x65   : > { %v9243_v39 = vsel %vm7017_vm5, 4294967295, %v9242_v39 }
  0x66   : > { %9244 = vst [vmem:[#allocation9_spill] sm:$0xff] %v9243_v39 }
  0x67   : > { %681 = vrot.lane.b32.xlu0 %v609_v19, %s6623_s13  ;;  %v6102_v19 = vld [vmem:[%s9221_s3] sm:$0xff]  }
  0x68   : > { %683 = vrot.lane.b32.xlu1 %v610_v36, %s6623_s13 }
  0x6b   : > { %619 = vrot.lane.b32.xlu0 %v6624_v43, %s6622_s9 }
  0x6c   : > { %667 = vrot.lane.b32.xlu1 %v602_v12, %s6623_s13 }
  0x6f   : > { %1278 = vrot.lane.b32.xlu0 %v6818_v44, %s6622_s9 }
  0x70   : > { %1281 = vrot.lane.b32.xlu1 %v1277_v9, %s6623_s13 }
  0x9d   : > { %v638_v52 = vpop.permute.xlu0 %637 }
  0x9e   : > { %v622_v37 = vpop.permute.xlu1 %621  ;;  %v729_v32 = vsel %vm699_vm6, %v544_v48, %v638_v52 }
  0x9f   : > { %v705_v61 = vsel %vm699_vm6, %v536_v51, %v622_v37  ;;  %v548_v37 = vsel %vm7017_vm5, 0, %v6925_v45  ;;  %v541_v51 = vsel %vm7017_vm5, 0, %v6935_v53 }
  0xa1   : > { %v640_v18 = vpop.permute.xlu0 %639 }
  0xa2   : > { %v624_v28 = vpop.permute.xlu1 %623  ;;  %v732_v49 = vsel %vm699_vm6, %v545_v26, %v640_v18  ;;  %v6103_v18 = vld [vmem:[%s9221_s3 + $0x60] sm:$0xff]   ;;  %v549_v26 = vsel %vm7017_vm5, 0, %v6921_v42 }
  0xa3   : > { %v708_v34 = vsel %vm699_vm6, %v537_v54, %v624_v28 }
  0xa5   : > { %v642_v41 = vpop.permute.xlu0 %641 }
  0xa6   : > { %v644_v46 = vpop.permute.xlu1 %643  ;;  %v735_v4 = vsel %vm699_vm6, %v546_v25, %v642_v41 }
  0xa7   : > { %v738_v3 = vsel %vm699_vm6, %v547_v14, %v644_v46 }
  0xa9   : > { %v688_v22 = vpop.permute.xlu0 %687 }
  0xaa   : > { %v7033_v47 = vsel %vm748_vm7, %v732_v49, %v688_v22  ;;  %v686_v1 = vpop.permute.xlu1 %685  ;;  %v540_v22 = vsel %vm7017_vm5, 0, %v6929_v50 }
  0xab   : > { %v7039_v40 = vsel %vm748_vm7, %v729_v32, %v686_v1 }
  0xac   : > { %5634 = vmatprep.mubr.msk.bf16.mxu1 %vm870_vm8, %v7039_v40 }
  0xad   : > { %5635 = vmatmul.mubr.msk.bf16.vlgmr.msra.gmra.mxu1 %vm870_vm8, %v7033_v47  ;;  %v670_v59 = vpop.permute.xlu0 %669 }
  0xae   : > { %v672_v60 = vpop.permute.xlu1 %671  ;;  %v7054_v62 = vsel %vm748_vm7, %v705_v61, %v670_v59  ;;  %5651 = vmatpush3.bf16.msra.mxu1 %v6975_v23 }
  0xaf   : > { %v7061_v56 = vsel %vm748_vm7, %v708_v34, %v672_v60  ;;  %5618 = vmatprep.mubr.msk.bf16.mxu0 %vm870_vm8, %v7054_v62  ;;  %5652 = vmatprep.subr.bf16.mxu1 %v6094_v55  ;;  %v550_v34 = vsel %vm7017_vm5, 0, %v6939_v58  ;;  %v542_v58 = vsel %vm7017_vm5, 0, %v6952_v10 }
  0xb0   : > { %5619 = vmatmul.mubr.msk.bf16.vlgmr.msra.gmra.mxu0 %vm870_vm8, %v7061_v56 }
  0xb1   : > { %v690_v13 = vpop.permute.xlu0 %689  ;;  %5695 = vmatpush3.bf16.msra.mxu0 %v6981_v27  ;;  %v6099_v27 = vld [vmem:[%s9221_s3 + $0x70] sm:$0xff]  }
  0xb2   : > { %v626_v16 = vpop.permute.xlu1 %625  ;;  %v7076_v5 = vsel %vm748_vm7, %v735_v4, %v690_v13  ;;  %5653 = vmatpush3.bf16.msra.mxu1 %v6094_v55  ;;  %5696 = vmatprep.subr.bf16.mxu0 %v6095_v63  ;;  %v806_v13 = vsel %vm7017_vm5, 0, %v6954_v11 }
  0xb3   : > { %5638 = vmatprep.mubr.msk.bf16.mxu1 %vm870_vm8, %v7076_v5  ;;  %5654 = vmatprep.subr.bf16.mxu1 %v6096_v30  ;;  %v711_v29 = vsel %vm699_vm6, %v538_v21, %v626_v16 }
  0xb5   : > { %v692_v17 = vpop.permute.xlu0 %691  ;;  %5697 = vmatpush3.bf16.msra.mxu0 %v6095_v63 }
  0xb6   : > { %v628_v23 = vpop.permute.xlu1 %627  ;;  %v7091_v24 = vsel %vm748_vm7, %v738_v3, %v692_v17  ;;  %5655 = vmatpush3.bf16.msra.mxu1 %v6096_v30  ;;  %5698 = vmatprep.subr.bf16.mxu0 %v6097_v2  ;;  %v543_v3 = vsel %vm7017_vm5, 0, %v6966_v20  ;;  %v407_v17 = vrot.slane %v6624_v43, 7 }
  0xb7   : > { %5639 = vmatmul.mubr.msk.bf16.gmra.mxu1 %vm870_vm8, %v7091_v24  ;;  %5656 = vmatprep.subr.bf16.mxu1 %v6098_v7  ;;  %v714_v33 = vsel %vm699_vm6, %v539_v0, %v628_v23 }
  0xb9   : > { %v674_v31 = vpop.permute.xlu0 %673  ;;  %5699 = vmatpush3.bf16.msra.mxu0 %v6097_v2 }
  0xba   : > { %v676_v12 = vpop.permute.xlu1 %675  ;;  %v7107_v35 = vsel %vm748_vm7, %v711_v29, %v674_v31  ;;  %5657 = vmatpush3.bf16.msra.mxu1 %v6098_v7  ;;  %5700 = vmatprep.subr.bf16.mxu0 %v6099_v27 }
  0xbb   : > { %v7113_v36 = vsel %vm748_vm7, %v714_v33, %v676_v12  ;;  %5622 = vmatprep.mubr.msk.bf16.mxu0 %vm870_vm8, %v7107_v35  ;;  %5658 = vmatprep.subr.bf16.mxu1 %v6100_v8 }
  0xbc   : > { %5623 = vmatmul.mubr.msk.bf16.gmra.mxu0 %vm870_vm8, %v7113_v36 }
  0xbd   : > { %v646_v9 = vpop.permute.xlu0 %645  ;;  %5701 = vmatpush3.bf16.msra.mxu0 %v6099_v27 }
  0xbe   : > { %v648_v52 = vpop.permute.xlu1 %647  ;;  %5659 = vmatpush3.bf16.msra.mxu1 %v6100_v8  ;;  %5702 = vmatprep.subr.bf16.mxu0 %v6101_v38  ;;  %v741_v28 = vsel %vm699_vm6, %v548_v37, %v646_v9  ;;  %v535_v8 = vsel %vm7017_vm5, 0, %v407_v17 }
  0xbf   : > { %5660 = vmatprep.subr.bf16.mxu1 %v6102_v19  ;;  %v744_v45 = vsel %vm699_vm6, %v549_v26, %v648_v52 }
  0xc1   : > { %v694_v41 = vpop.permute.xlu0 %693  ;;  %5703 = vmatpush3.bf16.msra.mxu0 %v6101_v38 }
  0xc2   : > { %v630_v46 = vpop.permute.xlu1 %629  ;;  %v7133_v48 = vsel %vm748_vm7, %v741_v28, %v694_v41  ;;  %5661 = vmatpush3.bf16.msra.mxu1 %v6102_v19  ;;  %5704 = vmatprep.subr.bf16.mxu0 %v6103_v18 }
  0xc3   : > { %5642 = vmatprep.mubr.msk.bf16.mxu1 %vm870_vm8, %v7133_v48  ;;  %v717_v1 = vsel %vm699_vm6, %v540_v22, %v630_v46 }
  0xc5   : > { %v696_v49 = vpop.permute.xlu0 %695  ;;  %5705 = vmatpush3.bf16.msra.mxu0 %v6103_v18 }
  0xc6   : > { %v632_v32 = vpop.permute.xlu1 %631  ;;  %v7142_v42 = vsel %vm748_vm7, %v744_v45, %v696_v49 }
  0xc7   : > { %5643 = vmatmul.mubr.msk.bf16.gmra.mxu1 %vm870_vm8, %v7142_v42  ;;  %v720_v55 = vsel %vm699_vm6, %v541_v51, %v632_v32 }
  0xc9   : > { %v678_v54 = vpop.permute.xlu0 %677 }
  0xca   : > { %v680_v61 = vpop.permute.xlu1 %679  ;;  %v760_v59 = vsel %vm748_vm7, %v717_v1, %v678_v54  ;;  %v1532_v54 = vlaneseq }
  0xcb   : > { %v762_v50 = vsel %vm748_vm7, %v720_v55, %v680_v61  ;;  %5626 = vmatprep.mubr.msk.bf16.mxu0 %vm870_vm8, %v760_v59 }
  0xcc   : > { %5627 = vmatmul.mubr.msk.bf16.gmra.mxu0 %vm870_vm8, %v762_v50 }
  0xcd   : > { %v650_v53 = vpop.permute.xlu0 %649 }
  0xce   : > { %v698_v25 = vpop.permute.xlu1 %697  ;;  %v747_v60 = vsel %vm699_vm6, %v550_v34, %v650_v53 }
  0xcf   : > { %v780_v63 = vsel %vm748_vm7, %v747_v60, %v698_v25 }
  0xd0   : > { %5646 = vmatprep.mubr.msk.bf16.mxu1 %vm870_vm8, %v780_v63 }
  0xd1   : > { %v812_v30 = vpop.permute.xlu0 %811 }
  0xd2   : > { %v634_v4 = vpop.permute.xlu1 %633  ;;  %v818_v14 = vsel %vm699_vm6, %v806_v13, %v812_v30  ;;  %v295_v30 = vld [vmem:[%s9222_s4] sm:$0x3] }
  0xd3   : > { %v723_v11 = vsel %vm699_vm6, %v542_v58, %v634_v4 }
  0xd5   : > { %v815_v16 = vpop.permute.xlu0 %814 }
  0xd6   : > { %v636_v2 = vpop.permute.xlu1 %635  ;;  %v820_v7 = vsel %vm748_vm7, %v818_v14, %v815_v16  ;;  %v293_v16 = vld [vmem:[%s9219_s1] sm:$0x3] }
  0xd7   : > { %5647 = vmatmul.mubr.msk.bf16.gmra.mxu1 %vm870_vm8, %v820_v7  ;;  %v726_v23 = vsel %vm699_vm6, %v543_v3, %v636_v2  ;;  %v294_v3 = vld [vmem:[%s9220_s2] sm:$0x3] }
  0xd9   : > { %v682_v21 = vpop.permute.xlu0 %681 }
  0xda   : > { %v684_v27 = vpop.permute.xlu1 %683  ;;  %v764_v0 = vsel %vm748_vm7, %v723_v11, %v682_v21 }
  0xdb   : > { %v766_v10 = vsel %vm748_vm7, %v726_v23, %v684_v27  ;;  %5630 = vmatprep.mubr.msk.bf16.mxu0 %vm870_vm8, %v764_v0 }
  0xdc   : > { %5631 = vmatmul.mubr.msk.bf16.gmra.mxu0 %vm870_vm8, %v766_v10 }
  0xdd   : > { %v620_v20 = vpop.permute.xlu0 %619  ;;  %5706 = vmatprep.mubr.msk.bf16.mxu0 %vm870_vm8, %v7061_v56 }
  0xde   : > { %v702_v43 = vsel %vm699_vm6, %v535_v8, %v620_v20  ;;  %v668_v29 = vpop.permute.xlu1 %667 }
  0xdf   : > { %v7186_v31 = vsel %vm748_vm7, %v702_v43, %v668_v29 }
  0xe0   : > { %9245 = vst [vmem:[#allocation10_spill] sm:$0xff] %v7186_v31  ;;  %5662 = vmatprep.mubr.msk.bf16.mxu1 %vm870_vm8, %v7186_v31 }
  0xe1   : > { %5663 = vmatmul.mubr.msk.bf16.vlgmr.msra.gmra.mxu1 %vm870_vm8, %v7054_v62  ;;  %v1268_v62 = vrot.slane %v1266_v6, 7 }
  0xe2   : > { %5666 = vmatprep.mubr.msk.bf16.mxu1 %vm870_vm8, %v7061_v56  ;;  %v1279_v56 = vpop.permute.xlu0 %1278 }
  0xe4   : > { %5707 = vmatmul.mubr.msk.bf16.vlgmr.msra.gmra.mxu0 %vm870_vm8, %v7107_v35 }
  0xe5   : > { %5710 = vmatprep.mubr.msk.bf16.mxu0 %vm870_vm8, %v7113_v36 }
  0xe9   : > { %5667 = vmatmul.mubr.msk.bf16.gmra.mxu1 %vm870_vm8, %v7107_v35 }
  0xea   : > { %5670 = vmatprep.mubr.msk.bf16.mxu1 %vm870_vm8, %v7113_v36 }
  0xec   : > { %5711 = vmatmul.mubr.msk.bf16.gmra.mxu0 %vm870_vm8, %v760_v59 }
  0xed   : > { %5714 = vmatprep.mubr.msk.bf16.mxu0 %vm870_vm8, %v762_v50 }
  0xf1   : > { %5671 = vmatmul.mubr.msk.bf16.gmra.mxu1 %vm870_vm8, %v760_v59 }
  0xf2   : > { %5674 = vmatprep.mubr.msk.bf16.mxu1 %vm870_vm8, %v762_v50  ;;  %v7290_v50 = vshrl.u32 %v1532_v54, 7 }
  0xf4   : > { %5715 = vmatmul.mubr.msk.bf16.gmra.mxu0 %vm870_vm8, %v764_v0  ;;  %9246 = vst [vmem:[#allocation11_spill] sm:$0xff] %v7290_v50  ;;  %v1534_v60 = vsub.s32 0, %v7290_v50 }
  0xf5   : > { %5718 = vmatprep.mubr.msk.bf16.mxu0 %vm870_vm8, %v766_v10 }
  0xf6   : > { %v7309_v2 = vrot.slane %v295_v30, %v1534_v60  ;;  %v7314_v21 = vrot.slane %v293_v16, %v1534_v60  ;;  %v7317_v8 = vrot.slane %v294_v3, %v1534_v60 }
  0xf9   : > { %5675 = vmatmul.mubr.msk.bf16.gmra.mxu1 %vm870_vm8, %v764_v0 }
  0xfa   : > { %5678 = vmatprep.mubr.msk.bf16.mxu1 %vm870_vm8, %v766_v10 }
  0xfc   : > { %5719 = vmatmul.mubr.msk.bf16.gmra.mxu0 %vm870_vm8, %v7039_v40 }
  0xfd   : > { %5722 = vmatprep.mubr.msk.bf16.mxu0 %vm870_vm8, %v7033_v47 }
 0x101   : > { %5679 = vmatmul.mubr.msk.bf16.gmra.mxu1 %vm870_vm8, %v7039_v40 }
 0x102   : > { %5682 = vmatprep.mubr.msk.bf16.mxu1 %vm870_vm8, %v7033_v47  ;;  %v1271_v47 = vor.u32 %v1269_v57, %v1268_v62 }
 0x104   : > { %5723 = vmatmul.mubr.msk.bf16.gmra.mxu0 %vm870_vm8, %v7076_v5  ;;  %v1273_v40 = vsel %vm7017_vm5, 0, %v1271_v47 }
 0x105   : > { %5726 = vmatprep.mubr.msk.bf16.mxu0 %vm870_vm8, %v7091_v24  ;;  %v1285_v6 = vsel %vm699_vm6, %v1273_v40, %v1279_v56 }
 0x109   : > { %5683 = vmatmul.mubr.msk.bf16.gmra.mxu1 %vm870_vm8, %v7076_v5  ;;  %v1282_v5 = vpop.permute.xlu1 %1281 }
 0x10a   : > { %5686 = vmatprep.mubr.msk.bf16.mxu1 %vm870_vm8, %v7091_v24  ;;  %v1287_v44 = vsel %vm748_vm7, %v1285_v6, %v1282_v5 }
 0x10c   : > { %5727 = vmatmul.mubr.msk.bf16.gmra.mxu0 %vm870_vm8, %v7133_v48 }
 0x10d   : > { %5730 = vmatprep.mubr.msk.bf16.mxu0 %vm870_vm8, %v7142_v42 }
 0x111   : > { %5687 = vmatmul.mubr.msk.bf16.gmra.mxu1 %vm870_vm8, %v7133_v48 }
 0x112   : > { %5690 = vmatprep.mubr.msk.bf16.mxu1 %vm870_vm8, %v7142_v42 }
 0x114   : > { %5731 = vmatmul.mubr.msk.bf16.gmra.mxu0 %vm870_vm8, %v780_v63 }
 0x115   : > { %5734 = vmatprep.mubr.msk.bf16.mxu0 %vm870_vm8, %v820_v7 }
 0x119   : > { %5691 = vmatmul.mubr.msk.bf16.gmra.mxu1 %vm870_vm8, %v780_v63 }
 0x11c   : > { %5735 = vmatmul.mubr.msk.bf16.gmra.mxu0 %vm870_vm8, %v1287_v44 }
 0x11d   : > { %5794 = vmatprep.mubr.msk.bf16.mxu0 %vm870_vm8, %v7186_v31 }
 0x16d   : > { %v7248_v57 = vpop.f32.mrf.mxu1 }
 0x16f   : > { %v7250_v24 = vpop.f32.mrf.mxu1 }
 0x170   : > { %v5620_v33 = vpop.f32.mrf.mxu0 }
 0x171   : > { %v7252_v12 = vpop.f32.mrf.mxu1 }
 0x172   : > { %v937_v35 = vpop.f32.mrf.mxu0 }
 0x173   : > { %v7254_v38 = vpop.f32.mrf.mxu1 }
 0x174   : > { %v5621_v36 = vpop.f32.mrf.mxu0 }
 0x176   : > { %v940_v9 = vpop.f32.mrf.mxu0 }
 0x177   : > { %v7256_v19 = vpop.f32.mrf.mxu1 }
 0x179   : > { %v7258_v52 = vpop.f32.mrf.mxu1 }
 0x17b   : > { %v7260_v18 = vpop.f32.mrf.mxu1 }
 0x17c   : > { %v5624_v37 = vpop.f32.mrf.mxu0 }
 0x17d   : > { %v7262_v41 = vpop.f32.mrf.mxu1 }
 0x17e   : > { %v953_v28 = vpop.f32.mrf.mxu0 }
 0x180   : > { %v7264_v26 = vpop.f32.mrf.mxu0 }
 0x182   : > { %v7268_v48 = vpop.f32.mrf.mxu0 }
 0x187   : > { %v7266_v46 = vpop.f32.mrf.mxu1 }
 0x189   : > { %v7270_v45 = vpop.f32.mrf.mxu1 }
 0x18b   : > { %v7274_v22 = vpop.f32.mrf.mxu1 }
 0x18c   : > { %v7272_v49 = vpop.f32.mrf.mxu0 }
 0x18d   : > { %v7278_v42 = vpop.f32.mrf.mxu1 }
 0x18e   : > { %v7276_v32 = vpop.f32.mrf.mxu0 }
 0x190   : > { %v7280_v51 = vpop.f32.mrf.mxu0 }
 0x192   : > { %v7286_v61 = vpop.f32.mrf.mxu0 }
 0x197   : > { %v7282_v1 = vpop.f32.mrf.mxu1 }
 0x199   : > { %v7284_v55 = vpop.f32.mrf.mxu1 }
 0x19b   : > { %v7288_v59 = vpop.f32.mrf.mxu1 }
 0x19c   : > { %v7292_v34 = vpop.f32.mrf.mxu0 }
 0x19d   : > { %v7296_v25 = vpop.f32.mrf.mxu1 }
 0x19e   : > { %v7294_v53 = vpop.f32.mrf.mxu0 }
 0x1a0   : > { %v7299_v63 = vpop.f32.mrf.mxu0 }
 0x1a1   : > { %v5664_v4 = vpop.f32.mrf.mxu1 }
 0x1a2   : > { %v1145_v13 = vadd.f32 %v5664_v4, %v5620_v33  ;;  %v7304_v14 = vpop.f32.mrf.mxu0  ;;  %v6104_v33 = vld [vmem:[%s9221_s3 + $0xe8] sm:$0xff]  }
 0x1a3   : > { %v1136_v58 = vpop.f32.mrf.mxu1  ;;  %5738 = vmatprep.subr.bf16.mxu1 %v6104_v33 }
 0x1a4   : > { %v1137_v7 = vadd.f32 %v1136_v58, %v937_v35  ;;  %v5708_v17 = vpop.f32.mrf.mxu0  ;;  %5739 = vmatpush3.bf16.msra.mxu1 %v6104_v33 }
 0x1a5   : > { %v1502_v11 = vadd.f32 %v5708_v17, %v1145_v13  ;;  %v5665_v23 = vpop.f32.mrf.mxu1 }
 0x1a6   : > { %v1148_v27 = vadd.f32 %v5665_v23, %v5621_v36  ;;  %v1373_v0 = vpop.f32.mrf.mxu0  ;;  %v6106_v23 = vld [vmem:[%s9221_s3 + $0xd8] sm:$0xff]  }
 0x1a7   : > { %v1538_v10 = vadd.f32 %v7309_v2, %v1502_v11  ;;  %v1500_v20 = vadd.f32 %v1373_v0, %v1137_v7  ;;  %v1139_v43 = vpop.f32.mrf.mxu1 }
 0x1a8   : > { %v1140_v29 = vadd.f32 %v1139_v43, %v940_v9  ;;  %v5709_v62 = vpop.f32.mrf.mxu0  ;;  %v6109_v43 = vld [vmem:[%s9221_s3 + $0xb0] sm:$0xff]  }
 0x1a9   : > { %v1574_v47 = vmul.f32 %v7314_v21, %v1538_v10  ;;  %v1536_v40 = vadd.f32 %v7309_v2, %v1500_v20  ;;  %v1503_v56 = vadd.f32 %v5709_v62, %v1148_v27  ;;  %v5668_v6 = vpop.f32.mrf.mxu1 }
 0x1aa   : > { %v1161_v5 = vadd.f32 %v5668_v6, %v5624_v37  ;;  %v1376_v44 = vpop.f32.mrf.mxu0 }
 0x1ab   : > { %v7325_v35 = vadd.f32 %v7317_v8, %v1574_v47  ;;  %v1572_v36 = vmul.f32 %v7314_v21, %v1536_v40  ;;  %v1539_v9 = vadd.f32 %v7309_v2, %v1503_v56  ;;  %v1501_v54 = vadd.f32 %v1376_v44, %v1140_v29  ;;  %v1152_v60 = vpop.f32.mrf.mxu1 }
 0x1ac   : > { %v1153_v30 = vadd.f32 %v1152_v60, %v953_v28  ;;  %v5712_v4 = vpop.f32.mrf.mxu0  ;;  %v6105_v28 = vld [vmem:[%s9221_s3 + $0xe0] sm:$0xff]  }
 0x1ad   : > { %v4979_v13 = vmul.f32 -1.442695, %v7325_v35  ;;  %v7331_v37 = vadd.f32 %v7317_v8, %v1572_v36  ;;  %v1575_v16 = vmul.f32 %v7314_v21, %v1539_v9  ;;  %v1537_v58 = vadd.f32 %v7309_v2, %v1501_v54  ;;  %v5669_v7 = vpop.f32.mrf.mxu1  ;;  %5740 = vmatprep.subr.bf16.mxu1 %v6105_v28 }
 0x1ae   : > { %v1506_v3 = vadd.f32 %v5712_v4, %v1161_v5  ;;  %v1164_v17 = vadd.f32 %v5669_v7, %v7264_v26  ;;  %v1389_v11 = vpop.f32.mrf.mxu0  ;;  %v6108_v26 = vld [vmem:[%s9221_s3 + $0xb8] sm:$0xff]   ;;  %5741 = vmatpush3.bf16.msra.mxu1 %v6105_v28 }
 0x1af   : > { %6140 = vpow2.f32 %v4979_v13  ;;  %v4977_v27 = vmul.f32 -1.442695, %v7331_v37  ;;  %v7344_v0 = vadd.f32 %v7317_v8, %v1575_v16  ;;  %v1573_v10 = vmul.f32 %v7314_v21, %v1537_v58  ;;  %v1155_v20 = vpop.f32.mrf.mxu1  ;;  %5782 = vmatprep.subr.bf16.mxu0 %v6108_v26  ;;  %5742 = vmatprep.subr.bf16.mxu1 %v6106_v23  ;;  %v6111_v16 = vld [vmem:[%s9221_s3 + $0xa8] sm:$0xff]  }
 0x1b0   : > { %v1542_v29 = vadd.f32 %v7309_v2, %v1506_v3  ;;  %v1504_v62 = vadd.f32 %v1389_v11, %v1153_v30  ;;  %v1156_v47 = vadd.f32 %v1155_v20, %v7268_v48  ;;  %v5713_v40 = vpop.f32.mrf.mxu0  ;;  %v6107_v48 = vld [vmem:[%s9221_s3 + $0xd0] sm:$0xff]   ;;  %5783 = vmatpush3.bf16.msra.mxu0 %v6108_v26 }
 0x1b1   : > { %6142 = vpow2.f32 %v4977_v27  ;;  %v4980_v56 = vmul.f32 -1.442695, %v7344_v0  ;;  %v7357_v6 = vadd.f32 %v7317_v8, %v1573_v10  ;;  %v1507_v5 = vadd.f32 %v5713_v40, %v1164_v17  ;;  %v5672_v44 = vpop.f32.mrf.mxu1  ;;  %5784 = vmatprep.subr.bf16.mxu0 %v6109_v43 }
 0x1b2   : > { %v1578_v33 = vmul.f32 %v7314_v21, %v1542_v29  ;;  %v1540_v36 = vadd.f32 %v7309_v2, %v1504_v62  ;;  %v1177_v9 = vadd.f32 %v5672_v44, %v7272_v49  ;;  %v1392_v54 = vpop.f32.mrf.mxu0  ;;  %5743 = vmatpush3.bf16.msra.mxu1 %v6106_v23 }
 0x1b3   : > { %6144 = vpow2.f32 %v4980_v56  ;;  %v4978_v60 = vmul.f32 -1.442695, %v7357_v6  ;;  %v1543_v30 = vadd.f32 %v7309_v2, %v1507_v5  ;;  %v1505_v4 = vadd.f32 %v1392_v54, %v1156_v47  ;;  %v1168_v13 = vpop.f32.mrf.mxu1  ;;  %5744 = vmatprep.subr.bf16.mxu1 %v6107_v48 }
 0x1b4   : > { %v7371_v49 = vadd.f32 %v7317_v8, %v1578_v33  ;;  %v1576_v58 = vmul.f32 %v7314_v21, %v1540_v36  ;;  %v1169_v7 = vadd.f32 %v1168_v13, %v7276_v32  ;;  %v5716_v3 = vpop.f32.mrf.mxu0  ;;  %5785 = vmatpush3.bf16.msra.mxu0 %v6109_v43  ;;  %v6110_v32 = vld [vmem:[%s9221_s3 + $0xc8] sm:$0xff]  }
 0x1b5   : > { %6146 = vpow2.f32 %v4978_v60  ;;  %v1579_v17 = vmul.f32 %v7314_v21, %v1543_v30  ;;  %v1541_v11 = vadd.f32 %v7309_v2, %v1505_v4  ;;  %v1510_v28 = vadd.f32 %v5716_v3, %v1177_v9  ;;  %v5673_v27 = vpop.f32.mrf.mxu1  ;;  %5786 = vmatprep.subr.bf16.mxu0 %v6111_v16 }
 0x1b6   : > { %v4983_v10 = vmul.f32 -1.442695, %v7371_v49  ;;  %v7379_v20 = vadd.f32 %v7317_v8, %v1576_v58  ;;  %v1180_v26 = vadd.f32 %v5673_v27, %v7280_v51  ;;  %v1405_v29 = vpop.f32.mrf.mxu0  ;;  %v6112_v51 = vld [vmem:[%s9221_s3 + $0xa0] sm:$0xff]   ;;  %5745 = vmatpush3.bf16.msra.mxu1 %v6107_v48 }
 0x1b7   : > { %v7386_v62 = vadd.f32 %v7317_v8, %v1579_v17  ;;  %v1577_v47 = vmul.f32 %v7314_v21, %v1541_v11  ;;  %v1546_v23 = vadd.f32 %v7309_v2, %v1510_v28  ;;  %v1508_v40 = vadd.f32 %v1405_v29, %v1169_v7  ;;  %v1171_v56 = vpop.f32.mrf.mxu1  ;;  %5746 = vmatprep.subr.bf16.mxu1 %v6110_v32 }
 0x1b8   : > { %6148 = vpow2.f32 %v4983_v10  ;;  %v4981_v43 = vmul.f32 -1.442695, %v7379_v20  ;;  %v1172_v5 = vadd.f32 %v1171_v56, %v7286_v61  ;;  %v5717_v44 = vpop.f32.mrf.mxu0  ;;  %5787 = vmatpush3.bf16.msra.mxu0 %v6111_v16 }
 0x1b9   : > { %v4984_v33 = vmul.f32 -1.442695, %v7386_v62  ;;  %v7397_v36 = vadd.f32 %v7317_v8, %v1577_v47  ;;  %v1582_v9 = vmul.f32 %v7314_v21, %v1546_v23  ;;  %v1544_v54 = vadd.f32 %v7309_v2, %v1508_v40  ;;  %v5676_v60 = vpop.f32.mrf.mxu1  ;;  %5788 = vmatprep.subr.bf16.mxu0 %v6112_v51 }
 0x1ba   : > { %6150 = vpow2.f32 %v4981_v43  ;;  %v1511_v30 = vadd.f32 %v5717_v44, %v1180_v26  ;;  %v1193_v4 = vadd.f32 %v5676_v60, %v7292_v34  ;;  %v1408_v13 = vpop.f32.mrf.mxu0  ;;  %5747 = vmatpush3.bf16.msra.mxu1 %v6110_v32 }
 0x1bb   : > { %6152 = vpow2.f32 %v4984_v33  ;;  %v4982_v61 = vmul.f32 -1.442695, %v7397_v36  ;;  %v7404_v58 = vadd.f32 %v7317_v8, %v1582_v9  ;;  %v1580_v7 = vmul.f32 %v7314_v21, %v1544_v54  ;;  %v1184_v3 = vpop.f32.mrf.mxu1 }
 0x1bc   : > { %v6141_v17 = vpop.eup %6140  ;;  %v1547_v48 = vadd.f32 %v7309_v2, %v1511_v30  ;;  %v1509_v11 = vadd.f32 %v1408_v13, %v1172_v5  ;;  %v1185_v28 = vadd.f32 %v1184_v3, %v7294_v53  ;;  %v5720_v34 = vpop.f32.mrf.mxu0  ;;  %5789 = vmatpush3.bf16.msra.mxu0 %v6112_v51 }
 0x1bd   : > { %v1738_v27 = vadd.f32 1.0, %v6141_v17  ;;  %6154 = vpow2.f32 %v4982_v61  ;;  %v4987_v16 = vmul.f32 -1.442695, %v7404_v58  ;;  %v7411_v10 = vadd.f32 %v7317_v8, %v1580_v7  ;;  %v5677_v26 = vpop.f32.mrf.mxu1 }
 0x1be   : > { %v6143_v29 = vpop.eup %6142  ;;  %v1583_v47 = vmul.f32 %v7314_v21, %v1547_v48  ;;  %v1545_v23 = vadd.f32 %v7309_v2, %v1509_v11  ;;  %v1514_v40 = vadd.f32 %v5720_v34, %v1193_v4  ;;  %v1196_v56 = vadd.f32 %v5677_v26, %v7299_v63  ;;  %v1421_v43 = vpop.f32.mrf.mxu0 }
 0x1bf   : > { %6156 = vrcp.f32 %v1738_v27  ;;  %v1736_v53 = vadd.f32 1.0, %v6143_v29  ;;  %v4985_v5 = vmul.f32 -1.442695, %v7411_v10  ;;  %v1512_v44 = vadd.f32 %v1421_v43, %v1185_v28  ;;  %v1187_v33 = vpop.f32.mrf.mxu1 }
 0x1c0   : > { %v6145_v9 = vpop.eup %6144  ;;  %6158 = vpow2.f32 %v4987_v16  ;;  %v7418_v32 = vadd.f32 %v7317_v8, %v1583_v47  ;;  %v1581_v54 = vmul.f32 %v7314_v21, %v1545_v23  ;;  %v1550_v60 = vadd.f32 %v7309_v2, %v1514_v40  ;;  %v5721_v30 = vpop.f32.mrf.mxu0 }
 0x1c1   : > { %6160 = vrcp.f32 %v1736_v53  ;;  %v1739_v63 = vadd.f32 1.0, %v6145_v9  ;;  %v1548_v51 = vadd.f32 %v7309_v2, %v1512_v44  ;;  %v1188_v4 = vadd.f32 %v1187_v33, %v7304_v14  ;;  %v5680_v13 = vpop.f32.mrf.mxu1 }
 0x1c2   : > { %v6147_v61 = vpop.eup %6146  ;;  %6162 = vpow2.f32 %v4985_v5  ;;  %v4988_v7 = vmul.f32 -1.442695, %v7418_v32  ;;  %v7426_v3 = vadd.f32 %v7317_v8, %v1581_v54  ;;  %v1586_v17 = vmul.f32 %v7314_v21, %v1550_v60  ;;  %v1424_v48 = vpop.f32.mrf.mxu0 }
 0x1c3   : > { %6164 = vrcp.f32 %v1739_v63  ;;  %v1737_v11 = vadd.f32 1.0, %v6147_v61  ;;  %v1584_v28 = vmul.f32 %v7314_v21, %v1548_v51  ;;  %v1515_v34 = vadd.f32 %v5721_v30, %v1196_v56  ;;  %v1200_v27 = vpop.f32.mrf.mxu1 }
 0x1c4   : > { %6166 = vpow2.f32 %v4988_v7  ;;  %v4986_v14 = vmul.f32 -1.442695, %v7426_v3  ;;  %v7432_v16 = vadd.f32 %v7317_v8, %v1586_v17  ;;  %v1209_v26 = vadd.f32 %v5680_v13, %v7248_v57  ;;  %v5724_v29 = vpop.f32.mrf.mxu0 }
 0x1c5   : > { %v6149_v47 = vpop.eup %6148  ;;  %6168 = vrcp.f32 %v1737_v11  ;;  %v7436_v23 = vadd.f32 %v7317_v8, %v1584_v28  ;;  %v1551_v40 = vadd.f32 %v7309_v2, %v1515_v34  ;;  %v1513_v43 = vadd.f32 %v1424_v48, %v1188_v4  ;;  %v5681_v53 = vpop.f32.mrf.mxu1 }
 0x1c6   : > { %v1742_v56 = vadd.f32 1.0, %v6149_v47  ;;  %6170 = vpow2.f32 %v4986_v14  ;;  %v4991_v5 = vmul.f32 -1.442695, %v7432_v16  ;;  %v1201_v44 = vadd.f32 %v1200_v27, %v7250_v24  ;;  %v1437_v33 = vpop.f32.mrf.mxu0 }
 0x1c7   : > { %v6151_v9 = vpop.eup %6150  ;;  %v4989_v57 = vmul.f32 -1.442695, %v7436_v23  ;;  %v1587_v54 = vmul.f32 %v7314_v21, %v1551_v40  ;;  %v1549_v60 = vadd.f32 %v7309_v2, %v1513_v43  ;;  %v1518_v30 = vadd.f32 %v5724_v29, %v1209_v26  ;;  %v1203_v63 = vpop.f32.mrf.mxu1 }
 0x1c8   : > { %v6153_v51 = vpop.eup %6152  ;;  %6172 = vrcp.f32 %v1742_v56  ;;  %v1740_v4 = vadd.f32 1.0, %v6151_v9  ;;  %v1212_v13 = vadd.f32 %v5681_v53, %v7252_v12  ;;  %v1516_v61 = vadd.f32 %v1437_v33, %v1201_v44  ;;  %v5725_v7 = vpop.f32.mrf.mxu0 }
 0x1c9   : > { %v1743_v17 = vadd.f32 1.0, %v6153_v51  ;;  %6174 = vpow2.f32 %v4991_v5  ;;  %v7446_v24 = vadd.f32 %v7317_v8, %v1587_v54  ;;  %v1585_v48 = vmul.f32 %v7314_v21, %v1549_v60  ;;  %v5684_v11 = vpop.f32.mrf.mxu1 }
 0x1ca   : > { %v6155_v28 = vpop.eup %6154  ;;  %6176 = vrcp.f32 %v1740_v4  ;;  %v1554_v34 = vadd.f32 %v7309_v2, %v1518_v30  ;;  %v1552_v27 = vadd.f32 %v7309_v2, %v1516_v61  ;;  %v1204_v14 = vadd.f32 %v1203_v63, %v7254_v38  ;;  %v1440_v26 = vpop.f32.mrf.mxu0 }
 0x1cb   : > { %6178 = vrcp.f32 %v1743_v17  ;;  %v1741_v12 = vadd.f32 1.0, %v6155_v28  ;;  %v4992_v29 = vmul.f32 -1.442695, %v7446_v24  ;;  %v7454_v47 = vadd.f32 %v7317_v8, %v1585_v48  ;;  %v1216_v40 = vpop.f32.mrf.mxu1 }
 0x1cc   : > { %v7456_v43 = vpop.eup %6156  ;;  %6180 = vpow2.f32 %v4989_v57  ;;  %v1590_v53 = vmul.f32 %v7314_v21, %v1554_v34  ;;  %v1588_v56 = vmul.f32 %v7314_v21, %v1552_v27  ;;  %v1519_v5 = vadd.f32 %v5725_v7, %v1212_v13  ;;  %v5728_v44 = vpop.f32.mrf.mxu0 }
 0x1cd   : > { %v6159_v33 = vpop.eup %6158  ;;  %6182 = vrcp.f32 %v1741_v12  ;;  %v4990_v38 = vmul.f32 -1.442695, %v7454_v47  ;;  %v1225_v9 = vadd.f32 %v5684_v11, %v7256_v19  ;;  %v1517_v54 = vadd.f32 %v1440_v26, %v1204_v14  ;;  %v5685_v60 = vpop.f32.mrf.mxu1 }
 0x1ce   : > { %v7462_v30 = vpop.eup %6160  ;;  %v1746_v63 = vadd.f32 1.0, %v6159_v33  ;;  %6184 = vpow2.f32 %v4992_v29  ;;  %v7465_v57 = vadd.f32 %v7317_v8, %v1590_v53  ;;  %v7468_v51 = vadd.f32 %v7317_v8, %v1588_v56  ;;  %v1453_v4 = vpop.f32.mrf.mxu0 }
 0x1cf   : > { %v6163_v13 = vpop.eup %6162  ;;  %6186 = vpow2.f32 %v4990_v38  ;;  %v1555_v61 = vadd.f32 %v7309_v2, %v1519_v5  ;;  %v1553_v7 = vadd.f32 %v7309_v2, %v1517_v54  ;;  %v1217_v19 = vadd.f32 %v1216_v40, %v7258_v52  ;;  %v1219_v17 = vpop.f32.mrf.mxu1 }
 0x1d0   : > { %v7473_v48 = vpop.eup %6164  ;;  %6188 = vrcp.f32 %v1746_v63  ;;  %v1744_v11 = vadd.f32 1.0, %v6163_v13  ;;  %v4995_v28 = vmul.f32 -1.442695, %v7465_v57  ;;  %v4993_v34 = vmul.f32 -1.442695, %v7468_v51  ;;  %v5729_v27 = vpop.f32.mrf.mxu0 }
 0x1d1   : > { %v6167_v14 = vpop.eup %6166  ;;  %v1591_v26 = vmul.f32 %v7314_v21, %v1555_v61  ;;  %v1589_v12 = vmul.f32 %v7314_v21, %v1553_v7  ;;  %v1522_v29 = vadd.f32 %v5728_v44, %v1225_v9  ;;  %v1228_v53 = vadd.f32 %v5685_v60, %v7260_v18  ;;  %v5688_v56 = vpop.f32.mrf.mxu1 }
 0x1d2   : > { %v7480_v52 = vpop.eup %6168  ;;  %6190 = vrcp.f32 %v1744_v11  ;;  %v1747_v40 = vadd.f32 1.0, %v6167_v14  ;;  %v1520_v5 = vadd.f32 %v1453_v4, %v1217_v19  ;;  %v1220_v33 = vadd.f32 %v1219_v17, %v7262_v41  ;;  %v1456_v38 = vpop.f32.mrf.mxu0 }
 0x1d3   : > { %v6171_v54 = vpop.eup %6170  ;;  %6192 = vpow2.f32 %v4995_v28  ;;  %v7484_v63 = vadd.f32 %v7317_v8, %v1591_v26  ;;  %v7487_v13 = vadd.f32 %v7317_v8, %v1589_v12  ;;  %v1558_v44 = vadd.f32 %v7309_v2, %v1522_v29  ;;  %v1232_v18 = vpop.f32.mrf.mxu1 }
 0x1d4   : > { %6194 = vrcp.f32 %v1747_v40  ;;  %v1745_v9 = vadd.f32 1.0, %v6171_v54  ;;  %v1556_v60 = vadd.f32 %v7309_v2, %v1520_v5  ;;  %v1523_v61 = vadd.f32 %v5729_v27, %v1228_v53  ;;  %v5732_v4 = vpop.f32.mrf.mxu0  ;;  %v6113_v5 = vld [vmem:[%s9221_s3 + $0x98] sm:$0xff]   ;;  %v6114_v54 = vld [vmem:[%s9221_s3 + $0xc0] sm:$0xff]  }
 0x1d5   : > { %v7491_v7 = vpop.eup %6172  ;;  %6196 = vpow2.f32 %v4993_v34  ;;  %v4996_v41 = vmul.f32 -1.442695, %v7484_v63  ;;  %v4994_v19 = vmul.f32 -1.442695, %v7487_v13  ;;  %v1594_v17 = vmul.f32 %v7314_v21, %v1558_v44  ;;  %v5689_v11 = vpop.f32.mrf.mxu1  ;;  %5790 = vmatprep.subr.bf16.mxu0 %v6113_v5  ;;  %5748 = vmatprep.subr.bf16.mxu1 %v6114_v54 }
 0x1d6   : > { %v6175_v28 = vpop.eup %6174  ;;  %6198 = vrcp.f32 %v1745_v9  ;;  %v1592_v14 = vmul.f32 %v7314_v21, %v1556_v60  ;;  %v1559_v26 = vadd.f32 %v7309_v2, %v1523_v61  ;;  %v1241_v12 = vadd.f32 %v5688_v56, %v7266_v46  ;;  %v1469_v27 = vpop.f32.mrf.mxu0  ;;  %v6115_v46 = vld [vmem:[%s9221_s3 + $0x90] sm:$0xff]   ;;  %5791 = vmatpush3.bf16.msra.mxu0 %v6113_v5  ;;  %5749 = vmatpush3.bf16.msra.mxu1 %v6114_v54 }
 0x1d7   : > { %v7499_v29 = vpop.eup %6176  ;;  %v1750_v53 = vadd.f32 1.0, %v6175_v28  ;;  %6200 = vpow2.f32 %v4996_v41  ;;  %v7502_v34 = vadd.f32 %v7317_v8, %v1594_v17  ;;  %v1521_v40 = vadd.f32 %v1456_v38, %v1220_v33  ;;  %v1235_v28 = vpop.f32.mrf.mxu1  ;;  %5792 = vmatprep.subr.bf16.mxu0 %v6115_v46 }
 0x1d8   : > { %v7513_v56 = vpop.eup %6178  ;;  %6202 = vpow2.f32 %v4994_v19  ;;  %v7516_v44 = vadd.f32 %v7317_v8, %v1592_v14  ;;  %v1595_v33 = vmul.f32 %v7314_v21, %v1559_v26  ;;  %v1233_v38 = vadd.f32 %v1232_v18, %v7270_v45  ;;  %v5733_v9 = vpop.f32.mrf.mxu0 }
 0x1d9   : > { %v6181_v60 = vpop.eup %6180  ;;  %6204 = vrcp.f32 %v1750_v53  ;;  %v4999_v61 = vmul.f32 -1.442695, %v7502_v34  ;;  %v1557_v41 = vadd.f32 %v7309_v2, %v1521_v40  ;;  %v1526_v17 = vadd.f32 %v5732_v4, %v1241_v12 }
 0x1da   : > { %v7522_v50 = vpop.eup %6182  ;;  %v1748_v19 = vadd.f32 1.0, %v6181_v60  ;;  %v4997_v14 = vmul.f32 -1.442695, %v7516_v44  ;;  %v7526_v26 = vadd.f32 %v7317_v8, %v1595_v33  ;;  %v1244_v45 = vadd.f32 %v5689_v11, %v7274_v22  ;;  %v1472_v11 = vpop.f32.mrf.mxu0  ;;  %5793 = vmatpush3.bf16.msra.mxu0 %v6115_v46 }
 0x1db   : > { %v6185_v18 = vpop.eup %6184  ;;  %6206 = vpow2.f32 %v4999_v61  ;;  %v1593_v53 = vmul.f32 %v7314_v21, %v1557_v41  ;;  %v1562_v4 = vadd.f32 %v7309_v2, %v1526_v17  ;;  %v1834_v12 = vmul.f32 %v7456_v43, %v7325_v35  ;;  %v5692_v41 = vpop.f32.mrf.mxu1  ;;  %5870 = vmatprep.subr.bf16.mxu0 %v6122_v15 }
 0x1dc   : > { %v6187_v40 = vpop.eup %6186  ;;  %6208 = vrcp.f32 %v1748_v19  ;;  %v1751_v60 = vadd.f32 1.0, %v6185_v18  ;;  %v5000_v33 = vmul.f32 -1.442695, %v7526_v26  ;;  %v1835_v22 = vmul.f32 %v7473_v48, %v7344_v0 }
 0x1dd   : > { %v7536_v5 = vpop.eup %6188  ;;  %6210 = vpow2.f32 %v4997_v14  ;;  %v7539_v54 = vadd.f32 %v7317_v8, %v1593_v53  ;;  %v1598_v61 = vmul.f32 %v7314_v21, %v1562_v4  ;;  %v1749_v35 = vadd.f32 1.0, %v6187_v40 }
 0x1de   : > { %v7542_v43 = vpack.c.bf16 %v1835_v22, %v1834_v12  ;;  %v1524_v17 = vadd.f32 %v1469_v27, %v1233_v38  ;;  %v1236_v19 = vadd.f32 %v1235_v28, %v7278_v42  ;;  %6212 = vrcp.f32 %v1751_v60  ;;  %v5736_v38 = vpop.f32.mrf.mxu0 }
 0x1df   : > { %v7545_v18 = vpop.eup %6190  ;;  %v4998_v0 = vmul.f32 -1.442695, %v7539_v54  ;;  %v7549_v48 = vadd.f32 %v7317_v8, %v1598_v61  ;;  %v1832_v14 = vmul.f32 %v7462_v30, %v7331_v37  ;;  %6214 = vpow2.f32 %v5000_v33  ;;  %v1248_v30 = vpop.f32.mrf.mxu1 }
 0x1e0   : > { %v6193_v53 = vpop.eup %6192  ;;  %2092 = vrot.lane.b32.xlu1 %v7542_v43, %s6622_s9  ;;  %v1560_v27 = vadd.f32 %v7309_v2, %v1524_v17  ;;  %v1833_v42 = vmul.f32 %v7480_v52, %v7357_v6  ;;  %v1527_v46 = vadd.f32 %v5733_v9, %v1244_v45  ;;  %v1257_v37 = vadd.f32 %v5692_v41, %v7282_v1 }
 0x1e1   : > { %v7558_v28 = vpop.eup %6194  ;;  %v1754_v4 = vadd.f32 1.0, %v6193_v53  ;;  %6216 = vpow2.f32 %v4998_v0  ;;  %v5003_v12 = vmul.f32 -1.442695, %v7549_v48  ;;  %v1525_v61 = vadd.f32 %v1472_v11, %v1236_v19  ;;  %v1485_v53 = vpop.f32.mrf.mxu0 }
 0x1e2   : > { %v6197_v40 = vpop.eup %6196  ;;  %v1596_v60 = vmul.f32 %v7314_v21, %v1560_v27  ;;  %v7563_v33 = vpack.c.bf16 %v1833_v42, %v1832_v14  ;;  %v1563_v22 = vadd.f32 %v7309_v2, %v1527_v46  ;;  %6218 = vrcp.f32 %v1749_v35  ;;  %v5693_v14 = vpop.f32.mrf.mxu1 }
 0x1e3   : > { %v7566_v6 = vpop.eup %6198  ;;  %v1752_v52 = vadd.f32 1.0, %v6197_v40  ;;  %v1530_v9 = vadd.f32 %v5736_v38, %v1257_v37  ;;  %6220 = vpow2.f32 %v5003_v12  ;;  %v1561_v41 = vadd.f32 %v7309_v2, %v1525_v61 }
 0x1e4   : > { %v6201_v45 = vpop.eup %6200  ;;  %v7569_v17 = vadd.f32 %v7317_v8, %v1596_v60  ;;  %2090 = vrot.lane.b32.xlu0 %v7563_v33, %s6622_s9  ;;  %v1599_v1 = vmul.f32 %v7314_v21, %v1563_v22  ;;  %6222 = vrcp.f32 %v1754_v4  ;;  %v1249_v19 = vadd.f32 %v1248_v30, %v7284_v55 }
 0x1e5   : > { %v6203_v0 = vpop.eup %6202  ;;  %v1755_v11 = vadd.f32 1.0, %v6201_v45  ;;  %v1566_v35 = vadd.f32 %v7309_v2, %v1530_v9  ;;  %6224 = vrcp.f32 %v1752_v52  ;;  %v1597_v38 = vmul.f32 %v7314_v21, %v1561_v41 }
 0x1e6   : > { %v7577_v27 = vpop.eup %6204  ;;  %v5001_v42 = vmul.f32 -1.442695, %v7569_v17  ;;  %v7581_v46 = vadd.f32 %v7317_v8, %v1599_v1  ;;  %v1753_v12 = vadd.f32 1.0, %v6203_v0  ;;  %v9228_v37 = vshrl.u32 %v7542_v43, 16  ;;  %v5737_v1 = vpop.f32.mrf.mxu0 }
 0x1e7   : > { %v1602_v4 = vmul.f32 %v7314_v21, %v1566_v35  ;;  %v9227_v55 = vshll.u32 %v7542_v43, 16  ;;  %6226 = vrcp.f32 %v1755_v11  ;;  %v7589_v60 = vadd.f32 %v7317_v8, %v1597_v38  ;;  %v1251_v35 = vpop.f32.mrf.mxu1 }
 0x1e8   : > { %v6207_v30 = vpop.eup %6206  ;;  %v5004_v40 = vmul.f32 -1.442695, %v7581_v46  ;;  %v1260_v22 = vadd.f32 %v5693_v14, %v7288_v59  ;;  %6228 = vpow2.f32 %v5001_v42  ;;  %v1528_v11 = vadd.f32 %v1485_v53, %v1249_v19  ;;  %v7603_v59 = vld [vmem:[%s9221_s3 + $0x118] sm:$0xff]  }
 0x1e9   : > { %v7592_v61 = vpop.eup %6208  ;;  %v1758_v52 = vadd.f32 1.0, %v6207_v30  ;;  %v7595_v9 = vadd.f32 %v7317_v8, %v1602_v4  ;;  %v2017_v45 = vrot.slane %v9227_v55, 1  ;;  %v5002_v0 = vmul.f32 -1.442695, %v7589_v60  ;;  %5826 = vmatprep.subr.bf16.mxu1 %v7603_v59 }
 0x1ea   : > { %v6211_v41 = vpop.eup %6210  ;;  %6230 = vpow2.f32 %v5004_v40  ;;  %v1564_v30 = vadd.f32 %v7309_v2, %v1528_v11  ;;  %v1881_v19 = vshrl.u32 %v7563_v33, 16  ;;  %v1884_v53 = vshll.u32 %v7563_v33, 16 }
 0x1eb   : > { %6232 = vrcp.f32 %v1753_v12  ;;  %v1756_v14 = vadd.f32 1.0, %v6211_v41  ;;  %v5007_v42 = vmul.f32 -1.442695, %v7595_v9  ;;  %v2018_v38 = vor.u32 %v2017_v45, %v9228_v37  ;;  %v7608_v4 = vpop.eup %6212  ;;  %v1488_v45 = vpop.f32.mrf.mxu0 }
 0x1ec   : > { %6234 = vpow2.f32 %v5002_v0  ;;  %v6215_v40 = vpop.eup %6214  ;;  %v1252_v41 = vadd.f32 %v1251_v35, %v7296_v25  ;;  %v1531_v55 = vadd.f32 %v5737_v1, %v1260_v22  ;;  %v1600_v0 = vmul.f32 %v7314_v21, %v1564_v30 }
 0x1ed   : > { %6236 = vrcp.f32 %v1758_v52  ;;  %v2061_v12 = vsel %vm6771_vm2, %v2018_v38, 0  ;;  %v1759_v31 = vadd.f32 1.0, %v6215_v40  ;;  %v2015_v11 = vrot.slane %v1884_v53, 1 }
 0x1ee   : > { %v6217_v37 = vpop.eup %6216  ;;  %6238 = vpow2.f32 %v5007_v42  ;;  %2137 = vrot.lane.b32.xlu1 %v2061_v12, %s6623_s13  ;;  %v1567_v52 = vadd.f32 %v7309_v2, %v1531_v55  ;;  %v1838_v38 = vmul.f32 %v7491_v7, %v7371_v49  ;;  %v1839_v25 = vmul.f32 %v7513_v56, %v7386_v62 }
 0x1ef   : > { %6240 = vrcp.f32 %v1756_v14  ;;  %v7626_v22 = vpop.eup %6218  ;;  %v1757_v1 = vadd.f32 1.0, %v6217_v37  ;;  %v7629_v35 = vadd.f32 %v7317_v8, %v1600_v0  ;;  %v2016_v42 = vor.u32 %v2015_v11, %v1881_v19 }
 0x1f0   : > { %v1529_v30 = vadd.f32 %v1488_v45, %v1252_v41  ;;  %v6221_v40 = vpop.eup %6220  ;;  %6242 = vrcp.f32 %v1759_v31  ;;  %v1603_v55 = vmul.f32 %v7314_v21, %v1567_v52  ;;  %v7634_v14 = vpack.c.bf16 %v1839_v25, %v1838_v38 }
 0x1f1   : > { %v7636_v49 = vpop.eup %6222  ;;  %v1762_v7 = vadd.f32 1.0, %v6221_v40  ;;  %v5005_v62 = vmul.f32 -1.442695, %v7629_v35  ;;  %v2060_v56 = vsel %vm6771_vm2, %v2016_v42, 0  ;;  %v1836_v41 = vmul.f32 %v7499_v29, %v7379_v20 }
 0x1f2   : > { %v1565_v37 = vadd.f32 %v7309_v2, %v1529_v30  ;;  %v7642_v12 = vpop.eup %6224  ;;  %2135 = vrot.lane.b32.xlu0 %v2060_v56, %s6623_s13  ;;  %v7646_v31 = vadd.f32 %v7317_v8, %v1603_v55  ;;  %2096 = vrot.lane.b32.xlu1 %v7634_v14, %s6622_s9  ;;  %v1837_v45 = vmul.f32 %v7522_v50, %v7397_v36  ;;  %v1905_v0 = vshll.u32 %v7634_v14, 16 }
 0x1f3   : > { %6244 = vrcp.f32 %v1757_v1  ;;  %v1842_v11 = vmul.f32 %v7536_v5, %v7404_v58  ;;  %v1843_v52 = vmul.f32 %v7558_v28, %v7418_v32  ;;  %v1902_v20 = vshrl.u32 %v7634_v14, 16 }
 0x1f4   : > { %v1601_v2 = vmul.f32 %v7314_v21, %v1565_v37  ;;  %v6227_v38 = vpop.eup %6226  ;;  %6246 = vpow2.f32 %v5005_v62  ;;  %v5008_v25 = vmul.f32 -1.442695, %v7646_v31  ;;  %v7661_v42 = vpack.c.bf16 %v1837_v45, %v1836_v41 }
 0x1f5   : > { %v6229_v50 = vpop.eup %6228  ;;  %6248 = vrcp.f32 %v1762_v7  ;;  %v2021_v21 = vrot.slane %v1905_v0, 1  ;;  %v7669_v58 = vpack.c.bf16 %v1843_v52, %v1842_v11  ;;  %v1840_v28 = vmul.f32 %v7545_v18, %v7411_v10 }
 0x1f6   : > { %v7665_v36 = vadd.f32 %v7317_v8, %v1601_v2  ;;  %v1760_v32 = vadd.f32 1.0, %v6229_v50  ;;  %6250 = vpow2.f32 %v5008_v25  ;;  %2094 = vrot.lane.b32.xlu0 %v7661_v42, %s6622_s9  ;;  %v1898_v5 = vshll.u32 %v7661_v42, 16 }
 0x1f7   : > { %v6231_v29 = vpop.eup %6230  ;;  %v2022_v40 = vor.u32 %v2021_v21, %v1902_v20  ;;  %v1841_v55 = vmul.f32 %v7566_v6, %v7426_v3  ;;  %v1895_v62 = vshrl.u32 %v7661_v42, 16  ;;  %v1919_v6 = vshll.u32 %v7669_v58, 16 }
 0x1f8   : > { %v6233_v1 = vpop.eup %6232  ;;  %v1763_v30 = vadd.f32 1.0, %v6231_v29  ;;  %v5006_v8 = vmul.f32 -1.442695, %v7665_v36  ;;  %6252 = vrcp.f32 %v1760_v32  ;;  %v2019_v56 = vrot.slane %v1898_v5, 1 }
 0x1f9   : > { %v6235_v7 = vpop.eup %6234  ;;  %v2063_v18 = vsel %vm6771_vm2, %v2022_v40, 0  ;;  %v7686_v41 = vpack.c.bf16 %v1841_v55, %v1840_v28  ;;  %v1916_v11 = vshrl.u32 %v7669_v58, 16  ;;  %v2025_v50 = vrot.slane %v1919_v6, 1 }
 0x1fa   : > { %v6237_v37 = vpop.eup %6236  ;;  %6254 = vrcp.f32 %v1763_v30  ;;  %v1761_v10 = vadd.f32 1.0, %v6235_v7  ;;  %2141 = vrot.lane.b32.xlu1 %v2063_v18, %s6623_s13  ;;  %v2020_v3 = vor.u32 %v2019_v56, %v1895_v62  ;;  %v1846_v21 = vmul.f32 %v7577_v27, %v7432_v16 }
 0x1fb   : > { %v6239_v45 = vpop.eup %6238  ;;  %6256 = vpow2.f32 %v5006_v8  ;;  %v1912_v52 = vshll.u32 %v7686_v41, 16  ;;  %v1847_v29 = vmul.f32 %v7608_v4, %v7446_v24  ;;  %v1909_v30 = vshrl.u32 %v7686_v41, 16 }
 0x1fc   : > { %v6241_v2 = vpop.eup %6240  ;;  %6258 = vrcp.f32 %v1761_v10  ;;  %v2062_v25 = vsel %vm6771_vm2, %v2020_v3, 0  ;;  %v1766_v28 = vadd.f32 1.0, %v6239_v45  ;;  %v2026_v40 = vor.u32 %v2025_v50, %v1916_v11 }
 0x1fd   : > { %v6243_v32 = vpop.eup %6242  ;;  %2139 = vrot.lane.b32.xlu0 %v2062_v25, %s6623_s13  ;;  %v2023_v8 = vrot.slane %v1912_v52, 1  ;;  %v7710_v55 = vpack.c.bf16 %v1847_v29, %v1846_v21  ;;  %v1844_v16 = vmul.f32 %v7592_v61, %v7436_v23  ;;  %v1845_v24 = vmul.f32 %v7626_v22, %v7454_v47 }
 0x1fe   : > { %2100 = vrot.lane.b32.xlu1 %v7669_v58, %s6622_s9  ;;  %v1850_v4 = vmul.f32 %v7636_v49, %v7465_v57  ;;  %v1851_v7 = vmul.f32 %v6227_v38, %v7484_v63  ;;  %v1849_v56 = vmul.f32 %v6233_v1, %v7487_v13  ;;  %v2065_v18 = vsel %vm6771_vm2, %v2026_v40, 0 }
 0x1ff   : > { %v2024_v27 = vor.u32 %v2023_v8, %v1909_v30  ;;  %v7724_v45 = vpack.c.bf16 %v1845_v24, %v1844_v16  ;;  %v1933_v23 = vshll.u32 %v7710_v55, 16  ;;  %v1848_v47 = vmul.f32 %v7642_v12, %v7468_v51 }
 0x200   : > { %v6245_v10 = vpop.eup %6244  ;;  %v7731_v57 = vpack.c.bf16 %v1851_v7, %v1850_v4  ;;  %v1930_v22 = vshrl.u32 %v7710_v55, 16  ;;  %6260 = vrcp.f32 %v1766_v28  ;;  %v1854_v40 = vmul.f32 %v6237_v37, %v7502_v34 }
 0x201   : > { %v6247_v61 = vpop.eup %6246  ;;  %2098 = vrot.lane.b32.xlu0 %v7686_v41, %s6622_s9  ;;  %v2064_v13 = vsel %vm6771_vm2, %v2024_v27, 0  ;;  %v2029_v49 = vrot.slane %v1933_v23, 1  ;;  %v7739_v38 = vpack.c.bf16 %v1849_v56, %v1848_v47  ;;  %v1926_v12 = vshll.u32 %v7724_v45, 16 }
 0x202   : > { %v6249_v63 = vpop.eup %6248  ;;  %2145 = vrot.lane.b32.xlu1 %v2065_v18, %s6623_s13  ;;  %v1947_v1 = vshll.u32 %v7731_v57, 16  ;;  %v1764_v3 = vadd.f32 1.0, %v6247_v61  ;;  %v1923_v29 = vshrl.u32 %v7724_v45, 16  ;;  %v1855_v27 = vmul.f32 %v6243_v32, %v7526_v26 }
 0x203   : > { %v6251_v51 = vpop.eup %6250  ;;  %v2030_v50 = vor.u32 %v2029_v49, %v1930_v22  ;;  %v2027_v8 = vrot.slane %v1926_v12, 1  ;;  %v1940_v24 = vshll.u32 %v7739_v38, 16  ;;  %v1852_v18 = vmul.f32 %v6241_v2, %v7516_v44 }
 0x204   : > { %v1767_v25 = vadd.f32 1.0, %v6251_v51  ;;  %v2033_v28 = vrot.slane %v1947_v1, 1  ;;  %v1853_v34 = vmul.f32 %v6245_v10, %v7539_v54  ;;  %v7758_v61 = vpack.c.bf16 %v1855_v27, %v1854_v40 }
 0x205   : > { %v6253_v21 = vpop.eup %6252  ;;  %2143 = vrot.lane.b32.xlu0 %v2064_v13, %s6623_s13  ;;  %v2067_v7 = vsel %vm6771_vm2, %v2030_v50, 0  ;;  %v2028_v56 = vor.u32 %v2027_v8, %v1923_v29  ;;  %v1944_v13 = vshrl.u32 %v7731_v57, 16  ;;  %v2031_v26 = vrot.slane %v1940_v24, 1 }
 0x206   : > { %6262 = vrcp.f32 %v1767_v25  ;;  %2104 = vrot.lane.b32.xlu1 %v7710_v55, %s6622_s9  ;;  %v7765_v32 = vpack.c.bf16 %v1853_v34, %v1852_v18  ;;  %v9247_v44 = vshrl.u32 %v7542_v43, 16  ;;  %v1883_v2 = vrot.slane %v1881_v19, 7 }
 0x207   : > { %v6255_v16 = vpop.eup %6254  ;;  %6264 = vrcp.f32 %v1764_v3  ;;  %v2066_v10 = vsel %vm6771_vm2, %v2028_v56, 0  ;;  %v2034_v51 = vor.u32 %v2033_v28, %v1944_v13  ;;  %v1937_v3 = vshrl.u32 %v7739_v38, 16 }
 0x208   : > { %v6257_v4 = vpop.eup %6256  ;;  %v1859_v49 = vmul.f32 %v6255_v16, %v7581_v46  ;;  %v1890_v54 = vrot.slane %v9247_v44, 7  ;;  %v1961_v25 = vshll.u32 %v7758_v61, 16  ;;  %v1858_v50 = vmul.f32 %v6249_v63, %v7549_v48 }
 0x209   : > { %v6259_v37 = vpop.eup %6258  ;;  %v1765_v47 = vadd.f32 1.0, %v6257_v4  ;;  %2102 = vrot.lane.b32.xlu0 %v7724_v45, %s6622_s9  ;;  %v1904_v46 = vrot.slane %v1902_v20, 7  ;;  %v1954_v8 = vshll.u32 %v7765_v32, 16  ;;  %v1856_v19 = vmul.f32 %v6253_v21, %v7569_v17 }
 0x20a   : > { %2149 = vrot.lane.b32.xlu1 %v2067_v7, %s6623_s13  ;;  %v1857_v40 = vmul.f32 %v6259_v37, %v7589_v60  ;;  %v1897_v16 = vrot.slane %v1895_v62, 7  ;;  %v1918_v28 = vrot.slane %v1916_v11, 7  ;;  %v2032_v27 = vor.u32 %v2031_v26, %v1937_v3 }
 0x20b   : > { %6266 = vrcp.f32 %v1765_v47  ;;  %v7788_v4 = vpack.c.bf16 %v1859_v49, %v1858_v50  ;;  %v1958_v48 = vshrl.u32 %v7758_v61, 16  ;;  %v1951_v17 = vshrl.u32 %v7765_v32, 16 }
 0x20c   : > { %v7794_v20 = vpack.c.bf16 %v1857_v40, %v1856_v19  ;;  %v9248_v60 = vshll.u32 %v7542_v43, 16  ;;  %v1911_v11 = vrot.slane %v1909_v30, 7  ;;  %v2069_v63 = vsel %vm6771_vm2, %v2034_v51, 0 }
 0x20d   : > { %2147 = vrot.lane.b32.xlu0 %v2066_v10, %s6623_s13  ;;  %v2037_v21 = vrot.slane %v1961_v25, 1  ;;  %v7806_v7 = vor.u32 %v1884_v53, %v1883_v2  ;;  %v1932_v56 = vrot.slane %v1930_v22, 7  ;;  %v1925_v18 = vrot.slane %v1923_v29, 7  ;;  %v6261_v47 = vpop.eup %6260 }
 0x20e   : > { %2108 = vrot.lane.b32.xlu1 %v7731_v57, %s6622_s9  ;;  %v7798_v62 = vor.u32 %v9248_v60, %v1890_v54  ;;  %v1946_v34 = vrot.slane %v1944_v13, 7  ;;  %v2035_v37 = vrot.slane %v1954_v8, 1  ;;  %v1939_v43 = vrot.slane %v1937_v3, 7 }
 0x20f   : > { %v1972_v26 = vshrl.u32 %v7788_v4, 16  ;;  %v1965_v30 = vshrl.u32 %v7794_v20, 16  ;;  %v7814_v49 = vor.u32 %v1905_v0, %v1904_v46  ;;  %v2068_v33 = vsel %vm6771_vm2, %v2032_v27, 0 }
 0x210   : > { %v1960_v53 = vrot.slane %v1958_v48, 7  ;;  %v1953_v22 = vrot.slane %v1951_v17, 7  ;;  %v7821_v29 = vor.u32 %v1898_v5, %v1897_v16  ;;  %v2038_v44 = vor.u32 %v2037_v21, %v1958_v48 }
 0x211   : > { %2106 = vrot.lane.b32.xlu0 %v7739_v38, %s6622_s9  ;;  %v1975_v54 = vshll.u32 %v7788_v4, 16  ;;  %v7826_v14 = vor.u32 %v1919_v6, %v1918_v28  ;;  %v7830_v0 = vor.u32 %v1912_v52, %v1911_v11  ;;  %v2036_v2 = vor.u32 %v2035_v37, %v1951_v17 }
 0x212   : > { %2153 = vrot.lane.b32.xlu1 %v2069_v63, %s6623_s13  ;;  %v1862_v10 = vmul.f32 %v6261_v47, %v7595_v9  ;;  %v7836_v42 = vor.u32 %v1933_v23, %v1932_v56  ;;  %v1974_v3 = vrot.slane %v1972_v26, 7  ;;  %v1967_v58 = vrot.slane %v1965_v30, 7 }
 0x213   : > { %v6263_v13 = vpop.eup %6262  ;;  %v7841_v6 = vor.u32 %v1926_v12, %v1925_v18  ;;  %v7845_v41 = vor.u32 %v1947_v1, %v1946_v34  ;;  %v1968_v9 = vshll.u32 %v7794_v20, 16  ;;  %v7852_v52 = vor.u32 %v1940_v24, %v1939_v43 }
 0x214   : > { %v1863_v51 = vmul.f32 %v6263_v13, %v7646_v31  ;;  %v6265_v5 = vpop.eup %6264  ;;  %v2071_v45 = vsel %vm6771_vm2, %v2038_v44, 0  ;;  %v2041_v23 = vrot.slane %v1975_v54, 1  ;;  %v7856_v12 = vor.u32 %v1961_v25, %v1960_v53 }
 0x215   : > { %2151 = vrot.lane.b32.xlu0 %v2068_v33, %s6623_s13  ;;  %v7858_v57 = vor.u32 %v1954_v8, %v1953_v22  ;;  %v1860_v1 = vmul.f32 %v6265_v5, %v7629_v35  ;;  %v2070_v38 = vsel %vm6771_vm2, %v2036_v2, 0  ;;  %v7866_v24 = vor.u32 %v1975_v54, %v1974_v3  ;;  %v6117_v22 = vld [vmem:[%s9221_s3 + $0x110] sm:$0xff]   ;;  %v6119_v5 = vld [vmem:[%s9221_s3 + $0x100] sm:$0xff]  }
 0x216   : > { %2112 = vrot.lane.b32.xlu1 %v7758_v61, %s6622_s9  ;;  %v1879_v31 = vpack.c.bf16 %v1863_v51, %v1862_v10  ;;  %v7868_v46 = vor.u32 %v1968_v9, %v1967_v58  ;;  %v2039_v25 = vrot.slane %v1968_v9, 1  ;;  %v2042_v35 = vor.u32 %v2041_v23, %v1972_v26 }
 0x217   : > { %v2000_v47 = vsel %vm7017_vm5, 0, %v7806_v7  ;;  %v2001_v43 = vsel %vm7017_vm5, 0, %v7798_v62  ;;  %v6118_v7 = vld [vmem:[%s9221_s3 + $0x108] sm:$0xff]   ;;  %v2002_v2 = vsel %vm7017_vm5, 0, %v7821_v29  ;;  %v2003_v10 = vsel %vm7017_vm5, 0, %v7814_v49  ;;  %v6120_v49 = vld [vmem:[%s9221_s3 + $0xf8] sm:$0xff]  }
 0x218   : > { %v6267_v55 = vpop.eup %6266  ;;  %v2254_v50 = vshrl.u32 %v1879_v31, 16  ;;  %v2257_v40 = vshll.u32 %v1879_v31, 16  ;;  %v2073_v17 = vsel %vm6771_vm2, %v2042_v35, 0  ;;  %v2005_v23 = vsel %vm7017_vm5, 0, %v7826_v14 }
 0x219   : > { %v1861_v61 = vmul.f32 %v6267_v55, %v7665_v36  ;;  %2110 = vrot.lane.b32.xlu0 %v7765_v32, %s6622_s9  ;;  %v2040_v32 = vor.u32 %v2039_v25, %v1965_v30  ;;  %v2007_v35 = vsel %vm7017_vm5, 0, %v7836_v42 }
 0x21a   : > { %2157 = vrot.lane.b32.xlu1 %v2071_v45, %s6623_s13  ;;  %v2256_v19 = vrot.slane %v2254_v50, 7  ;;  %v2262_v63 = vrot.slane %v2257_v40, 1  ;;  %v2004_v45 = vsel %vm7017_vm5, 0, %v7830_v0 }
 0x21b   : > { %v1878_v8 = vpack.c.bf16 %v1861_v61, %v1860_v1  ;;  %v2072_v21 = vsel %vm6771_vm2, %v2040_v32, 0 }
 0x21c   : > { %v7871_v28 = vor.u32 %v2257_v40, %v2256_v19  ;;  %v2263_v56 = vor.u32 %v2262_v63, %v2254_v50  ;;  %v6121_v50 = vld [vmem:[%s9221_s3 + $0xf0] sm:$0xff]   ;;  %v2006_v40 = vsel %vm7017_vm5, 0, %v7841_v6  ;;  %v2009_v63 = vsel %vm7017_vm5, 0, %v7845_v41 }
 0x21d   : > { %v1979_v16 = vshrl.u32 %v1878_v8, 16  ;;  %v1982_v36 = vshll.u32 %v1878_v8, 16  ;;  %2155 = vrot.lane.b32.xlu0 %v2070_v38, %s6623_s13 }
 0x21e   : > { %2116 = vrot.lane.b32.xlu1 %v7788_v4, %s6622_s9  ;;  %v2265_v18 = vsel %vm6771_vm2, %v2263_v56, 0 }
 0x21f   : > { %v1981_v27 = vrot.slane %v1979_v16, 7  ;;  %v2043_v48 = vrot.slane %v1982_v36, 1 }
 0x221   : > { %v2044_v60 = vor.u32 %v2043_v48, %v1979_v16  ;;  %v7878_v11 = vor.u32 %v1982_v36, %v1981_v27  ;;  %2114 = vrot.lane.b32.xlu0 %v7794_v20, %s6622_s9 }
 0x222   : > { %2161 = vrot.lane.b32.xlu1 %v2073_v17, %s6623_s13 }
 0x223   : > { %v2074_v4 = vsel %vm6771_vm2, %v2044_v60, 0  ;;  %v2008_v60 = vsel %vm7017_vm5, 0, %v7852_v52 }
 0x225   : > { %2159 = vrot.lane.b32.xlu0 %v2072_v21, %s6623_s13 }
 0x226   : > { %2163 = vrot.lane.b32.xlu1 %v2074_v4, %s6623_s13 }
 0x229   : > { %2118 = vrot.lane.b32.xlu0 %v1878_v8, %s6622_s9 }
 0x22a   : > { %2270 = vrot.lane.b32.xlu1 %v2265_v18, %s6623_s13 }
 0x22d   : > { %2267 = vrot.lane.b32.xlu0 %v1879_v31, %s6622_s9 }
 0x252   : > { %v2093_v20 = vpop.permute.xlu1 %2092 }
 0x253   : > { %v2170_v33 = vsel %vm699_vm6, %v2001_v43, %v2093_v20 }
 0x256   : > { %v2091_v34 = vpop.permute.xlu0 %2090 }
 0x257   : > { %v2167_v26 = vsel %vm699_vm6, %v2000_v47, %v2091_v34  ;;  %v2011_v47 = vsel %vm7017_vm5, 0, %v7856_v12 }
 0x260   : > { %v2138_v37 = vpop.permute.xlu1 %2137 }
 0x261   : > { %v7907_v13 = vsel %vm748_vm7, %v2170_v33, %v2138_v37  ;;  %v2010_v37 = vsel %vm7017_vm5, 0, %v7858_v57 }
 0x264   : > { %v2136_v30 = vpop.permute.xlu0 %2135  ;;  %v2097_v44 = vpop.permute.xlu1 %2096 }
 0x265   : > { %v2211_v53 = vsel %vm748_vm7, %v2167_v26, %v2136_v30  ;;  %v2176_v3 = vsel %vm699_vm6, %v2003_v10, %v2097_v44  ;;  %v2012_v44 = vsel %vm7017_vm5, 0, %v7868_v46 }
 0x266   : > { %5750 = vmatprep.mubr.msk.bf16.mxu1 %vm870_vm8, %v2211_v53  ;;  %5795 = vmatmul.mubr.msk.bf16.vlgmr.msra.gmra.mxu0 %vm870_vm8, %v2211_v53 }
 0x267   : > { %5751 = vmatmul.mubr.msk.bf16.vlgmr.msra.gmra.mxu1 %vm870_vm8, %v7907_v13  ;;  %5798 = vmatprep.mubr.msk.bf16.mxu0 %vm870_vm8, %v7907_v13 }
 0x268   : > { %5827 = vmatpush3.bf16.msra.mxu1 %v7603_v59  ;;  %v2095_v62 = vpop.permute.xlu0 %2094  ;;  %5871 = vmatpush3.bf16.msra.mxu0 %v6122_v15 }
 0x269   : > { %5828 = vmatprep.subr.bf16.mxu1 %v6117_v22  ;;  %v2173_v51 = vsel %vm699_vm6, %v2002_v2, %v2095_v62  ;;  %v2013_v62 = vsel %vm7017_vm5, 0, %v7866_v24  ;;  %v2014_v24 = vsel %vm7017_vm5, 0, %v7878_v11 }
 0x26c   : > { %v2142_v54 = vpop.permute.xlu1 %2141  ;;  %5829 = vmatpush3.bf16.msra.mxu1 %v6117_v22 }
 0x26d   : > { %5830 = vmatprep.subr.bf16.mxu1 %v6118_v7  ;;  %v7934_v29 = vsel %vm748_vm7, %v2176_v3, %v2142_v54 }
 0x26f   : > { %v2140_v59 = vpop.permute.xlu0 %2139 }
 0x270   : > { %v7931_v58 = vsel %vm748_vm7, %v2173_v51, %v2140_v59  ;;  %v2101_v9 = vpop.permute.xlu1 %2100  ;;  %5831 = vmatpush3.bf16.msra.mxu1 %v6118_v7 }
 0x271   : > { %5754 = vmatprep.mubr.msk.bf16.mxu1 %vm870_vm8, %v7931_v58  ;;  %5799 = vmatmul.mubr.msk.bf16.gmra.mxu0 %vm870_vm8, %v7931_v58  ;;  %v2182_v38 = vsel %vm699_vm6, %v2005_v23, %v2101_v9 }
 0x272   : > { %5755 = vmatmul.mubr.msk.bf16.gmra.mxu1 %vm870_vm8, %v7934_v29  ;;  %5802 = vmatprep.mubr.msk.bf16.mxu0 %vm870_vm8, %v7934_v29 }
 0x273   : > { %v2099_v31 = vpop.permute.xlu0 %2098  ;;  %5832 = vmatprep.subr.bf16.mxu1 %v6119_v5 }
 0x274   : > { %v2146_v55 = vpop.permute.xlu1 %2145  ;;  %5833 = vmatpush3.bf16.msra.mxu1 %v6119_v5  ;;  %v2179_v1 = vsel %vm699_vm6, %v2004_v45, %v2099_v31 }
 0x275   : > { %5834 = vmatprep.subr.bf16.mxu1 %v6120_v49  ;;  %v7962_v0 = vsel %vm748_vm7, %v2182_v38, %v2146_v55 }
 0x277   : > { %v2144_v61 = vpop.permute.xlu0 %2143 }
 0x278   : > { %v7959_v25 = vsel %vm748_vm7, %v2179_v1, %v2144_v61  ;;  %v2105_v8 = vpop.permute.xlu1 %2104  ;;  %5835 = vmatpush3.bf16.msra.mxu1 %v6120_v49  ;;  %v2261_v49 = vsel %vm7017_vm5, 0, %v7871_v28  ;;  %v9249_v28 = vld [vmem:[#allocation10_spill] sm:$0xff] }
 0x279   : > { %5758 = vmatprep.mubr.msk.bf16.mxu1 %vm870_vm8, %v7959_v25  ;;  %5803 = vmatmul.mubr.msk.bf16.gmra.mxu0 %vm870_vm8, %v7959_v25  ;;  %v2188_v32 = vsel %vm699_vm6, %v2007_v35, %v2105_v8 }
 0x27a   : > { %5759 = vmatmul.mubr.msk.bf16.gmra.mxu1 %vm870_vm8, %v7962_v0  ;;  %5806 = vmatprep.mubr.msk.bf16.mxu0 %vm870_vm8, %v7962_v0 }
 0x27b   : > { %v2103_v14 = vpop.permute.xlu0 %2102  ;;  %5836 = vmatprep.subr.bf16.mxu1 %v6121_v50 }
 0x27c   : > { %v2150_v19 = vpop.permute.xlu1 %2149  ;;  %5837 = vmatpush3.bf16.msra.mxu1 %v6121_v50  ;;  %v2185_v16 = vsel %vm699_vm6, %v2006_v40, %v2103_v14 }
 0x27d   : > { %v7984_v17 = vsel %vm748_vm7, %v2188_v32, %v2150_v19 }
 0x27f   : > { %v2148_v36 = vpop.permute.xlu0 %2147 }
 0x280   : > { %v7981_v27 = vsel %vm748_vm7, %v2185_v16, %v2148_v36  ;;  %v2109_v48 = vpop.permute.xlu1 %2108 }
 0x281   : > { %5762 = vmatprep.mubr.msk.bf16.mxu1 %vm870_vm8, %v7981_v27  ;;  %5807 = vmatmul.mubr.msk.bf16.gmra.mxu0 %vm870_vm8, %v7981_v27  ;;  %v2194_v56 = vsel %vm699_vm6, %v2009_v63, %v2109_v48 }
 0x282   : > { %5763 = vmatmul.mubr.msk.bf16.gmra.mxu1 %vm870_vm8, %v7984_v17  ;;  %5810 = vmatprep.mubr.msk.bf16.mxu0 %vm870_vm8, %v7984_v17 }
 0x283   : > { %v2107_v42 = vpop.permute.xlu0 %2106 }
 0x284   : > { %v2154_v6 = vpop.permute.xlu1 %2153  ;;  %v2191_v21 = vsel %vm699_vm6, %v2008_v60, %v2107_v42 }
 0x285   : > { %v2229_v34 = vsel %vm748_vm7, %v2194_v56, %v2154_v6 }
 0x287   : > { %v2152_v4 = vpop.permute.xlu0 %2151 }
 0x288   : > { %v2227_v18 = vsel %vm748_vm7, %v2191_v21, %v2152_v4  ;;  %v2113_v20 = vpop.permute.xlu1 %2112 }
 0x289   : > { %5766 = vmatprep.mubr.msk.bf16.mxu1 %vm870_vm8, %v2227_v18  ;;  %5811 = vmatmul.mubr.msk.bf16.gmra.mxu0 %vm870_vm8, %v2227_v18  ;;  %v2200_v30 = vsel %vm699_vm6, %v2011_v47, %v2113_v20 }
 0x28a   : > { %5767 = vmatmul.mubr.msk.bf16.gmra.mxu1 %vm870_vm8, %v2229_v34  ;;  %5814 = vmatprep.mubr.msk.bf16.mxu0 %vm870_vm8, %v2229_v34 }
 0x28b   : > { %v2111_v52 = vpop.permute.xlu0 %2110 }
 0x28c   : > { %v2158_v41 = vpop.permute.xlu1 %2157  ;;  %v2197_v43 = vsel %vm699_vm6, %v2010_v37, %v2111_v52 }
 0x28d   : > { %v2233_v22 = vsel %vm748_vm7, %v2200_v30, %v2158_v41 }
 0x28f   : > { %v2156_v26 = vpop.permute.xlu0 %2155 }
 0x290   : > { %v2231_v33 = vsel %vm748_vm7, %v2197_v43, %v2156_v26  ;;  %v2117_v53 = vpop.permute.xlu1 %2116 }
 0x291   : > { %5770 = vmatprep.mubr.msk.bf16.mxu1 %vm870_vm8, %v2231_v33  ;;  %5815 = vmatmul.mubr.msk.bf16.gmra.mxu0 %vm870_vm8, %v2231_v33  ;;  %v2206_v2 = vsel %vm699_vm6, %v2013_v62, %v2117_v53 }
 0x292   : > { %5771 = vmatmul.mubr.msk.bf16.gmra.mxu1 %vm870_vm8, %v2233_v22  ;;  %5818 = vmatprep.mubr.msk.bf16.mxu0 %vm870_vm8, %v2233_v22 }
 0x293   : > { %v2115_v57 = vpop.permute.xlu0 %2114 }
 0x294   : > { %v2162_v12 = vpop.permute.xlu1 %2161  ;;  %v2203_v7 = vsel %vm699_vm6, %v2012_v44, %v2115_v57 }
 0x295   : > { %v2237_v59 = vsel %vm748_vm7, %v2206_v2, %v2162_v12 }
 0x297   : > { %v2160_v54 = vpop.permute.xlu0 %2159 }
 0x298   : > { %v2235_v10 = vsel %vm748_vm7, %v2203_v7, %v2160_v54  ;;  %v2164_v51 = vpop.permute.xlu1 %2163 }
 0x299   : > { %5774 = vmatprep.mubr.msk.bf16.mxu1 %vm870_vm8, %v2235_v10  ;;  %5819 = vmatmul.mubr.msk.bf16.gmra.mxu0 %vm870_vm8, %v2235_v10 }
 0x29a   : > { %5775 = vmatmul.mubr.msk.bf16.gmra.mxu1 %vm870_vm8, %v2237_v59  ;;  %5822 = vmatprep.mubr.msk.bf16.mxu0 %vm870_vm8, %v2237_v59 }
 0x29b   : > { %v2119_v46 = vpop.permute.xlu0 %2118 }
 0x29c   : > { %v2209_v5 = vsel %vm699_vm6, %v2014_v24, %v2119_v46  ;;  %v2271_v9 = vpop.permute.xlu1 %2270 }
 0x29d   : > { %v2239_v3 = vsel %vm748_vm7, %v2209_v5, %v2164_v51 }
 0x29e   : > { %5778 = vmatprep.mubr.msk.bf16.mxu1 %vm870_vm8, %v2239_v3 }
 0x29f   : > { %v2268_v31 = vpop.permute.xlu0 %2267 }
 0x2a0   : > { %v2274_v55 = vsel %vm699_vm6, %v2261_v49, %v2268_v31  ;;  %v6524_v49 = vld [vmem:[%s9222_s4] sm:$0x3] }
 0x2a1   : > { %5823 = vmatmul.mubr.msk.bf16.gmra.mxu0 %vm870_vm8, %v2239_v3  ;;  %v2276_v45 = vsel %vm748_vm7, %v2274_v55, %v2271_v9 }
 0x2a2   : > { %5779 = vmatmul.mubr.msk.bf16.gmra.mxu1 %vm870_vm8, %v2276_v45 }
 0x2a3   : > { %5838 = vmatprep.mubr.msk.bf16.mxu1 %vm870_vm8, %v7907_v13 }
 0x2aa   : > { %5839 = vmatmul.mubr.msk.bf16.vlgmr.msra.gmra.mxu1 %vm870_vm8, %v7931_v58 }
 0x2ab   : > { %5842 = vmatprep.mubr.msk.bf16.mxu1 %vm870_vm8, %v7934_v29 }
 0x2b2   : > { %5843 = vmatmul.mubr.msk.bf16.gmra.mxu1 %vm870_vm8, %v7959_v25 }
 0x2b3   : > { %5846 = vmatprep.mubr.msk.bf16.mxu1 %vm870_vm8, %v7962_v0 }
 0x2ba   : > { %5847 = vmatmul.mubr.msk.bf16.gmra.mxu1 %vm870_vm8, %v7981_v27 }
 0x2bb   : > { %5850 = vmatprep.mubr.msk.bf16.mxu1 %vm870_vm8, %v7984_v17 }
 0x2c2   : > { %5851 = vmatmul.mubr.msk.bf16.gmra.mxu1 %vm870_vm8, %v2227_v18 }
 0x2c3   : > { %5854 = vmatprep.mubr.msk.bf16.mxu1 %vm870_vm8, %v2229_v34 }
 0x2ca   : > { %5855 = vmatmul.mubr.msk.bf16.gmra.mxu1 %vm870_vm8, %v2231_v33 }
 0x2cb   : > { %5858 = vmatprep.mubr.msk.bf16.mxu1 %vm870_vm8, %v2233_v22 }
 0x2d2   : > { %5859 = vmatmul.mubr.msk.bf16.gmra.mxu1 %vm870_vm8, %v2235_v10 }
 0x2d3   : > { %5862 = vmatprep.mubr.msk.bf16.mxu1 %vm870_vm8, %v2237_v59  ;;  %v9252_v59 = vld [vmem:[#allocation11_spill] sm:$0xff] }
 0x2d4   : > { %v2960_v24 = vsub.s32 1, %v9252_v59  ;;  %v6525_v59 = vld [vmem:[%s9219_s1] sm:$0x3] }
 0x2d6   : > { %v8175_v31 = vrot.slane %v6524_v49, %v2960_v24  ;;  %v8180_v39 = vrot.slane %v6525_v59, %v2960_v24  ;;  %v6526_v49 = vld [vmem:[%s9220_s2] sm:$0x3] }
 0x2da   : > { %5863 = vmatmul.mubr.msk.bf16.gmra.mxu1 %vm870_vm8, %v2239_v3 }
 0x2db   : > { %5866 = vmatprep.mubr.msk.bf16.mxu1 %vm870_vm8, %v2276_v45 }
 0x2e2   : > { %5867 = vmatmul.mubr.msk.bf16.gmra.mxu1 %vm870_vm8, %v9249_v28 }
 0x2e3   : > { %5926 = vmatprep.mubr.msk.bf16.mxu1 %vm870_vm8, %v9249_v28 }
 0x326   : > { %v5796_v11 = vpop.f32.mrf.mxu0 }
 0x327   : > { %v5752_v13 = vpop.f32.mrf.mxu1 }
 0x328   : > { %v2589_v58 = vpop.f32.mrf.mxu0  ;;  %v2598_v9 = vadd.f32 %v5796_v11, %v5752_v13 }
 0x329   : > { %v2392_v29 = vpop.f32.mrf.mxu1 }
 0x32a   : > { %v5797_v23 = vpop.f32.mrf.mxu0  ;;  %v2590_v45 = vadd.f32 %v2589_v58, %v2392_v29 }
 0x32b   : > { %v5753_v1 = vpop.f32.mrf.mxu1 }
 0x32c   : > { %v8075_v61 = vpop.f32.mrf.mxu0  ;;  %v2601_v11 = vadd.f32 %v5797_v23, %v5753_v1  ;;  %v6123_v1 = vld [vmem:[#allocation2 + $0x50] sm:$0xff]  }
 0x32d   : > { %v8077_v50 = vpop.f32.mrf.mxu1  ;;  %5872 = vmatprep.subr.bf16.mxu0 %v6123_v1 }
 0x32e   : > { %5873 = vmatpush3.bf16.msra.mxu0 %v6123_v1 }
 0x331   : > { %v8079_v38 = vpop.f32.mrf.mxu0 }
 0x332   : > { %v8081_v25 = vpop.f32.mrf.mxu1 }
 0x333   : > { %v8083_v8 = vpop.f32.mrf.mxu0 }
 0x334   : > { %v8085_v0 = vpop.f32.mrf.mxu1 }
 0x335   : > { %v8087_v14 = vpop.f32.mrf.mxu0 }
 0x336   : > { %v8089_v19 = vpop.f32.mrf.mxu1 }
 0x337   : > { %v8091_v40 = vpop.f32.mrf.mxu0 }
 0x338   : > { %v8093_v35 = vpop.f32.mrf.mxu1 }
 0x339   : > { %v8095_v16 = vpop.f32.mrf.mxu0 }
 0x33a   : > { %v8097_v36 = vpop.f32.mrf.mxu1 }
 0x33b   : > { %v8099_v32 = vpop.f32.mrf.mxu0 }
 0x33c   : > { %v8101_v27 = vpop.f32.mrf.mxu1 }
 0x33d   : > { %v8103_v48 = vpop.f32.mrf.mxu0 }
 0x33e   : > { %v8105_v17 = vpop.f32.mrf.mxu1 }
 0x33f   : > { %v8107_v42 = vpop.f32.mrf.mxu0 }
 0x340   : > { %v8109_v6 = vpop.f32.mrf.mxu1 }
 0x341   : > { %v8113_v63 = vpop.f32.mrf.mxu0 }
 0x342   : > { %v8111_v60 = vpop.f32.mrf.mxu1 }
 0x343   : > { %v8119_v56 = vpop.f32.mrf.mxu0 }
 0x344   : > { %v8115_v21 = vpop.f32.mrf.mxu1 }
 0x345   : > { %v8125_v34 = vpop.f32.mrf.mxu0 }
 0x346   : > { %v8117_v4 = vpop.f32.mrf.mxu1 }
 0x347   : > { %v8131_v37 = vpop.f32.mrf.mxu0 }
 0x348   : > { %v8121_v18 = vpop.f32.mrf.mxu1 }
 0x349   : > { %v8137_v26 = vpop.f32.mrf.mxu0 }
 0x34a   : > { %v8123_v20 = vpop.f32.mrf.mxu1 }
 0x34b   : > { %v8143_v53 = vpop.f32.mrf.mxu0 }
 0x34c   : > { %v8127_v52 = vpop.f32.mrf.mxu1 }
 0x34d   : > { %v8149_v12 = vpop.f32.mrf.mxu0 }
 0x34e   : > { %v8129_v41 = vpop.f32.mrf.mxu1 }
 0x34f   : > { %v8155_v7 = vpop.f32.mrf.mxu0 }
 0x350   : > { %v8133_v47 = vpop.f32.mrf.mxu1 }
 0x351   : > { %v8161_v10 = vpop.f32.mrf.mxu0 }
 0x352   : > { %v8135_v43 = vpop.f32.mrf.mxu1 }
 0x353   : > { %v8168_v5 = vpop.f32.mrf.mxu0 }
 0x354   : > { %v8139_v30 = vpop.f32.mrf.mxu1 }
 0x356   : > { %v8141_v33 = vpop.f32.mrf.mxu1 }
 0x358   : > { %v8145_v22 = vpop.f32.mrf.mxu1 }
 0x35a   : > { %v8147_v57 = vpop.f32.mrf.mxu1 }
 0x35c   : > { %v8151_v44 = vpop.f32.mrf.mxu1 }
 0x35e   : > { %v8153_v62 = vpop.f32.mrf.mxu1 }
 0x360   : > { %v8157_v54 = vpop.f32.mrf.mxu1 }
 0x362   : > { %v8159_v2 = vpop.f32.mrf.mxu1 }
 0x363   : > { %9250 = vst [vmem:[#allocation12_spill] sm:$0xff] %v8159_v2  ;;  %v2614_v2 = vadd.f32 %v8079_v38, %v8081_v25  ;;  %v2609_v38 = vadd.f32 %v8091_v40, %v8093_v35  ;;  %v2630_v25 = vadd.f32 %v8095_v16, %v8097_v36  ;;  %v6125_v40 = vld [vmem:[#allocation2 + $0x40] sm:$0xff]   ;;  %v8223_v35 = vadd.f32 %v8103_v48, %v8105_v17 }
 0x364   : > { %v8163_v51 = vpop.f32.mrf.mxu1  ;;  %v8227_v16 = vadd.f32 %v8107_v42, %v8109_v6  ;;  %v8231_v36 = vadd.f32 %v8113_v63, %v8111_v60  ;;  %v8242_v42 = vadd.f32 %v8119_v56, %v8115_v21  ;;  %v8246_v6 = vadd.f32 %v8125_v34, %v8117_v4  ;;  %v6128_v21 = vld [vmem:[#allocation2 + $0x38] sm:$0xff]  }
 0x365   : > { %9251 = vst [vmem:[#allocation13_spill] sm:$0xff] %v8163_v51  ;;  %v8188_v51 = vrot.slane %v6526_v49, %v2960_v24  ;;  %v2606_v24 = vadd.f32 %v8083_v8, %v8085_v0  ;;  %v8213_v8 = vadd.f32 %v8099_v32, %v8101_v27  ;;  %v8255_v56 = vadd.f32 %v8131_v37, %v8121_v18 }
 0x366   : > { %v8166_v46 = vpop.f32.mrf.mxu1  ;;  %v8259_v4 = vadd.f32 %v8137_v26, %v8123_v20  ;;  %v8267_v18 = vadd.f32 %v8143_v53, %v8127_v52  ;;  %v8271_v20 = vadd.f32 %v8149_v12, %v8129_v41  ;;  %v8281_v52 = vadd.f32 %v8155_v7, %v8133_v47 }
 0x367   : > { %9253 = vst [vmem:[#allocation11_spill] sm:$0xff] %v8166_v46  ;;  %v8182_v46 = vpop.f32.mrf.mxu0  ;;  %v8285_v41 = vadd.f32 %v8161_v10, %v8135_v43  ;;  %v8299_v43 = vadd.f32 %v8168_v5, %v8139_v30 }
 0x368   : > { %v8170_v3 = vpop.f32.mrf.mxu1  ;;  %v8303_v10 = vadd.f32 %v8182_v46, %v8141_v33 }
 0x369   : > { %9254 = vst [vmem:[#allocation14_spill] sm:$0xff] %v8170_v3  ;;  %v8200_v15 = vpop.f32.mrf.mxu0 }
 0x36a   : > { %v5840_v55 = vpop.f32.mrf.mxu1  ;;  %v8314_v30 = vadd.f32 %v8200_v15, %v8145_v22 }
 0x36b   : > { %v2928_v28 = vadd.f32 %v5840_v55, %v2598_v9  ;;  %v2593_v9 = vadd.f32 %v8075_v61, %v8077_v50  ;;  %v6126_v61 = vld [vmem:[#allocation2 + $0x28] sm:$0xff]   ;;  %v6127_v50 = vld [vmem:[#allocation2 + $0x20] sm:$0xff]   ;;  %v8233_v32 = vpop.f32.mrf.mxu0 }
 0x36c   : > { %v2799_v3 = vpop.f32.mrf.mxu1  ;;  %5914 = vmatprep.subr.bf16.mxu1 %v6126_v61  ;;  %v8318_v33 = vadd.f32 %v8233_v32, %v8147_v57 }
 0x36d   : > { %v2964_v13 = vadd.f32 %v8175_v31, %v2928_v28  ;;  %v2926_v58 = vadd.f32 %v2799_v3, %v2590_v45  ;;  %v6124_v28 = vld [vmem:[#allocation2 + $0x48] sm:$0xff]   ;;  %v2617_v3 = vadd.f32 %v8087_v14, %v8089_v19  ;;  %5915 = vmatpush3.bf16.msra.mxu1 %v6126_v61  ;;  %v2685_v34 = vpop.f32.mrf.mxu0 }
 0x36e   : > { %v5841_v29 = vpop.f32.mrf.mxu1  ;;  %5874 = vmatprep.subr.bf16.mxu0 %v6124_v28  ;;  %5916 = vmatprep.subr.bf16.mxu1 %v6127_v50  ;;  %v8327_v22 = vadd.f32 %v2685_v34, %v8151_v44 }
 0x36f   : > { %v3000_v55 = vmul.f32 %v8180_v39, %v2964_v13  ;;  %v2962_v59 = vadd.f32 %v8175_v31, %v2926_v58  ;;  %v2929_v23 = vadd.f32 %v5841_v29, %v2601_v11  ;;  %5875 = vmatpush3.bf16.msra.mxu0 %v6124_v28  ;;  %v5821_v53 = vpop.f32.mrf.mxu0 }
 0x370   : > { %v2802_v45 = vpop.f32.mrf.mxu1  ;;  %5876 = vmatprep.subr.bf16.mxu0 %v6125_v40  ;;  %v8330_v57 = vadd.f32 %v5821_v53, %v8153_v62 }
 0x371   : > { %v8203_v13 = vadd.f32 %v8188_v51, %v3000_v55  ;;  %v2998_v11 = vmul.f32 %v8180_v39, %v2962_v59  ;;  %v2965_v49 = vadd.f32 %v8175_v31, %v2929_v23  ;;  %v2927_v58 = vadd.f32 %v2802_v45, %v2593_v9  ;;  %v6129_v59 = vld [vmem:[#allocation2 + $0x18] sm:$0xff]   ;;  %5917 = vmatpush3.bf16.msra.mxu1 %v6127_v50  ;;  %v2688_v46 = vpop.f32.mrf.mxu0 }
 0x372   : > { %v5844_v0 = vpop.f32.mrf.mxu1  ;;  %5918 = vmatprep.subr.bf16.mxu1 %v6129_v59 }
 0x373   : > { %v5113_v14 = vmul.f32 -1.442695, %v8203_v13  ;;  %v8217_v19 = vadd.f32 %v8188_v51, %v2998_v11  ;;  %v3001_v29 = vmul.f32 %v8180_v39, %v2965_v49  ;;  %v2963_v9 = vadd.f32 %v8175_v31, %v2927_v58  ;;  %v6130_v49 = vld [vmem:[#allocation2 + $0x10] sm:$0xff]   ;;  %5877 = vmatpush3.bf16.msra.mxu0 %v6125_v40  ;;  %v5824_v44 = vpop.f32.mrf.mxu0 }
 0x374   : > { %v2932_v27 = vadd.f32 %v5844_v0, %v2614_v2  ;;  %v2815_v55 = vpop.f32.mrf.mxu1  ;;  %5878 = vmatprep.subr.bf16.mxu0 %v6128_v21 }
 0x375   : > { %6268 = vpow2.f32 %v5113_v14  ;;  %v5111_v23 = vmul.f32 -1.442695, %v8217_v19  ;;  %v8237_v48 = vadd.f32 %v8188_v51, %v3001_v29  ;;  %v2999_v17 = vmul.f32 %v8180_v39, %v2963_v9  ;;  %5919 = vmatpush3.bf16.msra.mxu1 %v6129_v59 }
 0x376   : > { %v2968_v60 = vadd.f32 %v8175_v31, %v2932_v27  ;;  %v2930_v63 = vadd.f32 %v2815_v55, %v2606_v24  ;;  %v5845_v2 = vpop.f32.mrf.mxu1  ;;  %5920 = vmatprep.subr.bf16.mxu1 %v6130_v49 }
 0x377   : > { %6270 = vpow2.f32 %v5111_v23  ;;  %v5114_v1 = vmul.f32 -1.442695, %v8237_v48  ;;  %v8251_v45 = vadd.f32 %v8188_v51, %v2999_v17  ;;  %v2933_v61 = vadd.f32 %v5845_v2, %v2617_v3  ;;  %5879 = vmatpush3.bf16.msra.mxu0 %v6128_v21 }
 0x378   : > { %v3004_v28 = vmul.f32 %v8180_v39, %v2968_v60  ;;  %v2966_v24 = vadd.f32 %v8175_v31, %v2930_v63  ;;  %v2818_v11 = vpop.f32.mrf.mxu1 }
 0x379   : > { %6272 = vpow2.f32 %v5114_v1  ;;  %v5112_v3 = vmul.f32 -1.442695, %v8251_v45  ;;  %v2969_v50 = vadd.f32 %v8175_v31, %v2933_v61  ;;  %v2931_v58 = vadd.f32 %v2818_v11, %v2609_v38  ;;  %5921 = vmatpush3.bf16.msra.mxu1 %v6130_v49 }
 0x37a   : > { %v8274_v37 = vadd.f32 %v8188_v51, %v3004_v28  ;;  %v3002_v26 = vmul.f32 %v8180_v39, %v2966_v24  ;;  %v5848_v0 = vpop.f32.mrf.mxu1 }
 0x37b   : > { %6274 = vpow2.f32 %v5112_v3  ;;  %v3005_v14 = vmul.f32 %v8180_v39, %v2969_v50  ;;  %v2967_v38 = vadd.f32 %v8175_v31, %v2931_v58  ;;  %v2936_v29 = vadd.f32 %v5848_v0, %v2630_v25  ;;  %v9255_v58 = vld [vmem:[#allocation12_spill] sm:$0xff] }
 0x37c   : > { %v5117_v12 = vmul.f32 -1.442695, %v8274_v37  ;;  %v8289_v9 = vadd.f32 %v8188_v51, %v3002_v26  ;;  %v2831_v40 = vpop.f32.mrf.mxu1  ;;  %v8339_v3 = vadd.f32 %v2688_v46, %v8157_v54  ;;  %v8345_v26 = vadd.f32 %v5824_v44, %v9255_v58 }
 0x37d   : > { %v8292_v25 = vadd.f32 %v8188_v51, %v3005_v14  ;;  %v3003_v27 = vmul.f32 %v8180_v39, %v2967_v38  ;;  %v2972_v47 = vadd.f32 %v8175_v31, %v2936_v29  ;;  %v2934_v7 = vadd.f32 %v2831_v40, %v8213_v8 }
 0x37e   : > { %6276 = vpow2.f32 %v5117_v12  ;;  %v5115_v55 = vmul.f32 -1.442695, %v8289_v9  ;;  %v5849_v59 = vpop.f32.mrf.mxu1 }
 0x37f   : > { %v5118_v23 = vmul.f32 -1.442695, %v8292_v25  ;;  %v8308_v17 = vadd.f32 %v8188_v51, %v3003_v27  ;;  %v3008_v8 = vmul.f32 %v8180_v39, %v2972_v47  ;;  %v2970_v60 = vadd.f32 %v8175_v31, %v2934_v7 }
 0x380   : > { %6278 = vpow2.f32 %v5115_v55  ;;  %v2937_v5 = vadd.f32 %v5849_v59, %v8223_v35  ;;  %v2834_v63 = vpop.f32.mrf.mxu1 }
 0x381   : > { %6280 = vpow2.f32 %v5118_v23  ;;  %v5116_v2 = vmul.f32 -1.442695, %v8308_v17  ;;  %v8323_v1 = vadd.f32 %v8188_v51, %v3008_v8  ;;  %v3006_v61 = vmul.f32 %v8180_v39, %v2970_v60 }
 0x382   : > { %v6269_v21 = vpop.eup %6268  ;;  %v2973_v15 = vadd.f32 %v8175_v31, %v2937_v5  ;;  %v2935_v35 = vadd.f32 %v2834_v63, %v8227_v16  ;;  %v5852_v32 = vpop.f32.mrf.mxu1 }
 0x383   : > { %v3164_v28 = vadd.f32 1.0, %v6269_v21  ;;  %6282 = vpow2.f32 %v5116_v2  ;;  %v5121_v24 = vmul.f32 -1.442695, %v8323_v1  ;;  %v8336_v11 = vadd.f32 %v8188_v51, %v3006_v61 }
 0x384   : > { %v6271_v49 = vpop.eup %6270  ;;  %v3009_v62 = vmul.f32 %v8180_v39, %v2973_v15  ;;  %v2971_v34 = vadd.f32 %v8175_v31, %v2935_v35  ;;  %v2940_v50 = vadd.f32 %v5852_v32, %v8231_v36  ;;  %v2847_v16 = vpop.f32.mrf.mxu1 }
 0x385   : > { %v3162_v0 = vadd.f32 1.0, %v6271_v49  ;;  %v5119_v14 = vmul.f32 -1.442695, %v8336_v11  ;;  %v2938_v38 = vadd.f32 %v2847_v16, %v8242_v42  ;;  %6284 = vpow2.f32 %v5121_v24 }
 0x386   : > { %v6273_v29 = vpop.eup %6272  ;;  %v8350_v54 = vadd.f32 %v8188_v51, %v3009_v62  ;;  %v3007_v53 = vmul.f32 %v8180_v39, %v2971_v34  ;;  %v2976_v12 = vadd.f32 %v8175_v31, %v2940_v50  ;;  %v5853_v40 = vpop.f32.mrf.mxu1  ;;  %6286 = vrcp.f32 %v3164_v28 }
 0x387   : > { %v3165_v36 = vadd.f32 1.0, %v6273_v29  ;;  %v2974_v27 = vadd.f32 %v8175_v31, %v2938_v38  ;;  %v2941_v47 = vadd.f32 %v5853_v40, %v8246_v6  ;;  %6288 = vpow2.f32 %v5119_v14 }
 0x388   : > { %v6275_v7 = vpop.eup %6274  ;;  %v5122_v42 = vmul.f32 -1.442695, %v8350_v54  ;;  %v8358_v55 = vadd.f32 %v8188_v51, %v3007_v53  ;;  %v3012_v59 = vmul.f32 %v8180_v39, %v2976_v12  ;;  %v2850_v23 = vpop.f32.mrf.mxu1  ;;  %6290 = vrcp.f32 %v3162_v0 }
 0x389   : > { %v3163_v8 = vadd.f32 1.0, %v6275_v7  ;;  %v3010_v60 = vmul.f32 %v8180_v39, %v2974_v27  ;;  %v2977_v46 = vadd.f32 %v8175_v31, %v2941_v47  ;;  %v2939_v63 = vadd.f32 %v2850_v23, %v8255_v56 }
 0x38a   : > { %6292 = vpow2.f32 %v5122_v42  ;;  %v5120_v5 = vmul.f32 -1.442695, %v8358_v55  ;;  %v8365_v6 = vadd.f32 %v8188_v51, %v3012_v59  ;;  %v5856_v2 = vpop.f32.mrf.mxu1 }
 0x38b   : > { %v6277_v61 = vpop.eup %6276  ;;  %6294 = vrcp.f32 %v3165_v36  ;;  %v8369_v21 = vadd.f32 %v8188_v51, %v3010_v60  ;;  %v3013_v15 = vmul.f32 %v8180_v39, %v2977_v46  ;;  %v2944_v35 = vadd.f32 %v5856_v2, %v8259_v4 }
 0x38c   : > { %v3168_v32 = vadd.f32 1.0, %v6277_v61  ;;  %6296 = vpow2.f32 %v5120_v5  ;;  %v5125_v28 = vmul.f32 -1.442695, %v8365_v6  ;;  %v2975_v24 = vadd.f32 %v8175_v31, %v2939_v63  ;;  %v2863_v49 = vpop.f32.mrf.mxu1 }
 0x38d   : > { %v6279_v44 = vpop.eup %6278  ;;  %6298 = vrcp.f32 %v3163_v8  ;;  %v8376_v56 = vadd.f32 %v8188_v51, %v3013_v15  ;;  %v2980_v62 = vadd.f32 %v8175_v31, %v2944_v35  ;;  %v2942_v34 = vadd.f32 %v2863_v49, %v8267_v18 }
 0x38e   : > { %v6281_v50 = vpop.eup %6280  ;;  %6300 = vrcp.f32 %v3168_v32  ;;  %v3166_v16 = vadd.f32 1.0, %v6279_v44  ;;  %v5123_v4 = vmul.f32 -1.442695, %v8369_v21  ;;  %v3011_v58 = vmul.f32 %v8180_v39, %v2975_v24  ;;  %v5857_v0 = vpop.f32.mrf.mxu1 }
 0x38f   : > { %v3169_v14 = vadd.f32 1.0, %v6281_v50  ;;  %6302 = vpow2.f32 %v5125_v28  ;;  %v5126_v38 = vmul.f32 -1.442695, %v8376_v56  ;;  %v3016_v29 = vmul.f32 %v8180_v39, %v2980_v62 }
 0x390   : > { %v6283_v53 = vpop.eup %6282  ;;  %6304 = vrcp.f32 %v3166_v16  ;;  %v8385_v12 = vadd.f32 %v8188_v51, %v3011_v58  ;;  %v2978_v18 = vadd.f32 %v8175_v31, %v2942_v34  ;;  %v2945_v40 = vadd.f32 %v5857_v0, %v8271_v20  ;;  %v2866_v36 = vpop.f32.mrf.mxu1 }
 0x391   : > { %6306 = vrcp.f32 %v3169_v14  ;;  %v3167_v27 = vadd.f32 1.0, %v6283_v53  ;;  %v8390_v47 = vadd.f32 %v8188_v51, %v3016_v29  ;;  %v2943_v7 = vadd.f32 %v2866_v36, %v8281_v52 }
 0x392   : > { %6308 = vpow2.f32 %v5123_v4  ;;  %v5124_v42 = vmul.f32 -1.442695, %v8385_v12  ;;  %v3014_v59 = vmul.f32 %v8180_v39, %v2978_v18  ;;  %v2981_v23 = vadd.f32 %v8175_v31, %v2945_v40  ;;  %v5860_v8 = vpop.f32.mrf.mxu1  ;;  %v6285_v60 = vpop.eup %6284 }
 0x393   : > { %6310 = vrcp.f32 %v3167_v27  ;;  %v5129_v20 = vmul.f32 -1.442695, %v8390_v47  ;;  %v2979_v46 = vadd.f32 %v8175_v31, %v2943_v7  ;;  %v2948_v5 = vadd.f32 %v5860_v8, %v8285_v41  ;;  %v6287_v63 = vpop.eup %6286  ;;  %v6131_v27 = vld [vmem:[#allocation2 + $0x8] sm:$0xff]   ;;  %v6132_v7 = vld [vmem:[#allocation2 + $0x30] sm:$0xff]  }
 0x394   : > { %v3172_v2 = vadd.f32 1.0, %v6285_v60  ;;  %6312 = vpow2.f32 %v5126_v38  ;;  %v8400_v52 = vadd.f32 %v8188_v51, %v3014_v59  ;;  %v3017_v61 = vmul.f32 %v8180_v39, %v2981_v23  ;;  %v2879_v15 = vpop.f32.mrf.mxu1  ;;  %v6289_v35 = vpop.eup %6288  ;;  %5922 = vmatprep.subr.bf16.mxu1 %v6131_v27  ;;  %5880 = vmatprep.subr.bf16.mxu0 %v6132_v7 }
 0x395   : > { %6314 = vpow2.f32 %v5124_v42  ;;  %v3015_v32 = vmul.f32 %v8180_v39, %v2979_v46  ;;  %v2984_v28 = vadd.f32 %v8175_v31, %v2948_v5  ;;  %v2946_v24 = vadd.f32 %v2879_v15, %v8299_v43  ;;  %v6291_v49 = vpop.eup %6290  ;;  %v6133_v42 = vld [vmem:[#allocation2] sm:$0xff]   ;;  %5923 = vmatpush3.bf16.msra.mxu1 %v6131_v27  ;;  %5881 = vmatpush3.bf16.msra.mxu0 %v6132_v7 }
 0x396   : > { %6316 = vrcp.f32 %v3172_v2  ;;  %v3170_v41 = vadd.f32 1.0, %v6289_v35  ;;  %v5127_v44 = vmul.f32 -1.442695, %v8400_v52  ;;  %v8408_v62 = vadd.f32 %v8188_v51, %v3017_v61  ;;  %v5861_v34 = vpop.f32.mrf.mxu1  ;;  %5924 = vmatprep.subr.bf16.mxu1 %v6133_v42 }
 0x397   : > { %v6293_v50 = vpop.eup %6292  ;;  %6318 = vpow2.f32 %v5129_v20  ;;  %v8411_v16 = vadd.f32 %v8188_v51, %v3015_v32  ;;  %v3020_v4 = vmul.f32 %v8180_v39, %v2984_v28  ;;  %v2982_v58 = vadd.f32 %v8175_v31, %v2946_v24 }
 0x398   : > { %v6295_v0 = vpop.eup %6294  ;;  %6320 = vrcp.f32 %v3170_v41  ;;  %v3173_v43 = vadd.f32 1.0, %v6293_v50  ;;  %v5130_v14 = vmul.f32 -1.442695, %v8408_v62  ;;  %v2949_v38 = vadd.f32 %v5861_v34, %v8303_v10  ;;  %v2882_v29 = vpop.f32.mrf.mxu1 }
 0x399   : > { %v6297_v53 = vpop.eup %6296  ;;  %6322 = vpow2.f32 %v5127_v44  ;;  %v5128_v18 = vmul.f32 -1.442695, %v8411_v16  ;;  %v8419_v40 = vadd.f32 %v8188_v51, %v3020_v4  ;;  %v3018_v36 = vmul.f32 %v8180_v39, %v2982_v58  ;;  %5925 = vmatpush3.bf16.msra.mxu1 %v6133_v42 }
 0x39a   : > { %v6299_v59 = vpop.eup %6298  ;;  %6324 = vrcp.f32 %v3173_v43  ;;  %v3171_v23 = vadd.f32 1.0, %v6297_v53  ;;  %v2985_v8 = vadd.f32 %v8175_v31, %v2949_v38  ;;  %v2947_v10 = vadd.f32 %v2882_v29, %v8314_v30  ;;  %v5864_v60 = vpop.f32.mrf.mxu1 }
 0x39b   : > { %v8424_v20 = vpop.eup %6300  ;;  %6326 = vpow2.f32 %v5130_v14  ;;  %v5133_v46 = vmul.f32 -1.442695, %v8419_v40  ;;  %v8428_v5 = vadd.f32 %v8188_v51, %v3018_v36  ;;  %v2952_v2 = vadd.f32 %v5864_v60, %v8318_v33 }
 0x39c   : > { %v6303_v61 = vpop.eup %6302  ;;  %6328 = vrcp.f32 %v3171_v23  ;;  %v3021_v15 = vmul.f32 %v8180_v39, %v2985_v8  ;;  %v2983_v35 = vadd.f32 %v8175_v31, %v2947_v10  ;;  %v3260_v30 = vmul.f32 %v6287_v63, %v8203_v13  ;;  %v2895_v32 = vpop.f32.mrf.mxu1 }
 0x39d   : > { %v8434_v28 = vpop.eup %6304  ;;  %v3176_v24 = vadd.f32 1.0, %v6303_v61  ;;  %6330 = vpow2.f32 %v5128_v18  ;;  %v5131_v41 = vmul.f32 -1.442695, %v8428_v5  ;;  %v2988_v33 = vadd.f32 %v8175_v31, %v2952_v2 }
 0x39e   : > { %v8438_v44 = vpop.eup %6306  ;;  %6332 = vpow2.f32 %v5133_v46  ;;  %v8441_v34 = vadd.f32 %v8188_v51, %v3021_v15  ;;  %v3019_v13 = vmul.f32 %v8180_v39, %v2983_v35  ;;  %v3261_v63 = vmul.f32 %v6295_v0, %v8237_v48  ;;  %v5865_v50 = vpop.f32.mrf.mxu1 }
 0x39f   : > { %v6309_v4 = vpop.eup %6308  ;;  %6334 = vrcp.f32 %v3176_v24  ;;  %v3024_v58 = vmul.f32 %v8180_v39, %v2988_v33  ;;  %v2950_v43 = vadd.f32 %v2895_v32, %v8327_v22  ;;  %v3258_v14 = vmul.f32 %v6291_v49, %v8217_v19 }
 0x3a0   : > { %v8448_v38 = vpop.eup %6310  ;;  %v3174_v29 = vadd.f32 1.0, %v6309_v4  ;;  %6336 = vpow2.f32 %v5131_v41  ;;  %v5134_v53 = vmul.f32 -1.442695, %v8441_v34  ;;  %v8452_v18 = vadd.f32 %v8188_v51, %v3019_v13  ;;  %v2898_v36 = vpop.f32.mrf.mxu1 }
 0x3a1   : > { %v6313_v48 = vpop.eup %6312  ;;  %v8455_v0 = vadd.f32 %v8188_v51, %v3024_v58  ;;  %v8457_v27 = vpack.c.bf16 %v3261_v63, %v3260_v30  ;;  %v2986_v22 = vadd.f32 %v8175_v31, %v2950_v43  ;;  %v3259_v19 = vmul.f32 %v6299_v59, %v8251_v45  ;;  %v2701_v59 = vpop.f32.mrf.mxu0  ;;  %v9256_v30 = vld [vmem:[#allocation13_spill] sm:$0xff] }
 0x3a2   : > { %v6315_v49 = vpop.eup %6314  ;;  %6338 = vrcp.f32 %v3174_v29  ;;  %v3177_v7 = vadd.f32 1.0, %v6313_v48  ;;  %v5132_v23 = vmul.f32 -1.442695, %v8452_v18  ;;  %v2953_v8 = vadd.f32 %v5865_v50, %v8330_v57  ;;  %v5868_v2 = vpop.f32.mrf.mxu1 }
 0x3a3   : > { %v8463_v10 = vpop.eup %6316  ;;  %v3175_v42 = vadd.f32 1.0, %v6315_v49  ;;  %6340 = vpow2.f32 %v5134_v53  ;;  %v5137_v60 = vmul.f32 -1.442695, %v8455_v0  ;;  %3518 = vrot.lane.b32.xlu1 %v8457_v27, %s6622_s9  ;;  %v3022_v46 = vmul.f32 %v8180_v39, %v2986_v22  ;;  %v5825_v53 = vpop.f32.mrf.mxu0  ;;  %v9257_v49 = vld [vmem:[#allocation11_spill] sm:$0xff] }
 0x3a4   : > { %v6319_v45 = vpop.eup %6318  ;;  %6342 = vrcp.f32 %v3177_v7  ;;  %v8469_v61 = vpack.c.bf16 %v3259_v19, %v3258_v14  ;;  %v2989_v15 = vadd.f32 %v8175_v31, %v2953_v8  ;;  %v2951_v57 = vadd.f32 %v2898_v36, %v8339_v3  ;;  %v2911_v14 = vpop.f32.mrf.mxu1 }
 0x3a5   : > { %v8473_v35 = vpop.eup %6320  ;;  %v2702_v32 = vadd.f32 %v2701_v59, %v9256_v30  ;;  %6344 = vrcp.f32 %v3175_v42  ;;  %v3180_v24 = vadd.f32 1.0, %v6319_v45  ;;  %v8477_v41 = vadd.f32 %v8188_v51, %v3022_v46  ;;  %v8504_v59 = vld [vmem:[#allocation2 + $0x88] sm:$0xff]  }
 0x3a6   : > { %v6323_v33 = vpop.eup %6322  ;;  %6346 = vpow2.f32 %v5132_v23  ;;  %3516 = vrot.lane.b32.xlu0 %v8469_v61, %s6622_s9  ;;  %v3025_v13 = vmul.f32 %v8180_v39, %v2989_v15  ;;  %v2987_v63 = vadd.f32 %v8175_v31, %v2951_v57  ;;  %v3317_v3 = vshll.u32 %v8457_v27, 16  ;;  %5958 = vmatprep.subr.bf16.mxu0 %v8504_v59 }
 0x3a7   : > { %v8484_v50 = vpop.eup %6324  ;;  %6348 = vrcp.f32 %v3180_v24  ;;  %v3178_v4 = vadd.f32 1.0, %v6323_v33  ;;  %v5135_v58 = vmul.f32 -1.442695, %v8477_v41  ;;  %v3314_v43 = vshrl.u32 %v8457_v27, 16 }
 0x3a8   : > { %v6327_v29 = vpop.eup %6326  ;;  %6350 = vpow2.f32 %v5137_v60  ;;  %v8489_v36 = vadd.f32 %v8188_v51, %v3025_v13  ;;  %v3023_v48 = vmul.f32 %v8180_v39, %v2987_v63  ;;  %v3443_v22 = vrot.slane %v3317_v3, 1 }
 0x3a9   : > { %v8494_v19 = vpop.eup %6328  ;;  %v2713_v7 = vadd.f32 %v5825_v53, %v9257_v49  ;;  %6352 = vrcp.f32 %v3178_v4  ;;  %v3181_v23 = vadd.f32 1.0, %v6327_v29  ;;  %v2956_v8 = vadd.f32 %v5868_v2, %v8345_v26  ;;  %v5869_v26 = vpop.f32.mrf.mxu1 }
 0x3aa   : > { %v6331_v42 = vpop.eup %6330  ;;  %6354 = vpow2.f32 %v5135_v58  ;;  %v5138_v60 = vmul.f32 -1.442695, %v8489_v36  ;;  %v8500_v46 = vadd.f32 %v8188_v51, %v3023_v48  ;;  %v3444_v45 = vor.u32 %v3443_v22, %v3314_v43 }
 0x3ab   : > { %v6333_v15 = vpop.eup %6332  ;;  %6356 = vrcp.f32 %v3181_v23  ;;  %v3179_v57 = vadd.f32 1.0, %v6331_v42  ;;  %v2992_v30 = vadd.f32 %v8175_v31, %v2956_v8  ;;  %v3310_v24 = vshll.u32 %v8469_v61, 16  ;;  %v2704_v42 = vpop.f32.mrf.mxu0 }
 0x3ac   : > { %v8508_v2 = vpop.eup %6334  ;;  %v3184_v33 = vadd.f32 1.0, %v6333_v15  ;;  %6358 = vpow2.f32 %v5138_v60  ;;  %v5136_v13 = vmul.f32 -1.442695, %v8500_v46  ;;  %v3487_v4 = vsel %vm6771_vm2, %v3444_v45, 0 }
 0x3ad   : > { %v6337_v58 = vpop.eup %6336  ;;  %6360 = vrcp.f32 %v3179_v57  ;;  %3563 = vrot.lane.b32.xlu1 %v3487_v4, %s6623_s13  ;;  %v3028_v29 = vmul.f32 %v8180_v39, %v2992_v30  ;;  %v3307_v53 = vshrl.u32 %v8469_v61, 16  ;;  %v3441_v48 = vrot.slane %v3310_v24, 1  ;;  %v2914_v57 = vpop.f32.mrf.mxu1 }
 0x3ae   : > { %6362 = vrcp.f32 %v3184_v33  ;;  %v3182_v22 = vadd.f32 1.0, %v6337_v58  ;;  %v2954_v49 = vadd.f32 %v2911_v14, %v2702_v32  ;;  %v3264_v23 = vmul.f32 %v8424_v20, %v8274_v37  ;;  %v9259_v33 = vld [vmem:[#allocation14_spill] sm:$0xff] }
 0x3af   : > { %v8521_v8 = vpop.eup %6338  ;;  %6364 = vpow2.f32 %v5136_v13  ;;  %v8524_v60 = vadd.f32 %v8188_v51, %v3028_v29  ;;  %v3442_v45 = vor.u32 %v3441_v48, %v3307_v53  ;;  %v3265_v15 = vmul.f32 %v8438_v44, %v8292_v25 }
 0x3b0   : > { %v6341_v30 = vpop.eup %6340  ;;  %v2705_v32 = vadd.f32 %v2704_v42, %v9259_v33  ;;  %6366 = vrcp.f32 %v3182_v22  ;;  %v2990_v37 = vadd.f32 %v8175_v31, %v2954_v49  ;;  %v2957_v20 = vadd.f32 %v5869_v26, %v2713_v7 }
 0x3b1   : > { %v8532_v14 = vpop.eup %6342  ;;  %v3185_v13 = vadd.f32 1.0, %v6341_v30  ;;  %v5141_v4 = vmul.f32 -1.442695, %v8524_v60  ;;  %v3486_v58 = vsel %vm6771_vm2, %v3442_v45, 0  ;;  %v8537_v29 = vpack.c.bf16 %v3265_v15, %v3264_v23 }
 0x3b2   : > { %v8539_v48 = vpop.eup %6344  ;;  %3561 = vrot.lane.b32.xlu0 %v3486_v58, %s6623_s13  ;;  %v3026_v25 = vmul.f32 %v8180_v39, %v2990_v37  ;;  %v2993_v44 = vadd.f32 %v8175_v31, %v2957_v20  ;;  %v3263_v7 = vmul.f32 %v8448_v38, %v8308_v17  ;;  %v2955_v26 = vadd.f32 %v2914_v57, %v2705_v32 }
 0x3b3   : > { %v6347_v22 = vpop.eup %6346  ;;  %6368 = vrcp.f32 %v3185_v13  ;;  %3522 = vrot.lane.b32.xlu1 %v8537_v29, %s6622_s9  ;;  %v3262_v49 = vmul.f32 %v8434_v28, %v8289_v9  ;;  %v3328_v23 = vshrl.u32 %v8537_v29, 16  ;;  %v3331_v42 = vshll.u32 %v8537_v29, 16 }
 0x3b4   : > { %v8552_v45 = vpop.eup %6348  ;;  %v3183_v15 = vadd.f32 1.0, %v6347_v22  ;;  %6370 = vpow2.f32 %v5141_v4  ;;  %v8555_v30 = vadd.f32 %v8188_v51, %v3026_v25  ;;  %v3029_v17 = vmul.f32 %v8180_v39, %v2993_v44 }
 0x3b5   : > { %v6351_v38 = vpop.eup %6350  ;;  %v8558_v57 = vpack.c.bf16 %v3263_v7, %v3262_v49  ;;  %v2991_v33 = vadd.f32 %v8175_v31, %v2955_v26  ;;  %v3447_v9 = vrot.slane %v3331_v42, 1  ;;  %v3268_v28 = vmul.f32 %v8463_v10, %v8323_v1 }
 0x3b6   : > { %v6353_v32 = vpop.eup %6352  ;;  %6372 = vrcp.f32 %v3183_v15  ;;  %v3188_v37 = vadd.f32 1.0, %v6351_v38  ;;  %v5139_v20 = vmul.f32 -1.442695, %v8555_v30  ;;  %v8567_v13 = vadd.f32 %v8188_v51, %v3029_v17 }
 0x3b7   : > { %v6355_v4 = vpop.eup %6354  ;;  %3520 = vrot.lane.b32.xlu0 %v8558_v57, %s6622_s9  ;;  %v3027_v31 = vmul.f32 %v8180_v39, %v2991_v33  ;;  %v3448_v58 = vor.u32 %v3447_v9, %v3328_v23  ;;  %v3321_v25 = vshrl.u32 %v8558_v57, 16  ;;  %v3324_v1 = vshll.u32 %v8558_v57, 16 }
 0x3b8   : > { %v6357_v10 = vpop.eup %6356  ;;  %6374 = vrcp.f32 %v3188_v37  ;;  %v3186_v44 = vadd.f32 1.0, %v6355_v4  ;;  %v5142_v7 = vmul.f32 -1.442695, %v8567_v13  ;;  %v3269_v26 = vmul.f32 %v8484_v50, %v8350_v54 }
 0x3b9   : > { %v6359_v22 = vpop.eup %6358  ;;  %6376 = vpow2.f32 %v5139_v20  ;;  %v8580_v49 = vadd.f32 %v8188_v51, %v3027_v31  ;;  %v3489_v39 = vsel %vm6771_vm2, %v3448_v58, 0  ;;  %v3445_v15 = vrot.slane %v3324_v1, 1 }
 0x3ba   : > { %v6361_v17 = vpop.eup %6360  ;;  %6378 = vrcp.f32 %v3186_v44  ;;  %v3189_v38 = vadd.f32 1.0, %v6359_v22  ;;  %3567 = vrot.lane.b32.xlu1 %v3489_v39, %s6623_s13  ;;  %v8587_v33 = vpack.c.bf16 %v3269_v26, %v3268_v28  ;;  %v3266_v37 = vmul.f32 %v8473_v35, %v8336_v11 }
 0x3bb   : > { %v8589_v9 = vpop.eup %6362  ;;  %6380 = vpow2.f32 %v5142_v7  ;;  %v5140_v54 = vmul.f32 -1.442695, %v8580_v49  ;;  %v3446_v51 = vor.u32 %v3445_v15, %v3321_v25  ;;  %v3267_v20 = vmul.f32 %v8494_v19, %v8358_v55 }
 0x3bc   : > { %v6365_v50 = vpop.eup %6364  ;;  %6382 = vrcp.f32 %v3189_v38  ;;  %v3345_v4 = vshll.u32 %v8587_v33, 16  ;;  %v3342_v44 = vshrl.u32 %v8587_v33, 16  ;;  %v3272_v35 = vmul.f32 %v8508_v2, %v8365_v6 }
 0x3bd   : > { %v8599_v28 = vpop.eup %6366  ;;  %v3187_v31 = vadd.f32 1.0, %v6365_v50  ;;  %6384 = vpow2.f32 %v5140_v54  ;;  %v3488_v58 = vsel %vm6771_vm2, %v3446_v51, 0  ;;  %v8607_v11 = vpack.c.bf16 %v3267_v20, %v3266_v37 }
 0x3be   : > { %3565 = vrot.lane.b32.xlu0 %v3488_v58, %s6623_s13  ;;  %3526 = vrot.lane.b32.xlu1 %v8587_v33, %s6622_s9  ;;  %v3451_v55 = vrot.slane %v3345_v4, 1  ;;  %v3273_v19 = vmul.f32 %v8532_v14, %v8376_v56  ;;  %v3270_v7 = vmul.f32 %v8521_v8, %v8369_v21  ;;  %v3271_v26 = vmul.f32 %v8539_v48, %v8385_v12 }
 0x3bf   : > { %6386 = vrcp.f32 %v3187_v31  ;;  %v3338_v15 = vshll.u32 %v8607_v11, 16  ;;  %v3276_v56 = vmul.f32 %v8552_v45, %v8390_v47  ;;  %v3277_v2 = vmul.f32 %v6357_v10, %v8408_v62 }
 0x3c0   : > { %v6369_v22 = vpop.eup %6368  ;;  %v3452_v39 = vor.u32 %v3451_v55, %v3342_v44  ;;  %v8622_v38 = vpack.c.bf16 %v3273_v19, %v3272_v35  ;;  %v8624_v6 = vpack.c.bf16 %v3271_v26, %v3270_v7  ;;  %v3275_v21 = vmul.f32 %v6361_v17, %v8411_v16 }
 0x3c1   : > { %v6371_v54 = vpop.eup %6370  ;;  %v3335_v8 = vshrl.u32 %v8607_v11, 16  ;;  %v3449_v14 = vrot.slane %v3338_v15, 1  ;;  %v3274_v48 = vmul.f32 %v6353_v32, %v8400_v52  ;;  %v8643_v45 = vpack.c.bf16 %v3277_v2, %v3276_v56 }
 0x3c2   : > { %3524 = vrot.lane.b32.xlu0 %v8607_v11, %s6622_s9  ;;  %v3491_v12 = vsel %vm6771_vm2, %v3452_v39, 0  ;;  %v3192_v50 = vadd.f32 1.0, %v6371_v54  ;;  %v3359_v47 = vshll.u32 %v8622_v38, 16  ;;  %v3352_v62 = vshll.u32 %v8624_v6, 16 }
 0x3c3   : > { %v6373_v51 = vpop.eup %6372  ;;  %3571 = vrot.lane.b32.xlu1 %v3491_v12, %s6623_s13  ;;  %v3450_v16 = vor.u32 %v3449_v14, %v3335_v8  ;;  %v8645_v10 = vpack.c.bf16 %v3275_v21, %v3274_v48  ;;  %v3356_v37 = vshrl.u32 %v8622_v38, 16  ;;  %v3349_v32 = vshrl.u32 %v8624_v6, 16 }
 0x3c4   : > { %v3455_v52 = vrot.slane %v3359_v47, 1  ;;  %v3453_v20 = vrot.slane %v3352_v62, 1  ;;  %v3373_v55 = vshll.u32 %v8643_v45, 16  ;;  %6388 = vrcp.f32 %v3192_v50 }
 0x3c5   : > { %v6375_v17 = vpop.eup %6374  ;;  %v3490_v58 = vsel %vm6771_vm2, %v3450_v16, 0  ;;  %v3370_v54 = vshrl.u32 %v8643_v45, 16  ;;  %v3366_v2 = vshll.u32 %v8645_v10, 16  ;;  %v3316_v12 = vrot.slane %v3314_v43, 7 }
 0x3c6   : > { %v6377_v31 = vpop.eup %6376  ;;  %3569 = vrot.lane.b32.xlu0 %v3490_v58, %s6623_s13  ;;  %v3456_v7 = vor.u32 %v3455_v52, %v3356_v37  ;;  %v3454_v26 = vor.u32 %v3453_v20, %v3349_v32  ;;  %v3459_v56 = vrot.slane %v3373_v55, 1  ;;  %v3280_v50 = vmul.f32 %v8589_v9, %v8419_v40 }
 0x3c7   : > { %v6379_v35 = vpop.eup %6378  ;;  %v3190_v19 = vadd.f32 1.0, %v6377_v31  ;;  %3530 = vrot.lane.b32.xlu1 %v8622_v38, %s6622_s9  ;;  %v3281_v31 = vmul.f32 %v6369_v22, %v8441_v34  ;;  %v3278_v43 = vmul.f32 %v8599_v28, %v8428_v5  ;;  %v3279_v40 = vmul.f32 %v6373_v51, %v8452_v18 }
 0x3c8   : > { %v6381_v39 = vpop.eup %6380  ;;  %v3493_v48 = vsel %vm6771_vm2, %v3456_v7, 0  ;;  %v3492_v52 = vsel %vm6771_vm2, %v3454_v26, 0  ;;  %v3460_v20 = vor.u32 %v3459_v56, %v3370_v54  ;;  %v3284_v26 = vmul.f32 %v6375_v17, %v8455_v0 }
 0x3c9   : > { %v6383_v21 = vpop.eup %6382  ;;  %v3193_v14 = vadd.f32 1.0, %v6381_v39  ;;  %6390 = vrcp.f32 %v3190_v19  ;;  %v3457_v19 = vrot.slane %v3366_v2, 1  ;;  %v3301_v7 = vpack.c.bf16 %v3281_v31, %v3280_v50 }
 0x3ca   : > { %v6385_v16 = vpop.eup %6384  ;;  %3528 = vrot.lane.b32.xlu0 %v8624_v6, %s6622_s9  ;;  %v3285_v34 = vmul.f32 %v6383_v21, %v8489_v36  ;;  %v3300_v22 = vpack.c.bf16 %v3279_v40, %v3278_v43  ;;  %v3282_v39 = vmul.f32 %v6379_v35, %v8477_v41  ;;  %v3309_v5 = vrot.slane %v3307_v53, 7 }
 0x3cb   : > { %6392 = vrcp.f32 %v3193_v14  ;;  %v3191_v58 = vadd.f32 1.0, %v6385_v16  ;;  %3575 = vrot.lane.b32.xlu1 %v3493_v48, %s6623_s13  ;;  %v3363_v18 = vshrl.u32 %v8645_v10, 16  ;;  %v3387_v28 = vshll.u32 %v3301_v7, 16 }
 0x3cc   : > { %v6387_v9 = vpop.eup %6386  ;;  %v8687_v51 = vpack.c.bf16 %v3285_v34, %v3284_v26  ;;  %v3330_v14 = vrot.slane %v3328_v23, 7  ;;  %v3380_v0 = vshll.u32 %v3300_v22, 16  ;;  %v8698_v36 = vor.u32 %v3317_v3, %v3316_v12 }
 0x3cd   : > { %6394 = vrcp.f32 %v3191_v58  ;;  %v3283_v56 = vmul.f32 %v6387_v9, %v8500_v46  ;;  %v3323_v46 = vrot.slane %v3321_v25, 7  ;;  %v3495_v53 = vsel %vm6771_vm2, %v3460_v20, 0 }
 0x3ce   : > { %3573 = vrot.lane.b32.xlu0 %v3492_v52, %s6623_s13  ;;  %v3458_v17 = vor.u32 %v3457_v19, %v3363_v18  ;;  %v3463_v23 = vrot.slane %v3387_v28, 1  ;;  %v3344_v35 = vrot.slane %v3342_v44, 7  ;;  %v3337_v21 = vrot.slane %v3335_v8, 7 }
 0x3cf   : > { %3534 = vrot.lane.b32.xlu1 %v8643_v45, %s6622_s9  ;;  %v8694_v41 = vpack.c.bf16 %v3283_v56, %v3282_v39  ;;  %v3384_v48 = vshrl.u32 %v3301_v7, 16  ;;  %v3377_v50 = vshrl.u32 %v3300_v22, 16  ;;  %v3358_v16 = vrot.slane %v3356_v37, 7 }
 0x3d0   : > { %v3351_v27 = vrot.slane %v3349_v32, 7  ;;  %v3372_v3 = vrot.slane %v3370_v54, 7  ;;  %v3398_v12 = vshrl.u32 %v8687_v51, 16  ;;  %v3365_v25 = vrot.slane %v3363_v18, 7 }
 0x3d1   : > { %v3461_v52 = vrot.slane %v3380_v0, 1  ;;  %v3401_v20 = vshll.u32 %v8687_v51, 16  ;;  %v3391_v44 = vshrl.u32 %v8694_v41, 16  ;;  %v6389_v31 = vpop.eup %6388  ;;  %v3494_v8 = vsel %vm6771_vm2, %v3458_v17, 0 }
 0x3d2   : > { %3532 = vrot.lane.b32.xlu0 %v8645_v10, %s6622_s9  ;;  %v3464_v37 = vor.u32 %v3463_v23, %v3384_v48  ;;  %v8718_v32 = vor.u32 %v3310_v24, %v3309_v5  ;;  %v8722_v54 = vor.u32 %v3331_v42, %v3330_v14  ;;  %v3386_v58 = vrot.slane %v3384_v48, 7 }
 0x3d3   : > { %3579 = vrot.lane.b32.xlu1 %v3495_v53, %s6623_s13  ;;  %v3379_v43 = vrot.slane %v3377_v50, 7  ;;  %v8726_v40 = vor.u32 %v3324_v1, %v3323_v46  ;;  %v8730_v9 = vor.u32 %v3345_v4, %v3344_v35  ;;  %v3400_v19 = vrot.slane %v3398_v12, 7 }
 0x3d4   : > { %v3394_v26 = vshll.u32 %v8694_v41, 16  ;;  %v8735_v61 = vor.u32 %v3338_v15, %v3337_v21  ;;  %v3288_v29 = vmul.f32 %v6389_v31, %v8524_v60  ;;  %v3462_v42 = vor.u32 %v3461_v52, %v3377_v50 }
 0x3d5   : > { %v3467_v57 = vrot.slane %v3401_v20, 1  ;;  %v3393_v1 = vrot.slane %v3391_v44, 7  ;;  %v3497_v4 = vsel %vm6771_vm2, %v3464_v37, 0  ;;  %v8744_v34 = vor.u32 %v3359_v47, %v3358_v16 }
 0x3d6   : > { %v6391_v24 = vpop.eup %6390  ;;  %3577 = vrot.lane.b32.xlu0 %v3494_v8, %s6623_s13  ;;  %v8748_v11 = vor.u32 %v3352_v62, %v3351_v27  ;;  %v8752_v60 = vor.u32 %v3373_v55, %v3372_v3  ;;  %v8759_v39 = vor.u32 %v3387_v28, %v3386_v58  ;;  %v8761_v56 = vor.u32 %v3380_v0, %v3379_v43  ;;  %v6135_v8 = vld [vmem:[#allocation2 + $0x80] sm:$0xff]  }
 0x3d7   : > { %3538 = vrot.lane.b32.xlu1 %v3301_v7, %s6622_s9  ;;  %v8757_v7 = vor.u32 %v3366_v2, %v3365_v25  ;;  %v8763_v47 = vor.u32 %v3401_v20, %v3400_v19  ;;  %v3286_v6 = vmul.f32 %v6391_v24, %v8555_v30  ;;  %v3496_v45 = vsel %vm6771_vm2, %v3462_v42, 0  ;;  %v6137_v19 = vld [vmem:[#allocation2 + $0x70] sm:$0xff]  }
 0x3d8   : > { %v6393_v33 = vpop.eup %6392  ;;  %v3468_v10 = vor.u32 %v3467_v57, %v3398_v12  ;;  %v3465_v55 = vrot.slane %v3394_v26, 1  ;;  %v8771_v2 = vor.u32 %v3394_v26, %v3393_v1  ;;  %v3426_v25 = vsel %vm7017_vm5, 0, %v8718_v32 }
 0x3d9   : > { %v3289_v15 = vmul.f32 %v6393_v33, %v8567_v13  ;;  %v3427_v52 = vsel %vm7017_vm5, 0, %v8698_v36  ;;  %v6136_v36 = vld [vmem:[#allocation2 + $0x78] sm:$0xff]   ;;  %v3428_v26 = vsel %vm7017_vm5, 0, %v8726_v40  ;;  %v3429_v24 = vsel %vm7017_vm5, 0, %v8722_v54  ;;  %v6138_v33 = vld [vmem:[#allocation2 + $0x68] sm:$0xff]  }
 0x3da   : > { %v6395_v38 = vpop.eup %6394  ;;  %3536 = vrot.lane.b32.xlu0 %v3300_v22, %s6622_s9  ;;  %v3466_v0 = vor.u32 %v3465_v55, %v3391_v44 }
 0x3db   : > { %3583 = vrot.lane.b32.xlu1 %v3497_v4, %s6623_s13  ;;  %v3287_v62 = vmul.f32 %v6395_v38, %v8580_v49  ;;  %v3305_v13 = vpack.c.bf16 %v3289_v15, %v3288_v29  ;;  %v3499_v49 = vsel %vm6771_vm2, %v3468_v10, 0  ;;  %v6139_v15 = vld [vmem:[#allocation2 + $0x60] sm:$0xff]   ;;  %v3430_v38 = vsel %vm7017_vm5, 0, %v8735_v61 }
 0x3dd   : > { %v3304_v5 = vpack.c.bf16 %v3287_v62, %v3286_v6  ;;  %v3679_v18 = vshrl.u32 %v3305_v13, 16  ;;  %v3682_v28 = vshll.u32 %v3305_v13, 16  ;;  %v3431_v6 = vsel %vm7017_vm5, 0, %v8730_v9 }
 0x3de   : > { %3581 = vrot.lane.b32.xlu0 %v3496_v45, %s6623_s13 }
 0x3df   : > { %3542 = vrot.lane.b32.xlu1 %v8687_v51, %s6622_s9  ;;  %v3405_v22 = vshrl.u32 %v3304_v5, 16  ;;  %v3408_v30 = vshll.u32 %v3304_v5, 16  ;;  %v3681_v14 = vrot.slane %v3679_v18, 7  ;;  %v3687_v23 = vrot.slane %v3682_v28, 1 }
 0x3e0   : > { %v3498_v51 = vsel %vm6771_vm2, %v3466_v0, 0 }
 0x3e1   : > { %v3469_v46 = vrot.slane %v3408_v30, 1  ;;  %v3407_v53 = vrot.slane %v3405_v22, 7  ;;  %v8778_v17 = vor.u32 %v3682_v28, %v3681_v14  ;;  %v3688_v50 = vor.u32 %v3687_v23, %v3679_v18 }
 0x3e2   : > { %3540 = vrot.lane.b32.xlu0 %v8694_v41, %s6622_s9  ;;  %v3432_v18 = vsel %vm7017_vm5, 0, %v8748_v11  ;;  %v3433_v28 = vsel %vm7017_vm5, 0, %v8744_v34  ;;  %v3435_v23 = vsel %vm7017_vm5, 0, %v8752_v60 }
 0x3e3   : > { %3587 = vrot.lane.b32.xlu1 %v3499_v49, %s6623_s13  ;;  %v3470_v35 = vor.u32 %v3469_v46, %v3405_v22  ;;  %v8783_v21 = vor.u32 %v3408_v30, %v3407_v53  ;;  %v3690_v16 = vsel %vm6771_vm2, %v3688_v50, 0  ;;  %v3434_v53 = vsel %vm7017_vm5, 0, %v8757_v7 }
 0x3e5   : > { %v3500_v48 = vsel %vm6771_vm2, %v3470_v35, 0 }
 0x3e6   : > { %3585 = vrot.lane.b32.xlu0 %v3498_v51, %s6623_s13 }
 0x3e7   : > { %3589 = vrot.lane.b32.xlu1 %v3500_v48, %s6623_s13 }
 0x3ea   : > { %3544 = vrot.lane.b32.xlu0 %v3304_v5, %s6622_s9 }
 0x3eb   : > { %3695 = vrot.lane.b32.xlu1 %v3690_v16, %s6623_s13 }
 0x3ee   : > { %3692 = vrot.lane.b32.xlu0 %v3305_v13, %s6622_s9  ;;  %s6559_s9 = scalar_lea.vmem %s6558_s8, 4096 }
 0x3ef   : > { %p6561_p12 = scmp.lt.s32.totalorder %s6559_s9, %s6553_s23 }
 0x3f1   : > { %p6562_p13 = por %p6561_p12, %p6560_p11 }
 0x3f3   : > { %p6563_p0 = pnand %p6562_p13, %p6556_p10 }
 0x415   : > { %v3519_v41 = vpop.permute.xlu1 %3518 }
 0x416   : > { %v3596_v44 = vsel %vm699_vm6, %v3427_v52, %v3519_v41 }
 0x418   : > { %v3517_v27 = vpop.permute.xlu0 %3516 }
 0x419   : > { %v3593_v63 = vsel %vm699_vm6, %v3426_v25, %v3517_v27  ;;  %v3436_v27 = vsel %vm7017_vm5, 0, %v8761_v56 }
 0x41f   : > { %v3564_v3 = vpop.permute.xlu1 %3563 }
 0x420   : > { %v8806_v37 = vsel %vm748_vm7, %v3596_v44, %v3564_v3  ;;  %v3437_v3 = vsel %vm7017_vm5, 0, %v8759_v39 }
 0x424   : > { %v3562_v20 = vpop.permute.xlu0 %3561 }
 0x425   : > { %v3637_v31 = vsel %vm748_vm7, %v3593_v63, %v3562_v20  ;;  %v3523_v32 = vpop.permute.xlu1 %3522 }
 0x426   : > { %5882 = vmatprep.mubr.msk.bf16.mxu0 %vm870_vm8, %v3637_v31  ;;  %5927 = vmatmul.mubr.msk.bf16.vlgmr.msra.gmra.mxu1 %vm870_vm8, %v3637_v31 }
 0x427   : > { %5883 = vmatmul.mubr.msk.bf16.vlgmr.msra.gmra.mxu0 %vm870_vm8, %v8806_v37  ;;  %5930 = vmatprep.mubr.msk.bf16.mxu1 %vm870_vm8, %v8806_v37 }
 0x428   : > { %5959 = vmatpush3.bf16.msra.mxu0 %v8504_v59  ;;  %v3602_v59 = vsel %vm699_vm6, %v3429_v24, %v3523_v32  ;;  %v3439_v32 = vsel %vm7017_vm5, 0, %v8763_v47  ;;  %v3440_v47 = vsel %vm7017_vm5, 0, %v8783_v21 }
 0x429   : > { %5960 = vmatprep.subr.bf16.mxu0 %v6135_v8  ;;  %v3521_v58 = vpop.permute.xlu0 %3520 }
 0x42a   : > { %v3599_v29 = vsel %vm699_vm6, %v3428_v26, %v3521_v58 }
 0x42c   : > { %v3568_v43 = vpop.permute.xlu1 %3567  ;;  %5961 = vmatpush3.bf16.msra.mxu0 %v6135_v8  ;;  %v3438_v8 = vsel %vm7017_vm5, 0, %v8771_v2 }
 0x42d   : > { %5962 = vmatprep.subr.bf16.mxu0 %v6136_v36  ;;  %v8827_v4 = vsel %vm748_vm7, %v3602_v59, %v3568_v43  ;;  %v3686_v59 = vsel %vm7017_vm5, 0, %v8778_v17  ;;  %v9261_v17 = vld [vmem:[#allocation10_spill] sm:$0xff] }
 0x430   : > { %v3566_v42 = vpop.permute.xlu0 %3565  ;;  %v3527_v57 = vpop.permute.xlu1 %3526  ;;  %5963 = vmatpush3.bf16.msra.mxu0 %v6136_v36 }
 0x431   : > { %v8824_v1 = vsel %vm748_vm7, %v3599_v29, %v3566_v42  ;;  %5964 = vmatprep.subr.bf16.mxu0 %v6137_v19  ;;  %v3608_v10 = vsel %vm699_vm6, %v3431_v6, %v3527_v57 }
 0x432   : > { %5886 = vmatprep.mubr.msk.bf16.mxu0 %vm870_vm8, %v8824_v1  ;;  %5931 = vmatmul.mubr.msk.bf16.gmra.mxu1 %vm870_vm8, %v8824_v1 }
 0x433   : > { %5887 = vmatmul.mubr.msk.bf16.gmra.mxu0 %vm870_vm8, %v8827_v4  ;;  %5934 = vmatprep.mubr.msk.bf16.mxu1 %vm870_vm8, %v8827_v4 }
 0x434   : > { %v3525_v54 = vpop.permute.xlu0 %3524  ;;  %5965 = vmatpush3.bf16.msra.mxu0 %v6137_v19 }
 0x435   : > { %v3572_v40 = vpop.permute.xlu1 %3571  ;;  %5966 = vmatprep.subr.bf16.mxu0 %v6138_v33  ;;  %v3605_v62 = vsel %vm699_vm6, %v3430_v38, %v3525_v54 }
 0x436   : > { %v8849_v5 = vsel %vm748_vm7, %v3608_v10, %v3572_v40 }
 0x438   : > { %5967 = vmatpush3.bf16.msra.mxu0 %v6138_v33  ;;  %v3570_v13 = vpop.permute.xlu0 %3569 }
 0x439   : > { %v3531_v45 = vpop.permute.xlu1 %3530  ;;  %5968 = vmatprep.subr.bf16.mxu0 %v6139_v15  ;;  %v8846_v55 = vsel %vm748_vm7, %v3605_v62, %v3570_v13 }
 0x43a   : > { %5890 = vmatprep.mubr.msk.bf16.mxu0 %vm870_vm8, %v8846_v55  ;;  %5935 = vmatmul.mubr.msk.bf16.gmra.mxu1 %vm870_vm8, %v8846_v55  ;;  %v3614_v49 = vsel %vm699_vm6, %v3433_v28, %v3531_v45 }
 0x43b   : > { %5891 = vmatmul.mubr.msk.bf16.gmra.mxu0 %vm870_vm8, %v8849_v5  ;;  %5938 = vmatprep.mubr.msk.bf16.mxu1 %vm870_vm8, %v8849_v5 }
 0x43c   : > { %v3529_v9 = vpop.permute.xlu0 %3528  ;;  %5969 = vmatpush3.bf16.msra.mxu0 %v6139_v15 }
 0x43d   : > { %v3576_v61 = vpop.permute.xlu1 %3575  ;;  %v3611_v22 = vsel %vm699_vm6, %v3432_v18, %v3529_v9 }
 0x43e   : > { %v8871_v46 = vsel %vm748_vm7, %v3614_v49, %v3576_v61 }
 0x440   : > { %v3574_v30 = vpop.permute.xlu0 %3573 }
 0x441   : > { %v3535_v14 = vpop.permute.xlu1 %3534  ;;  %v8868_v0 = vsel %vm748_vm7, %v3611_v22, %v3574_v30 }
 0x442   : > { %5894 = vmatprep.mubr.msk.bf16.mxu0 %vm870_vm8, %v8868_v0  ;;  %5939 = vmatmul.mubr.msk.bf16.gmra.mxu1 %vm870_vm8, %v8868_v0  ;;  %v3620_v50 = vsel %vm699_vm6, %v3435_v23, %v3535_v14 }
 0x443   : > { %5895 = vmatmul.mubr.msk.bf16.gmra.mxu0 %vm870_vm8, %v8871_v46  ;;  %5942 = vmatprep.mubr.msk.bf16.mxu1 %vm870_vm8, %v8871_v46 }
 0x444   : > { %v3533_v34 = vpop.permute.xlu0 %3532 }
 0x445   : > { %v3580_v11 = vpop.permute.xlu1 %3579  ;;  %v3617_v35 = vsel %vm699_vm6, %v3434_v53, %v3533_v34 }
 0x446   : > { %v3655_v41 = vsel %vm748_vm7, %v3620_v50, %v3580_v11 }
 0x448   : > { %v3578_v51 = vpop.permute.xlu0 %3577 }
 0x449   : > { %v3539_v48 = vpop.permute.xlu1 %3538  ;;  %v3653_v16 = vsel %vm748_vm7, %v3617_v35, %v3578_v51 }
 0x44a   : > { %5898 = vmatprep.mubr.msk.bf16.mxu0 %vm870_vm8, %v3653_v16  ;;  %5943 = vmatmul.mubr.msk.bf16.gmra.mxu1 %vm870_vm8, %v3653_v16  ;;  %v3626_v20 = vsel %vm699_vm6, %v3437_v3, %v3539_v48 }
 0x44b   : > { %5899 = vmatmul.mubr.msk.bf16.gmra.mxu0 %vm870_vm8, %v3655_v41  ;;  %5946 = vmatprep.mubr.msk.bf16.mxu1 %vm870_vm8, %v3655_v41 }
 0x44c   : > { %v3537_v7 = vpop.permute.xlu0 %3536 }
 0x44d   : > { %v3584_v60 = vpop.permute.xlu1 %3583  ;;  %v3623_v25 = vsel %vm699_vm6, %v3436_v27, %v3537_v7 }
 0x44e   : > { %v3659_v31 = vsel %vm748_vm7, %v3626_v20, %v3584_v60 }
 0x450   : > { %v3582_v52 = vpop.permute.xlu0 %3581 }
 0x451   : > { %v3543_v63 = vpop.permute.xlu1 %3542  ;;  %v3657_v44 = vsel %vm748_vm7, %v3623_v25, %v3582_v52 }
 0x452   : > { %5902 = vmatprep.mubr.msk.bf16.mxu0 %vm870_vm8, %v3657_v44  ;;  %5947 = vmatmul.mubr.msk.bf16.gmra.mxu1 %vm870_vm8, %v3657_v44  ;;  %v3632_v43 = vsel %vm699_vm6, %v3439_v32, %v3543_v63 }
 0x453   : > { %5903 = vmatmul.mubr.msk.bf16.gmra.mxu0 %vm870_vm8, %v3659_v31  ;;  %5950 = vmatprep.mubr.msk.bf16.mxu1 %vm870_vm8, %v3659_v31 }
 0x454   : > { %v3541_v56 = vpop.permute.xlu0 %3540 }
 0x455   : > { %v3588_v39 = vpop.permute.xlu1 %3587  ;;  %v3629_v36 = vsel %vm699_vm6, %v3438_v8, %v3541_v56 }
 0x456   : > { %v3663_v24 = vsel %vm748_vm7, %v3632_v43, %v3588_v39  ;;  %v9037_v43 = vld [vmem:[%s9224_s6] ss:$0 sm:$0xff] }
 0x458   : > { %v3586_v58 = vpop.permute.xlu0 %3585 }
 0x459   : > { %v3661_v19 = vsel %vm748_vm7, %v3629_v36, %v3586_v58  ;;  %v3590_v26 = vpop.permute.xlu1 %3589 }
 0x45a   : > { %5906 = vmatprep.mubr.msk.bf16.mxu0 %vm870_vm8, %v3661_v19  ;;  %5951 = vmatmul.mubr.msk.bf16.gmra.mxu1 %vm870_vm8, %v3661_v19 }
 0x45b   : > { %5907 = vmatmul.mubr.msk.bf16.gmra.mxu0 %vm870_vm8, %v3663_v24  ;;  %5954 = vmatprep.mubr.msk.bf16.mxu1 %vm870_vm8, %v3663_v24 }
 0x45c   : > { %v3545_v2 = vpop.permute.xlu0 %3544 }
 0x45d   : > { %v3635_v29 = vsel %vm699_vm6, %v3440_v47, %v3545_v2  ;;  %v3696_v57 = vpop.permute.xlu1 %3695 }
 0x45e   : > { %v3665_v42 = vsel %vm748_vm7, %v3635_v29, %v3590_v26 }
 0x45f   : > { %5910 = vmatprep.mubr.msk.bf16.mxu0 %vm870_vm8, %v3665_v42 }
 0x460   : > { %v3693_v33 = vpop.permute.xlu0 %3692 }
 0x461   : > { %v3699_v54 = vsel %vm699_vm6, %v3686_v59, %v3693_v33 }
 0x462   : > { %5955 = vmatmul.mubr.msk.bf16.gmra.mxu1 %vm870_vm8, %v3665_v42  ;;  %v3701_v40 = vsel %vm748_vm7, %v3699_v54, %v3696_v57 }
 0x463   : > { %5911 = vmatmul.mubr.msk.bf16.gmra.mxu0 %vm870_vm8, %v3701_v40 }
 0x464   : > { %5970 = vmatprep.mubr.msk.bf16.mxu0 %vm870_vm8, %v8806_v37 }
 0x46b   : > { %5971 = vmatmul.mubr.msk.bf16.vlgmr.msra.gmra.mxu0 %vm870_vm8, %v8824_v1 }
 0x46c   : > { %5974 = vmatprep.mubr.msk.bf16.mxu0 %vm870_vm8, %v8827_v4 }
 0x473   : > { %5975 = vmatmul.mubr.msk.bf16.gmra.mxu0 %vm870_vm8, %v8846_v55 }
 0x474   : > { %5978 = vmatprep.mubr.msk.bf16.mxu0 %vm870_vm8, %v8849_v5 }
 0x47b   : > { %5979 = vmatmul.mubr.msk.bf16.gmra.mxu0 %vm870_vm8, %v8868_v0 }
 0x47c   : > { %5982 = vmatprep.mubr.msk.bf16.mxu0 %vm870_vm8, %v8871_v46 }
 0x483   : > { %5983 = vmatmul.mubr.msk.bf16.gmra.mxu0 %vm870_vm8, %v3653_v16 }
 0x484   : > { %5986 = vmatprep.mubr.msk.bf16.mxu0 %vm870_vm8, %v3655_v41 }
 0x48b   : > { %5987 = vmatmul.mubr.msk.bf16.gmra.mxu0 %vm870_vm8, %v3657_v44 }
 0x48c   : > { %5990 = vmatprep.mubr.msk.bf16.mxu0 %vm870_vm8, %v3659_v31 }
 0x493   : > { %5991 = vmatmul.mubr.msk.bf16.gmra.mxu0 %vm870_vm8, %v3661_v19 }
 0x494   : > { %5994 = vmatprep.mubr.msk.bf16.mxu0 %vm870_vm8, %v3663_v24 }
 0x49b   : > { %5995 = vmatmul.mubr.msk.bf16.gmra.mxu0 %vm870_vm8, %v3665_v42 }
 0x49c   : > { %5998 = vmatprep.mubr.msk.bf16.mxu0 %vm870_vm8, %v3701_v40 }
 0x4a3   : > { %5999 = vmatmul.mubr.msk.bf16.gmra.mxu0 %vm870_vm8, %v9261_v17 }
 0x4e6   : > { %v5928_v37 = vpop.f32.mrf.mxu1 }
 0x4e7   : > { %v5884_v21 = vpop.f32.mrf.mxu0 }
 0x4e8   : > { %v4014_v4 = vpop.f32.mrf.mxu1  ;;  %v4023_v36 = vadd.f32 %v5928_v37, %v5884_v21 }
 0x4e9   : > { %v3817_v12 = vpop.f32.mrf.mxu0 }
 0x4ea   : > { %v5929_v38 = vpop.f32.mrf.mxu1  ;;  %v4015_v26 = vadd.f32 %v4014_v4, %v3817_v12 }
 0x4eb   : > { %v5885_v1 = vpop.f32.mrf.mxu0 }
 0x4ec   : > { %v4017_v13 = vpop.f32.mrf.mxu1  ;;  %v4026_v47 = vadd.f32 %v5929_v38, %v5885_v1 }
 0x4ed   : > { %v3820_v15 = vpop.f32.mrf.mxu0 }
 0x4ee   : > { %v4018_v33 = vadd.f32 %v4017_v13, %v3820_v15 }
 0x4f2   : > { %v5932_v55 = vpop.f32.mrf.mxu1 }
 0x4f3   : > { %v5888_v6 = vpop.f32.mrf.mxu0 }
 0x4f4   : > { %v4030_v61 = vpop.f32.mrf.mxu1  ;;  %v4039_v21 = vadd.f32 %v5932_v55, %v5888_v6 }
 0x4f5   : > { %v8960_v62 = vpop.f32.mrf.mxu0 }
 0x4f6   : > { %v5933_v22 = vpop.f32.mrf.mxu1  ;;  %v4031_v38 = vadd.f32 %v4030_v61, %v8960_v62 }
 0x4f7   : > { %v8962_v45 = vpop.f32.mrf.mxu0 }
 0x4f8   : > { %v8978_v49 = vpop.f32.mrf.mxu1 }
 0x4f9   : > { %v8964_v10 = vpop.f32.mrf.mxu0 }
 0x4fa   : > { %v8984_v34 = vpop.f32.mrf.mxu1 }
 0x4fb   : > { %v8966_v5 = vpop.f32.mrf.mxu0 }
 0x4fc   : > { %v8990_v23 = vpop.f32.mrf.mxu1 }
 0x4fd   : > { %v8968_v9 = vpop.f32.mrf.mxu0 }
 0x4fe   : > { %v8996_v48 = vpop.f32.mrf.mxu1 }
 0x4ff   : > { %v8970_v18 = vpop.f32.mrf.mxu0 }
 0x500   : > { %v9002_v41 = vpop.f32.mrf.mxu1 }
 0x501   : > { %v8972_v28 = vpop.f32.mrf.mxu0 }
 0x502   : > { %v9008_v27 = vpop.f32.mrf.mxu1 }
 0x503   : > { %v8974_v30 = vpop.f32.mrf.mxu0 }
 0x504   : > { %v9014_v52 = vpop.f32.mrf.mxu1 }
 0x505   : > { %v8976_v14 = vpop.f32.mrf.mxu0 }
 0x506   : > { %v9020_v44 = vpop.f32.mrf.mxu1 }
 0x507   : > { %v8980_v0 = vpop.f32.mrf.mxu0 }
 0x508   : > { %v9026_v39 = vpop.f32.mrf.mxu1 }
 0x509   : > { %v8982_v46 = vpop.f32.mrf.mxu0 }
 0x50a   : > { %v9032_v58 = vpop.f32.mrf.mxu1 }
 0x50b   : > { %v8986_v11 = vpop.f32.mrf.mxu0 }
 0x50c   : > { %v9039_v29 = vpop.f32.mrf.mxu1 }
 0x50d   : > { %v8988_v53 = vpop.f32.mrf.mxu0 }
 0x50f   : > { %v8992_v35 = vpop.f32.mrf.mxu0 }
 0x511   : > { %v8994_v51 = vpop.f32.mrf.mxu0 }
 0x513   : > { %v8998_v50 = vpop.f32.mrf.mxu0 }
 0x515   : > { %v9000_v16 = vpop.f32.mrf.mxu0 }
 0x517   : > { %v9004_v7 = vpop.f32.mrf.mxu0 }
 0x519   : > { %v9006_v60 = vpop.f32.mrf.mxu0 }
 0x51b   : > { %v9010_v3 = vpop.f32.mrf.mxu0 }
 0x51d   : > { %v9012_v25 = vpop.f32.mrf.mxu0 }
 0x51f   : > { %v9016_v63 = vpop.f32.mrf.mxu0 }
 0x521   : > { %v9018_v20 = vpop.f32.mrf.mxu0 }
 0x523   : > { %v9022_v31 = vpop.f32.mrf.mxu0 }
 0x525   : > { %v9024_v56 = vpop.f32.mrf.mxu0 }
 0x527   : > { %v9028_v8 = vpop.f32.mrf.mxu0 }
 0x529   : > { %v9030_v32 = vpop.f32.mrf.mxu0 }
 0x52a   : > { %9262 = vst [vmem:[#allocation12_spill] sm:$0xff] %v9030_v32  ;;  %v9043_v32 = vpop.f32.mrf.mxu1 }
 0x52b   : > { %v5972_v19 = vpop.f32.mrf.mxu0 }
 0x52c   : > { %v4353_v24 = vadd.f32 %v5972_v19, %v4023_v36  ;;  %v9049_v6 = vpop.f32.mrf.mxu1 }
 0x52d   : > { %v4224_v2 = vpop.f32.mrf.mxu0 }
 0x52e   : > { %v4391_v42 = vadd.f32 %v9037_v43, %v4353_v24  ;;  %v4351_v57 = vadd.f32 %v4224_v2, %v4015_v26  ;;  %v4042_v26 = vadd.f32 %v5933_v22, %v8962_v45  ;;  %v4055_v45 = vadd.f32 %v8984_v34, %v8966_v5 }
 0x52f   : > { %v5973_v59 = vpop.f32.mrf.mxu0 }
 0x530   : > { %v5212_v54 = vmul.f32 -1.442695, %v4391_v42  ;;  %v4389_v40 = vadd.f32 %v9037_v43, %v4351_v57  ;;  %v4354_v17 = vadd.f32 %v5973_v59, %v4026_v47  ;;  %v4034_v42 = vadd.f32 %v8978_v49, %v8964_v10 }
 0x531   : > { %v4227_v37 = vpop.f32.mrf.mxu0  ;;  %v4047_v10 = vadd.f32 %v8990_v23, %v8968_v9  ;;  %v4050_v9 = vadd.f32 %v9002_v41, %v8972_v28 }
 0x532   : > { %6396 = vpow2.f32 %v5212_v54  ;;  %v5210_v12 = vmul.f32 -1.442695, %v4389_v40  ;;  %v4392_v4 = vadd.f32 %v9037_v43, %v4354_v17  ;;  %v4352_v1 = vadd.f32 %v4227_v37, %v4018_v33  ;;  %v9057_v33 = vpop.f32.mrf.mxu1 }
 0x533   : > { %v5976_v36 = vpop.f32.mrf.mxu0 }
 0x534   : > { %6398 = vpow2.f32 %v5210_v12  ;;  %v5213_v19 = vmul.f32 -1.442695, %v4392_v4  ;;  %v4390_v15 = vadd.f32 %v9037_v43, %v4352_v1  ;;  %v4357_v13 = vadd.f32 %v5976_v36, %v4039_v21  ;;  %v9063_v1 = vpop.f32.mrf.mxu1 }
 0x535   : > { %v4240_v24 = vpop.f32.mrf.mxu0 }
 0x536   : > { %6400 = vpow2.f32 %v5213_v19  ;;  %v5211_v55 = vmul.f32 -1.442695, %v4390_v15  ;;  %v4395_v2 = vadd.f32 %v9037_v43, %v4357_v13  ;;  %v4355_v47 = vadd.f32 %v4240_v24, %v4031_v38 }
 0x537   : > { %v5977_v62 = vpop.f32.mrf.mxu0  ;;  %v4058_v19 = vadd.f32 %v8996_v48, %v8970_v18 }
 0x538   : > { %6402 = vpow2.f32 %v5211_v55  ;;  %v5216_v61 = vmul.f32 -1.442695, %v4395_v2  ;;  %v4393_v57 = vadd.f32 %v9037_v43, %v4355_v47  ;;  %v4358_v59 = vadd.f32 %v5977_v62, %v4042_v26 }
 0x539   : > { %v4243_v22 = vpop.f32.mrf.mxu0  ;;  %v4071_v55 = vadd.f32 %v9008_v27, %v8974_v30  ;;  %v4063_v30 = vadd.f32 %v9014_v52, %v8976_v14  ;;  %v4074_v27 = vadd.f32 %v9020_v44, %v8980_v0 }
 0x53a   : > { %6404 = vpow2.f32 %v5216_v61  ;;  %v5214_v54 = vmul.f32 -1.442695, %v4393_v57  ;;  %v4396_v40 = vadd.f32 %v9037_v43, %v4358_v59  ;;  %v4356_v17 = vadd.f32 %v4243_v22, %v4034_v42  ;;  %v9073_v42 = vpop.f32.mrf.mxu1 }
 0x53b   : > { %v5980_v49 = vpop.f32.mrf.mxu0 }
 0x53c   : > { %6406 = vpow2.f32 %v5214_v54  ;;  %v5217_v21 = vmul.f32 -1.442695, %v4396_v40  ;;  %v4394_v37 = vadd.f32 %v9037_v43, %v4356_v17  ;;  %v4361_v12 = vadd.f32 %v5980_v49, %v4055_v45  ;;  %v9081_v17 = vpop.f32.mrf.mxu1 }
 0x53d   : > { %v4256_v4 = vpop.f32.mrf.mxu0 }
 0x53e   : > { %6408 = vpow2.f32 %v5217_v21  ;;  %v5215_v5 = vmul.f32 -1.442695, %v4394_v37  ;;  %v4399_v34 = vadd.f32 %v9037_v43, %v4361_v12  ;;  %v4359_v38 = vadd.f32 %v4256_v4, %v4047_v10 }
 0x53f   : > { %v6397_v36 = vpop.eup %6396  ;;  %v5981_v23 = vpop.f32.mrf.mxu0  ;;  %v4066_v12 = vadd.f32 %v9026_v39, %v8982_v46 }
 0x540   : > { %v4519_v15 = vadd.f32 1.0, %v6397_v36  ;;  %6410 = vpow2.f32 %v5215_v5  ;;  %v5220_v13 = vmul.f32 -1.442695, %v4399_v34  ;;  %v4397_v26 = vadd.f32 %v9037_v43, %v4359_v38  ;;  %v9087_v36 = vpop.f32.mrf.mxu1 }
 0x541   : > { %v6399_v24 = vpop.eup %6398  ;;  %v4362_v2 = vadd.f32 %v5981_v23, %v4058_v19  ;;  %v4259_v47 = vpop.f32.mrf.mxu0  ;;  %v4087_v23 = vadd.f32 %v9032_v58, %v8986_v11 }
 0x542   : > { %6412 = vrcp.f32 %v4519_v15  ;;  %v4517_v62 = vadd.f32 1.0, %v6399_v24  ;;  %v5218_v18 = vmul.f32 -1.442695, %v4397_v26  ;;  %v4360_v48 = vadd.f32 %v4259_v47, %v4050_v9  ;;  %v9098_v58 = vpop.f32.mrf.mxu1 }
 0x543   : > { %v6401_v61 = vpop.eup %6400  ;;  %6414 = vpow2.f32 %v5220_v13  ;;  %v4400_v28 = vadd.f32 %v9037_v43, %v4362_v2  ;;  %v5984_v41 = vpop.f32.mrf.mxu0  ;;  %v4079_v15 = vadd.f32 %v9039_v29, %v8988_v53 }
 0x544   : > { %6416 = vrcp.f32 %v4517_v62  ;;  %v4520_v57 = vadd.f32 1.0, %v6401_v61  ;;  %v4398_v59 = vadd.f32 %v9037_v43, %v4360_v48  ;;  %v4365_v45 = vadd.f32 %v5984_v41, %v4071_v55 }
 0x545   : > { %v6403_v22 = vpop.eup %6402  ;;  %6418 = vpow2.f32 %v5218_v18  ;;  %v5221_v54 = vmul.f32 -1.442695, %v4400_v28  ;;  %v4272_v40 = vpop.f32.mrf.mxu0  ;;  %v4090_v62 = vadd.f32 %v9043_v32, %v8992_v35  ;;  %v4082_v35 = vadd.f32 %v9049_v6, %v8994_v51 }
 0x546   : > { %6420 = vrcp.f32 %v4520_v57  ;;  %v4518_v10 = vadd.f32 1.0, %v6403_v22  ;;  %v5219_v49 = vmul.f32 -1.442695, %v4398_v59  ;;  %v4403_v21 = vadd.f32 %v9037_v43, %v4365_v45 }
 0x547   : > { %v6405_v37 = vpop.eup %6404  ;;  %6422 = vpow2.f32 %v5221_v54  ;;  %v4363_v4 = vadd.f32 %v4272_v40, %v4063_v30  ;;  %v5985_v14 = vpop.f32.mrf.mxu0  ;;  %v4103_v6 = vadd.f32 %v9057_v33, %v8998_v50 }
 0x548   : > { %6424 = vrcp.f32 %v4518_v10  ;;  %v4523_v52 = vadd.f32 1.0, %v6405_v37  ;;  %v5224_v0 = vmul.f32 -1.442695, %v4403_v21  ;;  %v4366_v44 = vadd.f32 %v5985_v14, %v4074_v27  ;;  %v9108_v40 = vpop.f32.mrf.mxu1 }
 0x549   : > { %v6407_v5 = vpop.eup %6406  ;;  %6426 = vpow2.f32 %v5219_v49  ;;  %v4401_v34 = vadd.f32 %v9037_v43, %v4363_v4  ;;  %v4275_v38 = vpop.f32.mrf.mxu0  ;;  %v4095_v37 = vadd.f32 %v9063_v1, %v9000_v16 }
 0x54a   : > { %6428 = vrcp.f32 %v4523_v52  ;;  %v4521_v19 = vadd.f32 1.0, %v6407_v5  ;;  %v4404_v9 = vadd.f32 %v9037_v43, %v4366_v44  ;;  %v4364_v46 = vadd.f32 %v4275_v38, %v4066_v12  ;;  %v9118_v16 = vpop.f32.mrf.mxu1 }
 0x54b   : > { %v6409_v39 = vpop.eup %6408  ;;  %6430 = vpow2.f32 %v5224_v0  ;;  %v5222_v13 = vmul.f32 -1.442695, %v4401_v34  ;;  %v5988_v26 = vpop.f32.mrf.mxu0  ;;  %v4106_v34 = vadd.f32 %v9073_v42, %v9004_v7 }
 0x54c   : > { %6432 = vrcp.f32 %v4521_v19  ;;  %v4524_v24 = vadd.f32 1.0, %v6409_v39  ;;  %v5225_v55 = vmul.f32 -1.442695, %v4404_v9  ;;  %v4402_v2 = vadd.f32 %v9037_v43, %v4364_v46 }
 0x54d   : > { %v6411_v47 = vpop.eup %6410  ;;  %6434 = vpow2.f32 %v5222_v13  ;;  %v4369_v18 = vadd.f32 %v5988_v26, %v4087_v23  ;;  %v4288_v11 = vpop.f32.mrf.mxu0  ;;  %v4098_v13 = vadd.f32 %v9081_v17, %v9006_v60  ;;  %v4119_v60 = vadd.f32 %v9087_v36, %v9010_v3 }
 0x54e   : > { %6436 = vrcp.f32 %v4524_v24  ;;  %v4522_v53 = vadd.f32 1.0, %v6411_v47  ;;  %v5223_v29 = vmul.f32 -1.442695, %v4402_v2  ;;  %v4367_v48 = vadd.f32 %v4288_v11, %v4079_v15  ;;  %v5956_v11 = vpop.f32.mrf.mxu1 }
 0x54f   : > { %v6413_v61 = vpop.eup %6412  ;;  %6438 = vpow2.f32 %v5225_v55  ;;  %v4407_v28 = vadd.f32 %v9037_v43, %v4369_v18  ;;  %v5989_v41 = vpop.f32.mrf.mxu0  ;;  %v4111_v17 = vadd.f32 %v9098_v58, %v9012_v25 }
 0x550   : > { %v6415_v57 = vpop.eup %6414  ;;  %6440 = vrcp.f32 %v4522_v53  ;;  %v4405_v32 = vadd.f32 %v9037_v43, %v4367_v48  ;;  %v4370_v59 = vadd.f32 %v5989_v41, %v4090_v62  ;;  %v4126_v58 = vpop.f32.mrf.mxu1 }
 0x551   : > { %v6417_v45 = vpop.eup %6416  ;;  %v4527_v22 = vadd.f32 1.0, %v6415_v57  ;;  %6442 = vpow2.f32 %v5223_v29  ;;  %v5228_v30 = vmul.f32 -1.442695, %v4407_v28  ;;  %v4291_v27 = vpop.f32.mrf.mxu0 }
 0x552   : > { %v6419_v54 = vpop.eup %6418  ;;  %v5226_v10 = vmul.f32 -1.442695, %v4405_v32  ;;  %v4408_v49 = vadd.f32 %v9037_v43, %v4370_v59  ;;  %v4368_v21 = vadd.f32 %v4291_v27, %v4082_v35 }
 0x553   : > { %v6421_v51 = vpop.eup %6420  ;;  %6444 = vrcp.f32 %v4527_v22  ;;  %v4525_v12 = vadd.f32 1.0, %v6419_v54  ;;  %v5992_v4 = vpop.f32.mrf.mxu0  ;;  %v4122_v22 = vadd.f32 %v9108_v40, %v9016_v63 }
 0x554   : > { %v6423_v14 = vpop.eup %6422  ;;  %v5321_v52 = vpack.c.bf16 %v6421_v51, %v6413_v61  ;;  %6446 = vpow2.f32 %v5228_v30  ;;  %v5229_v0 = vmul.f32 -1.442695, %v4408_v49  ;;  %v4406_v44 = vadd.f32 %v9037_v43, %v4368_v21 }
 0x555   : > { %v6425_v5 = vpop.eup %6424  ;;  %6448 = vrcp.f32 %v4525_v12  ;;  %v4528_v38 = vadd.f32 1.0, %v6423_v14  ;;  %v4373_v50 = vadd.f32 %v5992_v4, %v4103_v6  ;;  %v4304_v33 = vpop.f32.mrf.mxu0  ;;  %v4114_v12 = vadd.f32 %v9118_v16, %v9018_v20 }
 0x556   : > { %v6427_v19 = vpop.eup %6426  ;;  %5393 = vst [vmem:[%s9121_s17 + $0x8] sm:$0xff] %v5321_v52   ;;  %v5316_v1 = vpack.c.bf16 %v6425_v5, %v6417_v45  ;;  %6450 = vpow2.f32 %v5226_v10  ;;  %v5227_v9 = vmul.f32 -1.442695, %v4406_v44  ;;  %v4371_v46 = vadd.f32 %v4304_v33, %v4095_v37  ;;  %v5957_v44 = vpop.f32.mrf.mxu1 }
 0x557   : > { %v6429_v39 = vpop.eup %6428  ;;  %6452 = vrcp.f32 %v4528_v38  ;;  %v4526_v23 = vadd.f32 1.0, %v6427_v19  ;;  %v4411_v7 = vadd.f32 %v9037_v43, %v4373_v50  ;;  %v5993_v42 = vpop.f32.mrf.mxu0  ;;  %v4135_v4 = vadd.f32 %v5956_v11, %v9022_v31 }
 0x558   : > { %v6431_v15 = vpop.eup %6430  ;;  %5317 = vst [vmem:[%s9121_s17] sm:$0xff] %v5316_v1   ;;  %6454 = vpow2.f32 %v5229_v0  ;;  %v4409_v26 = vadd.f32 %v9037_v43, %v4371_v46  ;;  %v4374_v24 = vadd.f32 %v5993_v42, %v4106_v34  ;;  %v4127_v33 = vadd.f32 %v4126_v58, %v9024_v56 }
 0x559   : > { %v6433_v55 = vpop.eup %6432  ;;  %6456 = vrcp.f32 %v4526_v23  ;;  %v4531_v2 = vadd.f32 1.0, %v6431_v15  ;;  %v5232_v47 = vmul.f32 -1.442695, %v4411_v7  ;;  %v4307_v62 = vpop.f32.mrf.mxu0 }
 0x55a   : > { %v6435_v18 = vpop.eup %6434  ;;  %6458 = vpow2.f32 %v5227_v9  ;;  %v5230_v53 = vmul.f32 -1.442695, %v4409_v26  ;;  %v4412_v29 = vadd.f32 %v9037_v43, %v4374_v24  ;;  %v4372_v48 = vadd.f32 %v4307_v62, %v4098_v13  ;;  %v4129_v13 = vpop.f32.mrf.mxu1 }
 0x55b   : > { %v6437_v61 = vpop.eup %6436  ;;  %6460 = vrcp.f32 %v4531_v2  ;;  %v4529_v28 = vadd.f32 1.0, %v6435_v18  ;;  %v5996_v41 = vpop.f32.mrf.mxu0  ;;  %v9263_v2 = vld [vmem:[#allocation12_spill] sm:$0xff] }
 0x55c   : > { %v6439_v57 = vpop.eup %6438  ;;  %v5331_v35 = vpack.c.bf16 %v6437_v61, %v6429_v39  ;;  %6462 = vpow2.f32 %v5232_v47  ;;  %v5233_v32 = vmul.f32 -1.442695, %v4412_v29  ;;  %v4410_v59 = vadd.f32 %v9037_v43, %v4372_v48 }
 0x55d   : > { %v6441_v45 = vpop.eup %6440  ;;  %6464 = vrcp.f32 %v4529_v28  ;;  %v4532_v3 = vadd.f32 1.0, %v6439_v57  ;;  %v4377_v36 = vadd.f32 %v5996_v41, %v4119_v60  ;;  %v4320_v30 = vpop.f32.mrf.mxu0  ;;  %v4138_v39 = vadd.f32 %v5957_v44, %v9028_v8 }
 0x55e   : > { %v6443_v25 = vpop.eup %6442  ;;  %5395 = vst [vmem:[%s9121_s17 + $0x18] sm:$0xff] %v5331_v35   ;;  %v5326_v27 = vpack.c.bf16 %v6441_v45, %v6433_v55  ;;  %6466 = vpow2.f32 %v5230_v53  ;;  %v5231_v54 = vmul.f32 -1.442695, %v4410_v59  ;;  %v4375_v10 = vadd.f32 %v4320_v30, %v4111_v17 }
 0x55f   : > { %6468 = vrcp.f32 %v4532_v3  ;;  %v4530_v49 = vadd.f32 1.0, %v6443_v25  ;;  %v4415_v21 = vadd.f32 %v9037_v43, %v4377_v36  ;;  %v5997_v51 = vpop.f32.mrf.mxu0  ;;  %v4130_v47 = vadd.f32 %v4129_v13, %v9263_v2 }
 0x560   : > { %v6445_v6 = vpop.eup %6444  ;;  %5394 = vst [vmem:[%s9121_s17 + $0x10] sm:$0xff] %v5326_v27   ;;  %6470 = vpow2.f32 %v5233_v32  ;;  %v4413_v63 = vadd.f32 %v9037_v43, %v4375_v10  ;;  %v4378_v40 = vadd.f32 %v5997_v51, %v4122_v22 }
 0x561   : > { %v6447_v37 = vpop.eup %6446  ;;  %6472 = vrcp.f32 %v4530_v49  ;;  %v5236_v14 = vmul.f32 -1.442695, %v4415_v21  ;;  %v4323_v52 = vpop.f32.mrf.mxu0 }
 0x562   : > { %v6449_v0 = vpop.eup %6448  ;;  %v4535_v5 = vadd.f32 1.0, %v6447_v37  ;;  %6474 = vpow2.f32 %v5231_v54  ;;  %v5234_v34 = vmul.f32 -1.442695, %v4413_v63  ;;  %v4416_v38 = vadd.f32 %v9037_v43, %v4378_v40 }
 0x563   : > { %v6451_v50 = vpop.eup %6450  ;;  %6476 = vpow2.f32 %v5236_v14  ;;  %v4376_v19 = vadd.f32 %v4323_v52, %v4114_v12  ;;  %v6000_v1 = vpop.f32.mrf.mxu0 }
 0x564   : > { %v6453_v9 = vpop.eup %6452  ;;  %6478 = vrcp.f32 %v4535_v5  ;;  %v4533_v20 = vadd.f32 1.0, %v6451_v50  ;;  %v5237_v31 = vmul.f32 -1.442695, %v4416_v38  ;;  %v4381_v16 = vadd.f32 %v6000_v1, %v4135_v4 }
 0x565   : > { %v6455_v46 = vpop.eup %6454  ;;  %v5341_v23 = vpack.c.bf16 %v6453_v9, %v6445_v6  ;;  %6480 = vpow2.f32 %v5234_v34  ;;  %v4414_v7 = vadd.f32 %v9037_v43, %v4376_v19  ;;  %v4336_v42 = vpop.f32.mrf.mxu0 }
 0x566   : > { %v6457_v15 = vpop.eup %6456  ;;  %6482 = vrcp.f32 %v4533_v20  ;;  %v4536_v56 = vadd.f32 1.0, %v6455_v46  ;;  %v4419_v26 = vadd.f32 %v9037_v43, %v4381_v16  ;;  %v4379_v24 = vadd.f32 %v4336_v42, %v4127_v33 }
 0x567   : > { %v6459_v55 = vpop.eup %6458  ;;  %5397 = vst [vmem:[%s9121_s17 + $0x28] sm:$0xff] %v5341_v23   ;;  %v5336_v62 = vpack.c.bf16 %v6457_v15, %v6449_v0  ;;  %6484 = vpow2.f32 %v5237_v31  ;;  %v5235_v8 = vmul.f32 -1.442695, %v4414_v7  ;;  %v6001_v18 = vpop.f32.mrf.mxu0 }
 0x568   : > { %v6461_v11 = vpop.eup %6460  ;;  %6486 = vrcp.f32 %v4536_v56  ;;  %v4534_v53 = vadd.f32 1.0, %v6459_v55  ;;  %v5240_v29 = vmul.f32 -1.442695, %v4419_v26  ;;  %v4417_v48 = vadd.f32 %v9037_v43, %v4379_v24 }
 0x569   : > { %v6463_v61 = vpop.eup %6462  ;;  %5396 = vst [vmem:[%s9121_s17 + $0x20] sm:$0xff] %v5336_v62   ;;  %6488 = vpow2.f32 %v5235_v8  ;;  %v4382_v60 = vadd.f32 %v6001_v18, %v4138_v39  ;;  %v4339_v17 = vpop.f32.mrf.mxu0 }
 0x56a   : > { %v6465_v28 = vpop.eup %6464  ;;  %6490 = vrcp.f32 %v4534_v53  ;;  %v4539_v41 = vadd.f32 1.0, %v6463_v61  ;;  %v5238_v57 = vmul.f32 -1.442695, %v4417_v48  ;;  %v4380_v35 = vadd.f32 %v4339_v17, %v4130_v47 }
 0x56b   : > { %v6467_v32 = vpop.eup %6466  ;;  %6492 = vpow2.f32 %v5240_v29  ;;  %v4420_v59 = vadd.f32 %v9037_v43, %v4382_v60 }
 0x56c   : > { %v6469_v45 = vpop.eup %6468  ;;  %6494 = vrcp.f32 %v4539_v41  ;;  %v4537_v22 = vadd.f32 1.0, %v6467_v32  ;;  %v4418_v3 = vadd.f32 %v9037_v43, %v4380_v35 }
 0x56d   : > { %v6471_v36 = vpop.eup %6470  ;;  %v5351_v30 = vpack.c.bf16 %v6469_v45, %v6461_v11  ;;  %6496 = vpow2.f32 %v5238_v57  ;;  %v5241_v25 = vmul.f32 -1.442695, %v4420_v59 }
 0x56e   : > { %v6473_v58 = vpop.eup %6472  ;;  %6498 = vrcp.f32 %v4537_v22  ;;  %v4540_v27 = vadd.f32 1.0, %v6471_v36  ;;  %v5239_v54 = vmul.f32 -1.442695, %v4418_v3 }
 0x56f   : > { %v6475_v10 = vpop.eup %6474  ;;  %5399 = vst [vmem:[%s9121_s17 + $0x38] sm:$0xff] %v5351_v30   ;;  %v5346_v49 = vpack.c.bf16 %v6473_v58, %v6465_v28  ;;  %6500 = vpow2.f32 %v5241_v25 }
 0x570   : > { %v6477_v21 = vpop.eup %6476  ;;  %6502 = vrcp.f32 %v4540_v27  ;;  %v4538_v51 = vadd.f32 1.0, %v6475_v10 }
 0x571   : > { %v6479_v6 = vpop.eup %6478  ;;  %5398 = vst [vmem:[%s9121_s17 + $0x30] sm:$0xff] %v5346_v49   ;;  %6504 = vpow2.f32 %v5239_v54  ;;  %v4543_v63 = vadd.f32 1.0, %v6477_v21 }
 0x572   : > { %v6481_v43 = vpop.eup %6480  ;;  %6506 = vrcp.f32 %v4538_v51 }
 0x573   : > { %v6483_v40 = vpop.eup %6482  ;;  %v4541_v12 = vadd.f32 1.0, %v6481_v43  ;;  %6508 = vrcp.f32 %v4543_v63 }
 0x574   : > { %v6485_v37 = vpop.eup %6484 }
 0x575   : > { %v6487_v4 = vpop.eup %6486  ;;  %v4544_v14 = vadd.f32 1.0, %v6485_v37 }
 0x576   : > { %v6489_v52 = vpop.eup %6488  ;;  %v5361_v0 = vpack.c.bf16 %v6487_v4, %v6479_v6 }
 0x577   : > { %v6491_v44 = vpop.eup %6490  ;;  %6510 = vrcp.f32 %v4544_v14  ;;  %v4542_v5 = vadd.f32 1.0, %v6489_v52 }
 0x578   : > { %v6493_v34 = vpop.eup %6492  ;;  %5401 = vst [vmem:[%s9121_s17 + $0x48] sm:$0xff] %v5361_v0   ;;  %v5356_v38 = vpack.c.bf16 %v6491_v44, %v6483_v40  ;;  %6512 = vrcp.f32 %v4541_v12 }
 0x579   : > { %v6495_v50 = vpop.eup %6494  ;;  %6514 = vrcp.f32 %v4542_v5  ;;  %v4547_v19 = vadd.f32 1.0, %v6493_v34 }
 0x57a   : > { %v6497_v33 = vpop.eup %6496  ;;  %5400 = vst [vmem:[%s9121_s17 + $0x40] sm:$0xff] %v5356_v38  }
 0x57b   : > { %v6499_v1 = vpop.eup %6498  ;;  %v4545_v20 = vadd.f32 1.0, %v6497_v33  ;;  %6516 = vrcp.f32 %v4547_v19 }
 0x57c   : > { %v6501_v9 = vpop.eup %6500 }
 0x57d   : > { %v6503_v31 = vpop.eup %6502  ;;  %v4548_v16 = vadd.f32 1.0, %v6501_v9 }
 0x57e   : > { %v6505_v46 = vpop.eup %6504  ;;  %v5371_v39 = vpack.c.bf16 %v6503_v31, %v6495_v50 }
 0x57f   : > { %v6507_v23 = vpop.eup %6506  ;;  %6518 = vrcp.f32 %v4548_v16  ;;  %v4546_v7 = vadd.f32 1.0, %v6505_v46 }
 0x580   : > { %5403 = vst [vmem:[%s9121_s17 + $0x58] sm:$0xff] %v5371_v39   ;;  %v5366_v42 = vpack.c.bf16 %v6507_v23, %v6499_v1  ;;  %6520 = vrcp.f32 %v4545_v20  ;;  %v6509_v15 = vpop.eup %6508 }
 0x581   : > { %6522 = vrcp.f32 %v4546_v7 }
 0x582   : > { %5402 = vst [vmem:[%s9121_s17 + $0x50] sm:$0xff] %v5366_v42  }
 0x584   : > { %v6511_v13 = vpop.eup %6510 }
 0x585   : > { %v6513_v56 = vpop.eup %6512  ;;  %v5381_v26 = vpack.c.bf16 %v6511_v13, %v6509_v15 }
 0x586   : > { %v6515_v24 = vpop.eup %6514 }
 0x587   : > { %5405 = vst [vmem:[%s9121_s17 + $0x68] sm:$0xff] %v5381_v26   ;;  %v5376_v55 = vpack.c.bf16 %v6515_v24, %v6513_v56 }
 0x588   : > { %v6517_v2 = vpop.eup %6516 }
 0x589   : > { %5404 = vst [vmem:[%s9121_s17 + $0x60] sm:$0xff] %v5376_v55  }
 0x58c   : > { %v6519_v47 = vpop.eup %6518 }
 0x58d   : > { %v6521_v62 = vpop.eup %6520  ;;  %v5391_v8 = vpack.c.bf16 %v6519_v47, %v6517_v2 }
 0x58e   : > { %v6523_v18 = vpop.eup %6522 }
 0x58f   : > { %5407 = vst [vmem:[%s9121_s17 + $0x78] sm:$0xff] %v5391_v8   ;;  %v5386_v11 = vpack.c.bf16 %v6523_v18, %v6521_v62 }
 0x591   : > { %5406 = vst [vmem:[%s9121_s17 + $0x70] sm:$0xff] %v5386_v11  }
 0x592   : > { %6566 = shalt.err (!%p6563_p0)
}
 0x593   : > { %s6567_s14 = scalar_lea.hbm %s9168_s22, 2048  ;;  %s6571_s17 = scalar_lea.hbm %s9225_s7, 4096 }
 0x594   : > { %p6568_p1 = scmp.ne.s32.totalorder %s9168_s22, %s6567_s14  ;;  %p6572_p4 = scmp.lt.s32.totalorder %s9168_s22, %s9225_s7 }
 0x595   : > { %p6573_p7 = scmp.lt.s32.totalorder %s6571_s17, %s6567_s14 }
 0x596   : > { %p6569_p2 = pnand %p6568_p1, %p6705_p5 }
 0x597   : > { %p6574_p8 = por %p6573_p7, %p6572_p4 }
 0x598   : > { %p6570_p3 = pneg %p6569_p2 }
 0x59a   : > { %p6575_p6 = pnand %p6574_p8, %p6570_p3 }
 0x59c   : > { %6578 = shalt.err (!%p6575_p6)
}
 0x59d   : > { %s6626_s21 = smov 4  }
 0x59e   : > { %6018 = dma.vmem_to_hbm [thread:$0]  (%p6705_p5), %s9171_s19, 2048, %s9168_s22, %s9176_s28, %s6623_s13, %s6623_s13, %s6626_s21  }
 0x59f PF: > { %p6030_p9 = scmp.ge.s32.totalorder %s6617_s27, 2  ;;  %s4802_s23 = sand.u32 1, %s6605_s24  }
 0x5a0   : > { %p9264_p10 = scmp.ne.s32.totalorder %s9237_s12, 0  ;;  %s4803_s29 = scalar_lea.sflag [#allocation4], %s4802_s23 }
 0x5a2   : > { %p6025_p11 = pnand %p6030_p9, %p9264_p10 }
 0x5a4   : > { %p6026_p12 = pneg %p6025_p11 }
 0x5a6   : > { %6600 = dma.done.wait (%p6026_p12), %s4803_s29, 2048  }
 0x5a7   : > { %6602 = vsyncadd (%p6026_p12), %s4803_s29, 4294965248  ;;  %p18_p13 = scmp.ge.s32.totalorder %s6692_s30, 4   ;;  %s9265_s24 = smov %s6609_s25 }
 0x5a8   : > { %s9266_s25 = smov %s6613_s26  ;;  %s9267_s26 = smov %s6703_s10 }
 0x5a9   : > { %s9268_s27 = smov %s6692_s30  ;;  %20 = sbr.rel (!%p18_p13) target bundleno = 4 (0x4), region = 95 }
 0x5ae   :  { %4808 = vsyncpa [#allocation3], 1 }
 0x5af   :  { %4810 = vsyncpa [#allocation3 + $0x1], 1 }
 0x5b0   :  { %4811 = vsyncpa [#allocation4], 1 }
 0x5b1   :  { %4813 = vsyncpa [#allocation4 + $0x1], 1 }

</bundles_post_ra>
